<compile_context>
chip_gen: v6e
topology: v6e:2x2x1
jax: 0.10.0
libtpu: 0.0.40
codegen_flags: <defaults>
</compile_context>

<pallas_src>
import math
import functools

import jax
import jax.numpy as jnp
from jax.experimental import pallas as pl
from jax.experimental.pallas import tpu as pltpu


# ---------------------------------------------------------------------------
# Fused encoder-layer kernel (Bt batch elements per grid step)
# ---------------------------------------------------------------------------

def _fused_encoder_kernel(*refs, n_head, eps, use_memory):
    if use_memory:
        (data_ref, mem_ref, pe_ref,
         wlm_ref, wld_ref, bl_ref,
         wq_ref, bq_ref, wk_ref, bk_ref, wv_ref, bv_ref,
         wo_ref, bo_ref,
         w1_ref, b1_ref, w2_ref, b2_ref,
         g1_ref, be1_ref, g2_ref, be2_ref,
         o_ref) = refs
    else:
        (data_ref, pe_ref,
         wq_ref, bq_ref, wk_ref, bk_ref, wv_ref, bv_ref,
         wo_ref, bo_ref,
         w1_ref, b1_ref, w2_ref, b2_ref,
         g1_ref, be1_ref, g2_ref, be2_ref,
         o_ref) = refs

    S, Bt, D = data_ref.shape            # block = (seq, batch-tile, dim)
    H = n_head
    M = S * Bt                           # fused row count; row r -> (s=r//Bt, b=r%Bt)
    bf16 = jnp.bfloat16
    f32 = jnp.float32

    # Flatten to (M, D): merges leading dims only, last (lane) dim untouched.
    x = data_ref[...].reshape(M, D)      # f32

    if use_memory:
        # torch: cat((memory, data), -1) @ W_layer.T + b
        #      = memory @ Wl.T[:D] + data @ Wl.T[D:] + b   (no concat needed)
        m = mem_ref[...].reshape(M, D)
        x = (jnp.dot(m.astype(bf16), wlm_ref[...], preferred_element_type=f32)
             + jnp.dot(x.astype(bf16), wld_ref[...], preferred_element_type=f32)
             + bl_ref[...])

    # PositionalEncoding: x + pe[s]  (pe pre-repeated per batch row in wrapper;
    # dropout p=0.6 is identity in eval).
    x2 = x + pe_ref[...]                 # (M, D) f32
    x2b = x2.astype(bf16)

    # Additive cross-batch mask: rows/cols with different batch index get a
    # large negative bias -> exp() == 0, exactly equivalent to per-batch
    # softmax, while keeping one (M, M) MXU-friendly score matmul per head.
    if Bt > 1:
        ri = jax.lax.broadcasted_iota(jnp.int32, (M, M), 0)
        ci = jax.lax.broadcasted_iota(jnp.int32, (M, M), 1)
        attn_bias = jnp.where((ri % Bt) == (ci % Bt), 0.0, -1e30).astype(f32)
    else:
        attn_bias = None

    # --- self-attention (nn.MultiheadAttention) ---
    heads = []
    for h in range(H):                   # static loop, H small
        # Head-major weights: leading-axis ref index, no lane slicing.
        # 1/sqrt(Dh) scale is pre-folded into wq/bq.
        qh = jnp.dot(x2b, wq_ref[h], preferred_element_type=f32) + bq_ref[h]
        kh = jnp.dot(x2b, wk_ref[h], preferred_element_type=f32) + bk_ref[h]
        vh = jnp.dot(x2b, wv_ref[h], preferred_element_type=f32) + bv_ref[h]

        # q k^T without materializing a transpose (contract last dims).
        s = jax.lax.dot_general(qh.astype(bf16), kh.astype(bf16),
                                (((1,), (1,)), ((), ())),
                                preferred_element_type=f32)     # (M, M)
        if attn_bias is not None:
            s = s + attn_bias
        s = s - jnp.max(s, axis=-1, keepdims=True)
        p = jnp.exp(s)
        p = p * pl.reciprocal(jnp.sum(p, axis=-1, keepdims=True), approx=True)
        heads.append(jnp.dot(p.astype(bf16), vh.astype(bf16),
                             preferred_element_type=f32))        # (M, Dh)

    # Dense out-projection: one full-K (M, D) @ (D, D) matmul.
    ctx = jnp.concatenate(heads, axis=-1)                         # (M, D)
    attn = jnp.dot(ctx.astype(bf16), wo_ref[...],
                   preferred_element_type=f32) + bo_ref[...]

    def layernorm(z, g, b):               # f32
        mu = jnp.mean(z, axis=-1, keepdims=True)
        d = z - mu
        var = jnp.mean(d * d, axis=-1, keepdims=True)
        return d * jax.lax.rsqrt(var + eps) * g + b

    # post-norm encoder layer (eval: dropouts identity)
    x1 = layernorm(x2 + attn, g1_ref[...], be1_ref[...])

    # FFN: linear2(relu(linear1(x1)))
    hdn = jnp.maximum(
        jnp.dot(x1.astype(bf16), w1_ref[...], preferred_element_type=f32)
        + b1_ref[...], 0.0)
    ff = jnp.dot(hdn.astype(bf16), w2_ref[...], preferred_element_type=f32) \
        + b2_ref[...]

    out = layernorm(x1 + ff, g2_ref[...], be2_ref[...])
    o_ref[...] = out.reshape(S, Bt, D)


def _const_spec(arr):
    nd = arr.ndim
    return pl.BlockSpec(tuple(arr.shape), lambda g: (0,) * nd)


# ---------------------------------------------------------------------------
# One-time parameter preparation (hoisted out of the jitted forward)
# ---------------------------------------------------------------------------

def prepare_params(params, dim, n_head):
    D, H = dim, n_head
    Dh = D // H
    scale = 1.0 / math.sqrt(Dh)
    bf16 = jnp.bfloat16

    def head_major(w):                    # (D_out=D, D_in=D) -> (H, D_in, Dh)
        return jnp.transpose(w.reshape(H, Dh, D), (0, 2, 1))

    wq = params["in_proj_w"][:D]
    wk = params["in_proj_w"][D:2 * D]
    wv = params["in_proj_w"][2 * D:]
    bq = params["in_proj_b"][:D]
    bk = params["in_proj_b"][D:2 * D]
    bv = params["in_proj_b"][2 * D:]
    wl_t = params["layer_w"].T            # (2D, D)

    return {
        # self.layer (cat split: memory part / data part)
        "wlm": wl_t[:D].astype(bf16),
        "wld": wl_t[D:].astype(bf16),
        "bl": params["layer_b"].reshape(1, D),
        # attention: head-major, 1/sqrt(Dh) folded into q weights/bias
        "wq": (head_major(wq) * scale).astype(bf16),
        "bq": (bq * scale).reshape(H, 1, Dh),
        "wk": head_major(wk).astype(bf16),
        "bk": bk.reshape(H, 1, Dh),
        "wv": head_major(wv).astype(bf16),
        "bv": bv.reshape(H, 1, Dh),
        "wo": params["out_proj_w"].T.astype(bf16),
        "bo": params["out_proj_b"].reshape(1, D),
        # FFN
        "w1": params["lin1_w"].T.astype(bf16),
        "b1": params["lin1_b"].reshape(1, -1),
        "w2": params["lin2_w"].T.astype(bf16),
        "b2": params["lin2_b"].reshape(1, D),
        # LayerNorms
        "g1": params["ln1_g"].reshape(1, D),
        "be1": params["ln1_b"].reshape(1, D),
        "g2": params["ln2_g"].reshape(1, D),
        "be2": params["ln2_b"].reshape(1, D),
    }


# ---------------------------------------------------------------------------
# Forward pass wrapper
# ---------------------------------------------------------------------------

def global_attention_transformer(prepared, data, memory=None, *,
                                 n_head, pe, batch_block=None):
    """data/memory: (S, B, D) float32 -> (S, B, D) float32 (eval mode)."""
    S, B, D = data.shape
    use_memory = memory is not None

    Bt = B if batch_block is None else batch_block
    if B % Bt != 0:
        raise ValueError(f"batch {B} must be divisible by batch_block {Bt}")

    # pe row for flattened row r = s*Bt + b is pe[s] -> repeat each pe row Bt x.
    pe_rep = jnp.repeat(pe[:S, 0, :], Bt, axis=0)            # (Bt*S, D) f32

    w = prepared
    weights = []
    if use_memory:
        weights += [w["wlm"], w["wld"], w["bl"]]
    weights += [w["wq"], w["bq"], w["wk"], w["bk"], w["wv"], w["bv"],
                w["wo"], w["bo"], w["w1"], w["b1"], w["w2"], w["b2"],
                w["g1"], w["be1"], w["g2"], w["be2"]]

    # Blocks are taken straight from the (S, B, D) layout -> no HBM transposes.
    slab_spec = pl.BlockSpec((S, Bt, D), lambda g: (0, g, 0))

    inputs = [data]
    in_specs = [slab_spec]
    if use_memory:
        inputs.append(memory)
        in_specs.append(slab_spec)
    inputs.append(pe_rep)
    in_specs.append(_const_spec(pe_rep))
    inputs += weights
    in_specs += [_const_spec(x) for x in weights]

    kern = functools.partial(_fused_encoder_kernel,
                             n_head=n_head, eps=1e-5, use_memory=use_memory)

    out = pl.pallas_call(
        kern,
        out_shape=jax.ShapeDtypeStruct((S, B, D), jnp.float32),
        grid=(B // Bt,),
        in_specs=in_specs,
        out_specs=slab_spec,
        compiler_params=pltpu.CompilerParams(
            dimension_semantics=("parallel",),        # 2-step grid -> both v7x TCs
            vmem_limit_bytes=32 * 1024 * 1024),
    )(*inputs)

    return out


# ---------------------------------------------------------------------------
# Parameter / buffer construction (deterministic, matches __init__ shapes)
# ---------------------------------------------------------------------------

def make_positional_encoding(d_model, max_len):
    position = jnp.arange(max_len, dtype=jnp.float32)[:, None]
    div_term = jnp.exp(jnp.arange(0, d_model, 2, dtype=jnp.float32)
                       * (-math.log(10000.0) / d_model))
    pe = jnp.zeros((max_len, d_model), dtype=jnp.float32)
    pe = pe.at[:, 0::2].set(jnp.sin(position * div_term))
    pe = pe.at[:, 1::2].set(jnp.cos(position * div_term))
    return pe[:, None, :]                                  # (max_len, 1, d_model)


def init_params(key, dim, n_head, dim_ff):
    ks = jax.random.split(key, 6)

    def xavier(k, shape):
        fan_out, fan_in = shape
        bound = math.sqrt(6.0 / (fan_in + fan_out))
        return jax.random.uniform(k, shape, jnp.float32, -bound, bound)

    return {
        # self.layer = nn.Linear(dim*2, dim), xavier_uniform_ weight, zero bias
        "layer_w": xavier(ks[0], (dim, dim * 2)),
        "layer_b": jnp.zeros((dim,), jnp.float32),
        # MultiheadAttention
        "in_proj_w": xavier(ks[1], (3 * dim, dim)),
        "in_proj_b": jnp.zeros((3 * dim,), jnp.float32),
        "out_proj_w": xavier(ks[2], (dim, dim)),
        "out_proj_b": jnp.zeros((dim,), jnp.float32),
        # Feed-forward
        "lin1_w": xavier(ks[3], (dim_ff, dim)),
        "lin1_b": jnp.zeros((dim_ff,), jnp.float32),
        "lin2_w": xavier(ks[4], (dim, dim_ff)),
        "lin2_b": jnp.zeros((dim,), jnp.float32),
        # LayerNorms
        "ln1_g": jnp.ones((dim,), jnp.float32),
        "ln1_b": jnp.zeros((dim,), jnp.float32),
        "ln2_g": jnp.ones((dim,), jnp.float32),
        "ln2_b": jnp.zeros((dim,), jnp.float32),
    }


# ---------------------------------------------------------------------------
# Main
# ---------------------------------------------------------------------------

if __name__ == "__main__":
    # Small shapes consistent with the module (dim scaled down from 256).
    DIM = 32
    N_HEAD = 4
    SEQ = 8            # seq_length (pos-enc max_len)
    BATCH = 16
    BATCH_BLOCK = 8    # 8 batch elements per grid step -> grid=(2,) parallel
    DIM_FF = 64        # nn.TransformerEncoderLayer dim_feedforward (scaled down)

    key = jax.random.PRNGKey(0)
    k_data, k_mem, k_param = jax.random.split(key, 3)

    data = jax.random.normal(k_data, (SEQ, BATCH, DIM), jnp.float32)
    memory = jax.random.normal(k_mem, (SEQ, BATCH, DIM), jnp.float32)

    params = init_params(k_param, DIM, N_HEAD, DIM_FF)
    pe = make_positional_encoding(DIM, SEQ)
    prepared = prepare_params(params, DIM, N_HEAD)      # one-time weight packing

    fwd = jax.jit(functools.partial(global_attention_transformer,
                                    n_head=N_HEAD, pe=pe,
                                    batch_block=BATCH_BLOCK))

    # with memory (cat + self.layer path)
    out = jax.block_until_ready(fwd(prepared, data, memory))
    assert out.shape == (SEQ, BATCH, DIM)
    assert out.dtype == jnp.float32
    assert bool(jnp.all(jnp.isfinite(out)))

    # memory=None path (pos_enc -> encoder directly)
    out_nomem = jax.block_until_ready(fwd(prepared, data))
    assert out_nomem.shape == (SEQ, BATCH, DIM)
    assert bool(jnp.all(jnp.isfinite(out_nomem)))

    print("KERNEL_OK")
</pallas_src>

<mosaic_0001>
module attributes {stable_mosaic.version = 11 : i64} {
  func.func @_fused_encoder_kernel(%arg0: i32, %arg1: memref<8x8x32xf32, #tpu.memory_space<vmem>>, %arg2: memref<8x8x32xf32, #tpu.memory_space<vmem>>, %arg3: memref<64x32xf32, #tpu.memory_space<vmem>>, %arg4: memref<32x32xbf16, #tpu.memory_space<vmem>>, %arg5: memref<32x32xbf16, #tpu.memory_space<vmem>>, %arg6: memref<1x32xf32, #tpu.memory_space<vmem>>, %arg7: memref<4x32x8xbf16, #tpu.memory_space<vmem>>, %arg8: memref<4x1x8xf32, #tpu.memory_space<vmem>>, %arg9: memref<4x32x8xbf16, #tpu.memory_space<vmem>>, %arg10: memref<4x1x8xf32, #tpu.memory_space<vmem>>, %arg11: memref<4x32x8xbf16, #tpu.memory_space<vmem>>, %arg12: memref<4x1x8xf32, #tpu.memory_space<vmem>>, %arg13: memref<32x32xbf16, #tpu.memory_space<vmem>>, %arg14: memref<1x32xf32, #tpu.memory_space<vmem>>, %arg15: memref<32x64xbf16, #tpu.memory_space<vmem>>, %arg16: memref<1x64xf32, #tpu.memory_space<vmem>>, %arg17: memref<64x32xbf16, #tpu.memory_space<vmem>>, %arg18: memref<1x32xf32, #tpu.memory_space<vmem>>, %arg19: memref<1x32xf32, #tpu.memory_space<vmem>>, %arg20: memref<1x32xf32, #tpu.memory_space<vmem>>, %arg21: memref<1x32xf32, #tpu.memory_space<vmem>>, %arg22: memref<1x32xf32, #tpu.memory_space<vmem>>, %arg23: memref<8x8x32xf32, #tpu.memory_space<vmem>>) attributes {dimension_semantics = [#tpu.dimension_semantics<parallel>], iteration_bounds = array<i64: 2>, scalar_prefetch = 0 : i64, scratch_operands = 0 : i64, tpu.core_type = #tpu.core_type<tc>, window_params = [{transform_indices = @transform_0, window_bounds = array<i64: 8, 8, 32>}, {transform_indices = @transform_1, window_bounds = array<i64: 8, 8, 32>}, {pipeline_mode = #tpu.pipeline_mode<synchronous>, transform_indices = @transform_2, window_bounds = array<i64: 64, 32>}, {pipeline_mode = #tpu.pipeline_mode<synchronous>, transform_indices = @transform_3, window_bounds = array<i64: 32, 32>}, {pipeline_mode = #tpu.pipeline_mode<synchronous>, transform_indices = @transform_4, window_bounds = array<i64: 32, 32>}, {pipeline_mode = #tpu.pipeline_mode<synchronous>, transform_indices = @transform_5, window_bounds = array<i64: 1, 32>}, {pipeline_mode = #tpu.pipeline_mode<synchronous>, transform_indices = @transform_6, window_bounds = array<i64: 4, 32, 8>}, {pipeline_mode = #tpu.pipeline_mode<synchronous>, transform_indices = @transform_7, window_bounds = array<i64: 4, 1, 8>}, {pipeline_mode = #tpu.pipeline_mode<synchronous>, transform_indices = @transform_8, window_bounds = array<i64: 4, 32, 8>}, {pipeline_mode = #tpu.pipeline_mode<synchronous>, transform_indices = @transform_9, window_bounds = array<i64: 4, 1, 8>}, {pipeline_mode = #tpu.pipeline_mode<synchronous>, transform_indices = @transform_10, window_bounds = array<i64: 4, 32, 8>}, {pipeline_mode = #tpu.pipeline_mode<synchronous>, transform_indices = @transform_11, window_bounds = array<i64: 4, 1, 8>}, {pipeline_mode = #tpu.pipeline_mode<synchronous>, transform_indices = @transform_12, window_bounds = array<i64: 32, 32>}, {pipeline_mode = #tpu.pipeline_mode<synchronous>, transform_indices = @transform_13, window_bounds = array<i64: 1, 32>}, {pipeline_mode = #tpu.pipeline_mode<synchronous>, transform_indices = @transform_14, window_bounds = array<i64: 32, 64>}, {pipeline_mode = #tpu.pipeline_mode<synchronous>, transform_indices = @transform_15, window_bounds = array<i64: 1, 64>}, {pipeline_mode = #tpu.pipeline_mode<synchronous>, transform_indices = @transform_16, window_bounds = array<i64: 64, 32>}, {pipeline_mode = #tpu.pipeline_mode<synchronous>, transform_indices = @transform_17, window_bounds = array<i64: 1, 32>}, {pipeline_mode = #tpu.pipeline_mode<synchronous>, transform_indices = @transform_18, window_bounds = array<i64: 1, 32>}, {pipeline_mode = #tpu.pipeline_mode<synchronous>, transform_indices = @transform_19, window_bounds = array<i64: 1, 32>}, {pipeline_mode = #tpu.pipeline_mode<synchronous>, transform_indices = @transform_20, window_bounds = array<i64: 1, 32>}, {pipeline_mode = #tpu.pipeline_mode<synchronous>, transform_indices = @transform_21, window_bounds = array<i64: 1, 32>}, {transform_indices = @transform_22, window_bounds = array<i64: 8, 8, 32>}]} {
    %c0 = arith.constant 0 : index
    %c0_0 = arith.constant 0 : index
    %c0_1 = arith.constant 0 : index
    %0 = vector.load %arg1[%c0, %c0_0, %c0_1] : memref<8x8x32xf32, #tpu.memory_space<vmem>>, vector<8x8x32xf32>
    %1 = vector.shape_cast %0 : vector<8x8x32xf32> to vector<64x32xf32>
    %c0_2 = arith.constant 0 : index
    %c0_3 = arith.constant 0 : index
    %c0_4 = arith.constant 0 : index
    %2 = vector.load %arg2[%c0_2, %c0_3, %c0_4] : memref<8x8x32xf32, #tpu.memory_space<vmem>>, vector<8x8x32xf32>
    %3 = vector.shape_cast %2 : vector<8x8x32xf32> to vector<64x32xf32>
    %4 = arith.truncf %3 : vector<64x32xf32> to vector<64x32xbf16>
    %c0_5 = arith.constant 0 : index
    %c0_6 = arith.constant 0 : index
    %5 = vector.load %arg4[%c0_5, %c0_6] : memref<32x32xbf16, #tpu.memory_space<vmem>>, vector<32x32xbf16>
    %cst = arith.constant dense<0.000000e+00> : vector<64x32xf32>
    %6 = tpu.matmul %4, %5, %cst {dimension_numbers = #tpu.dot_dimension_numbers<[1], [0], [0], [1], [0, 0, 1, 1], [], []>} : vector<64x32xbf16>, vector<32x32xbf16>, vector<64x32xf32> -> vector<64x32xf32>
    %7 = arith.truncf %1 : vector<64x32xf32> to vector<64x32xbf16>
    %c0_7 = arith.constant 0 : index
    %c0_8 = arith.constant 0 : index
    %8 = vector.load %arg5[%c0_7, %c0_8] : memref<32x32xbf16, #tpu.memory_space<vmem>>, vector<32x32xbf16>
    %cst_9 = arith.constant dense<0.000000e+00> : vector<64x32xf32>
    %9 = tpu.matmul %7, %8, %cst_9 {dimension_numbers = #tpu.dot_dimension_numbers<[1], [0], [0], [1], [0, 0, 1, 1], [], []>} : vector<64x32xbf16>, vector<32x32xbf16>, vector<64x32xf32> -> vector<64x32xf32>
    %10 = arith.addf %6, %9 : vector<64x32xf32>
    %c0_10 = arith.constant 0 : index
    %c0_11 = arith.constant 0 : index
    %11 = vector.load %arg6[%c0_10, %c0_11] : memref<1x32xf32, #tpu.memory_space<vmem>>, vector<1x32xf32>
    %12 = vector.broadcast %11 : vector<1x32xf32> to vector<64x32xf32>
    %13 = arith.addf %10, %12 : vector<64x32xf32>
    %c0_12 = arith.constant 0 : index
    %c0_13 = arith.constant 0 : index
    %14 = vector.load %arg3[%c0_12, %c0_13] : memref<64x32xf32, #tpu.memory_space<vmem>>, vector<64x32xf32>
    %15 = arith.addf %13, %14 : vector<64x32xf32>
    %16 = arith.truncf %15 : vector<64x32xf32> to vector<64x32xbf16>
    %17 = tpu.iota {dimensions = array<i32: 0>} : vector<64x64xi32>
    %18 = tpu.iota {dimensions = array<i32: 1>} : vector<64x64xi32>
    %c8_i32 = arith.constant 8 : i32
    %c0_i32 = arith.constant 0 : i32
    %19 = arith.cmpi eq, %c8_i32, %c0_i32 : i32
    %c1_i32 = arith.constant 1 : i32
    %20 = arith.select %19, %c1_i32, %c8_i32 : i32
    %21 = vector.broadcast %20 : i32 to vector<64x64xi32>
    %22 = arith.remsi %17, %21 : vector<64x64xi32>
    %c0_i32_14 = arith.constant 0 : i32
    %23 = vector.broadcast %c0_i32_14 : i32 to vector<64x64xi32>
    %24 = arith.cmpi ne, %22, %23 : vector<64x64xi32>
    %c0_i32_15 = arith.constant 0 : i32
    %25 = vector.broadcast %c0_i32_15 : i32 to vector<64x64xi32>
    %26 = arith.cmpi slt, %22, %25 : vector<64x64xi32>
    %c0_i32_16 = arith.constant 0 : i32
    %27 = arith.cmpi slt, %20, %c0_i32_16 : i32
    %28 = vector.broadcast %27 : i1 to vector<64x64xi1>
    %29 = vector.broadcast %28 : vector<64x64xi1> to vector<64x64xi1>
    %30 = arith.xori %26, %29 : vector<64x64xi1>
    %31 = arith.andi %30, %24 : vector<64x64xi1>
    %32 = vector.broadcast %20 : i32 to vector<64x64xi32>
    %33 = arith.addi %22, %32 : vector<64x64xi32>
    %34 = arith.select %31, %33, %22 : vector<64x64xi1>, vector<64x64xi32>
    %c8_i32_17 = arith.constant 8 : i32
    %c0_i32_18 = arith.constant 0 : i32
    %35 = arith.cmpi eq, %c8_i32_17, %c0_i32_18 : i32
    %c1_i32_19 = arith.constant 1 : i32
    %36 = arith.select %35, %c1_i32_19, %c8_i32_17 : i32
    %37 = vector.broadcast %36 : i32 to vector<64x64xi32>
    %38 = arith.remsi %18, %37 : vector<64x64xi32>
    %c0_i32_20 = arith.constant 0 : i32
    %39 = vector.broadcast %c0_i32_20 : i32 to vector<64x64xi32>
    %40 = arith.cmpi ne, %38, %39 : vector<64x64xi32>
    %c0_i32_21 = arith.constant 0 : i32
    %41 = vector.broadcast %c0_i32_21 : i32 to vector<64x64xi32>
    %42 = arith.cmpi slt, %38, %41 : vector<64x64xi32>
    %c0_i32_22 = arith.constant 0 : i32
    %43 = arith.cmpi slt, %36, %c0_i32_22 : i32
    %44 = vector.broadcast %43 : i1 to vector<64x64xi1>
    %45 = vector.broadcast %44 : vector<64x64xi1> to vector<64x64xi1>
    %46 = arith.xori %42, %45 : vector<64x64xi1>
    %47 = arith.andi %46, %40 : vector<64x64xi1>
    %48 = vector.broadcast %36 : i32 to vector<64x64xi32>
    %49 = arith.addi %38, %48 : vector<64x64xi32>
    %50 = arith.select %47, %49, %38 : vector<64x64xi1>, vector<64x64xi32>
    %51 = arith.cmpi eq, %34, %50 : vector<64x64xi32>
    %cst_23 = arith.constant 0.000000e+00 : f32
    %cst_24 = arith.constant -1.000000e+30 : f32
    %52 = vector.broadcast %cst_23 : f32 to vector<64x64xf32>
    %53 = vector.broadcast %cst_24 : f32 to vector<64x64xf32>
    %54 = arith.select %51, %52, %53 : vector<64x64xi1>, vector<64x64xf32>
    %c0_25 = arith.constant 0 : index
    %c0_26 = arith.constant 0 : index
    %c0_27 = arith.constant 0 : index
    %55 = vector.load %arg7[%c0_25, %c0_26, %c0_27] : memref<4x32x8xbf16, #tpu.memory_space<vmem>>, vector<1x32x8xbf16>
    %56 = vector.shape_cast %55 : vector<1x32x8xbf16> to vector<32x8xbf16>
    %cst_28 = arith.constant dense<0.000000e+00> : vector<64x8xf32>
    %57 = tpu.matmul %16, %56, %cst_28 {dimension_numbers = #tpu.dot_dimension_numbers<[1], [0], [0], [1], [0, 0, 1, 1], [], []>} : vector<64x32xbf16>, vector<32x8xbf16>, vector<64x8xf32> -> vector<64x8xf32>
    %c0_29 = arith.constant 0 : index
    %c0_30 = arith.constant 0 : index
    %c0_31 = arith.constant 0 : index
    %58 = vector.load %arg8[%c0_29, %c0_30, %c0_31] : memref<4x1x8xf32, #tpu.memory_space<vmem>>, vector<1x1x8xf32>
    %59 = vector.shape_cast %58 : vector<1x1x8xf32> to vector<1x8xf32>
    %60 = vector.broadcast %59 : vector<1x8xf32> to vector<64x8xf32>
    %61 = arith.addf %57, %60 : vector<64x8xf32>
    %c0_32 = arith.constant 0 : index
    %c0_33 = arith.constant 0 : index
    %c0_34 = arith.constant 0 : index
    %62 = vector.load %arg9[%c0_32, %c0_33, %c0_34] : memref<4x32x8xbf16, #tpu.memory_space<vmem>>, vector<1x32x8xbf16>
    %63 = vector.shape_cast %62 : vector<1x32x8xbf16> to vector<32x8xbf16>
    %cst_35 = arith.constant dense<0.000000e+00> : vector<64x8xf32>
    %64 = tpu.matmul %16, %63, %cst_35 {dimension_numbers = #tpu.dot_dimension_numbers<[1], [0], [0], [1], [0, 0, 1, 1], [], []>} : vector<64x32xbf16>, vector<32x8xbf16>, vector<64x8xf32> -> vector<64x8xf32>
    %c0_36 = arith.constant 0 : index
    %c0_37 = arith.constant 0 : index
    %c0_38 = arith.constant 0 : index
    %65 = vector.load %arg10[%c0_36, %c0_37, %c0_38] : memref<4x1x8xf32, #tpu.memory_space<vmem>>, vector<1x1x8xf32>
    %66 = vector.shape_cast %65 : vector<1x1x8xf32> to vector<1x8xf32>
    %67 = vector.broadcast %66 : vector<1x8xf32> to vector<64x8xf32>
    %68 = arith.addf %64, %67 : vector<64x8xf32>
    %c0_39 = arith.constant 0 : index
    %c0_40 = arith.constant 0 : index
    %c0_41 = arith.constant 0 : index
    %69 = vector.load %arg11[%c0_39, %c0_40, %c0_41] : memref<4x32x8xbf16, #tpu.memory_space<vmem>>, vector<1x32x8xbf16>
    %70 = vector.shape_cast %69 : vector<1x32x8xbf16> to vector<32x8xbf16>
    %cst_42 = arith.constant dense<0.000000e+00> : vector<64x8xf32>
    %71 = tpu.matmul %16, %70, %cst_42 {dimension_numbers = #tpu.dot_dimension_numbers<[1], [0], [0], [1], [0, 0, 1, 1], [], []>} : vector<64x32xbf16>, vector<32x8xbf16>, vector<64x8xf32> -> vector<64x8xf32>
    %c0_43 = arith.constant 0 : index
    %c0_44 = arith.constant 0 : index
    %c0_45 = arith.constant 0 : index
    %72 = vector.load %arg12[%c0_43, %c0_44, %c0_45] : memref<4x1x8xf32, #tpu.memory_space<vmem>>, vector<1x1x8xf32>
    %73 = vector.shape_cast %72 : vector<1x1x8xf32> to vector<1x8xf32>
    %74 = vector.broadcast %73 : vector<1x8xf32> to vector<64x8xf32>
    %75 = arith.addf %71, %74 : vector<64x8xf32>
    %76 = arith.truncf %61 : vector<64x8xf32> to vector<64x8xbf16>
    %77 = arith.truncf %68 : vector<64x8xf32> to vector<64x8xbf16>
    %cst_46 = arith.constant dense<0.000000e+00> : vector<64x64xf32>
    %78 = tpu.matmul %76, %77, %cst_46 {dimension_numbers = #tpu.dot_dimension_numbers<[1], [1], [0], [0], [0, 0, 1, 0], [], []>} : vector<64x8xbf16>, vector<64x8xbf16>, vector<64x64xf32> -> vector<64x64xf32>
    %79 = arith.addf %78, %54 : vector<64x64xf32>
    %cst_47 = arith.constant dense<0xFF800000> : vector<64xf32>
    %80 = vector.multi_reduction <maximumf>, %79, %cst_47 [1] : vector<64x64xf32> to vector<64xf32>
    %81 = vector.shape_cast %80 : vector<64xf32> to vector<64x1xf32>
    %82 = vector.broadcast %81 : vector<64x1xf32> to vector<64x64xf32>
    %83 = arith.subf %79, %82 : vector<64x64xf32>
    %84 = math.exp %83 : vector<64x64xf32>
    %cst_48 = arith.constant dense<0.000000e+00> : vector<64xf32>
    %85 = vector.multi_reduction <add>, %84, %cst_48 [1] : vector<64x64xf32> to vector<64xf32>
    %86 = vector.shape_cast %85 : vector<64xf32> to vector<64x1xf32>
    %87 = tpu.reciprocal %86 {approx = true} : vector<64x1xf32> -> vector<64x1xf32>
    %88 = vector.broadcast %87 : vector<64x1xf32> to vector<64x64xf32>
    %89 = arith.mulf %84, %88 : vector<64x64xf32>
    %90 = arith.truncf %89 : vector<64x64xf32> to vector<64x64xbf16>
    %91 = arith.truncf %75 : vector<64x8xf32> to vector<64x8xbf16>
    %cst_49 = arith.constant dense<0.000000e+00> : vector<64x8xf32>
    %92 = tpu.matmul %90, %91, %cst_49 {dimension_numbers = #tpu.dot_dimension_numbers<[1], [0], [0], [1], [0, 0, 1, 1], [], []>} : vector<64x64xbf16>, vector<64x8xbf16>, vector<64x8xf32> -> vector<64x8xf32>
    %c1 = arith.constant 1 : index
    %c0_50 = arith.constant 0 : index
    %c0_51 = arith.constant 0 : index
    %93 = vector.load %arg7[%c1, %c0_50, %c0_51] : memref<4x32x8xbf16, #tpu.memory_space<vmem>>, vector<1x32x8xbf16>
    %94 = vector.shape_cast %93 : vector<1x32x8xbf16> to vector<32x8xbf16>
    %cst_52 = arith.constant dense<0.000000e+00> : vector<64x8xf32>
    %95 = tpu.matmul %16, %94, %cst_52 {dimension_numbers = #tpu.dot_dimension_numbers<[1], [0], [0], [1], [0, 0, 1, 1], [], []>} : vector<64x32xbf16>, vector<32x8xbf16>, vector<64x8xf32> -> vector<64x8xf32>
    %c1_53 = arith.constant 1 : index
    %c0_54 = arith.constant 0 : index
    %c0_55 = arith.constant 0 : index
    %96 = vector.load %arg8[%c1_53, %c0_54, %c0_55] : memref<4x1x8xf32, #tpu.memory_space<vmem>>, vector<1x1x8xf32>
    %97 = vector.shape_cast %96 : vector<1x1x8xf32> to vector<1x8xf32>
    %98 = vector.broadcast %97 : vector<1x8xf32> to vector<64x8xf32>
    %99 = arith.addf %95, %98 : vector<64x8xf32>
    %c1_56 = arith.constant 1 : index
    %c0_57 = arith.constant 0 : index
    %c0_58 = arith.constant 0 : index
    %100 = vector.load %arg9[%c1_56, %c0_57, %c0_58] : memref<4x32x8xbf16, #tpu.memory_space<vmem>>, vector<1x32x8xbf16>
    %101 = vector.shape_cast %100 : vector<1x32x8xbf16> to vector<32x8xbf16>
    %cst_59 = arith.constant dense<0.000000e+00> : vector<64x8xf32>
    %102 = tpu.matmul %16, %101, %cst_59 {dimension_numbers = #tpu.dot_dimension_numbers<[1], [0], [0], [1], [0, 0, 1, 1], [], []>} : vector<64x32xbf16>, vector<32x8xbf16>, vector<64x8xf32> -> vector<64x8xf32>
    %c1_60 = arith.constant 1 : index
    %c0_61 = arith.constant 0 : index
    %c0_62 = arith.constant 0 : index
    %103 = vector.load %arg10[%c1_60, %c0_61, %c0_62] : memref<4x1x8xf32, #tpu.memory_space<vmem>>, vector<1x1x8xf32>
    %104 = vector.shape_cast %103 : vector<1x1x8xf32> to vector<1x8xf32>
    %105 = vector.broadcast %104 : vector<1x8xf32> to vector<64x8xf32>
    %106 = arith.addf %102, %105 : vector<64x8xf32>
    %c1_63 = arith.constant 1 : index
    %c0_64 = arith.constant 0 : index
    %c0_65 = arith.constant 0 : index
    %107 = vector.load %arg11[%c1_63, %c0_64, %c0_65] : memref<4x32x8xbf16, #tpu.memory_space<vmem>>, vector<1x32x8xbf16>
    %108 = vector.shape_cast %107 : vector<1x32x8xbf16> to vector<32x8xbf16>
    %cst_66 = arith.constant dense<0.000000e+00> : vector<64x8xf32>
    %109 = tpu.matmul %16, %108, %cst_66 {dimension_numbers = #tpu.dot_dimension_numbers<[1], [0], [0], [1], [0, 0, 1, 1], [], []>} : vector<64x32xbf16>, vector<32x8xbf16>, vector<64x8xf32> -> vector<64x8xf32>
    %c1_67 = arith.constant 1 : index
    %c0_68 = arith.constant 0 : index
    %c0_69 = arith.constant 0 : index
    %110 = vector.load %arg12[%c1_67, %c0_68, %c0_69] : memref<4x1x8xf32, #tpu.memory_space<vmem>>, vector<1x1x8xf32>
    %111 = vector.shape_cast %110 : vector<1x1x8xf32> to vector<1x8xf32>
    %112 = vector.broadcast %111 : vector<1x8xf32> to vector<64x8xf32>
    %113 = arith.addf %109, %112 : vector<64x8xf32>
    %114 = arith.truncf %99 : vector<64x8xf32> to vector<64x8xbf16>
    %115 = arith.truncf %106 : vector<64x8xf32> to vector<64x8xbf16>
    %cst_70 = arith.constant dense<0.000000e+00> : vector<64x64xf32>
    %116 = tpu.matmul %114, %115, %cst_70 {dimension_numbers = #tpu.dot_dimension_numbers<[1], [1], [0], [0], [0, 0, 1, 0], [], []>} : vector<64x8xbf16>, vector<64x8xbf16>, vector<64x64xf32> -> vector<64x64xf32>
    %117 = arith.addf %116, %54 : vector<64x64xf32>
    %cst_71 = arith.constant dense<0xFF800000> : vector<64xf32>
    %118 = vector.multi_reduction <maximumf>, %117, %cst_71 [1] : vector<64x64xf32> to vector<64xf32>
    %119 = vector.shape_cast %118 : vector<64xf32> to vector<64x1xf32>
    %120 = vector.broadcast %119 : vector<64x1xf32> to vector<64x64xf32>
    %121 = arith.subf %117, %120 : vector<64x64xf32>
    %122 = math.exp %121 : vector<64x64xf32>
    %cst_72 = arith.constant dense<0.000000e+00> : vector<64xf32>
    %123 = vector.multi_reduction <add>, %122, %cst_72 [1] : vector<64x64xf32> to vector<64xf32>
    %124 = vector.shape_cast %123 : vector<64xf32> to vector<64x1xf32>
    %125 = tpu.reciprocal %124 {approx = true} : vector<64x1xf32> -> vector<64x1xf32>
    %126 = vector.broadcast %125 : vector<64x1xf32> to vector<64x64xf32>
    %127 = arith.mulf %122, %126 : vector<64x64xf32>
    %128 = arith.truncf %127 : vector<64x64xf32> to vector<64x64xbf16>
    %129 = arith.truncf %113 : vector<64x8xf32> to vector<64x8xbf16>
    %cst_73 = arith.constant dense<0.000000e+00> : vector<64x8xf32>
    %130 = tpu.matmul %128, %129, %cst_73 {dimension_numbers = #tpu.dot_dimension_numbers<[1], [0], [0], [1], [0, 0, 1, 1], [], []>} : vector<64x64xbf16>, vector<64x8xbf16>, vector<64x8xf32> -> vector<64x8xf32>
    %c2 = arith.constant 2 : index
    %c0_74 = arith.constant 0 : index
    %c0_75 = arith.constant 0 : index
    %131 = vector.load %arg7[%c2, %c0_74, %c0_75] : memref<4x32x8xbf16, #tpu.memory_space<vmem>>, vector<1x32x8xbf16>
    %132 = vector.shape_cast %131 : vector<1x32x8xbf16> to vector<32x8xbf16>
    %cst_76 = arith.constant dense<0.000000e+00> : vector<64x8xf32>
    %133 = tpu.matmul %16, %132, %cst_76 {dimension_numbers = #tpu.dot_dimension_numbers<[1], [0], [0], [1], [0, 0, 1, 1], [], []>} : vector<64x32xbf16>, vector<32x8xbf16>, vector<64x8xf32> -> vector<64x8xf32>
    %c2_77 = arith.constant 2 : index
    %c0_78 = arith.constant 0 : index
    %c0_79 = arith.constant 0 : index
    %134 = vector.load %arg8[%c2_77, %c0_78, %c0_79] : memref<4x1x8xf32, #tpu.memory_space<vmem>>, vector<1x1x8xf32>
    %135 = vector.shape_cast %134 : vector<1x1x8xf32> to vector<1x8xf32>
    %136 = vector.broadcast %135 : vector<1x8xf32> to vector<64x8xf32>
    %137 = arith.addf %133, %136 : vector<64x8xf32>
    %c2_80 = arith.constant 2 : index
    %c0_81 = arith.constant 0 : index
    %c0_82 = arith.constant 0 : index
    %138 = vector.load %arg9[%c2_80, %c0_81, %c0_82] : memref<4x32x8xbf16, #tpu.memory_space<vmem>>, vector<1x32x8xbf16>
    %139 = vector.shape_cast %138 : vector<1x32x8xbf16> to vector<32x8xbf16>
    %cst_83 = arith.constant dense<0.000000e+00> : vector<64x8xf32>
    %140 = tpu.matmul %16, %139, %cst_83 {dimension_numbers = #tpu.dot_dimension_numbers<[1], [0], [0], [1], [0, 0, 1, 1], [], []>} : vector<64x32xbf16>, vector<32x8xbf16>, vector<64x8xf32> -> vector<64x8xf32>
    %c2_84 = arith.constant 2 : index
    %c0_85 = arith.constant 0 : index
    %c0_86 = arith.constant 0 : index
    %141 = vector.load %arg10[%c2_84, %c0_85, %c0_86] : memref<4x1x8xf32, #tpu.memory_space<vmem>>, vector<1x1x8xf32>
    %142 = vector.shape_cast %141 : vector<1x1x8xf32> to vector<1x8xf32>
    %143 = vector.broadcast %142 : vector<1x8xf32> to vector<64x8xf32>
    %144 = arith.addf %140, %143 : vector<64x8xf32>
    %c2_87 = arith.constant 2 : index
    %c0_88 = arith.constant 0 : index
    %c0_89 = arith.constant 0 : index
    %145 = vector.load %arg11[%c2_87, %c0_88, %c0_89] : memref<4x32x8xbf16, #tpu.memory_space<vmem>>, vector<1x32x8xbf16>
    %146 = vector.shape_cast %145 : vector<1x32x8xbf16> to vector<32x8xbf16>
    %cst_90 = arith.constant dense<0.000000e+00> : vector<64x8xf32>
    %147 = tpu.matmul %16, %146, %cst_90 {dimension_numbers = #tpu.dot_dimension_numbers<[1], [0], [0], [1], [0, 0, 1, 1], [], []>} : vector<64x32xbf16>, vector<32x8xbf16>, vector<64x8xf32> -> vector<64x8xf32>
    %c2_91 = arith.constant 2 : index
    %c0_92 = arith.constant 0 : index
    %c0_93 = arith.constant 0 : index
    %148 = vector.load %arg12[%c2_91, %c0_92, %c0_93] : memref<4x1x8xf32, #tpu.memory_space<vmem>>, vector<1x1x8xf32>
    %149 = vector.shape_cast %148 : vector<1x1x8xf32> to vector<1x8xf32>
    %150 = vector.broadcast %149 : vector<1x8xf32> to vector<64x8xf32>
    %151 = arith.addf %147, %150 : vector<64x8xf32>
    %152 = arith.truncf %137 : vector<64x8xf32> to vector<64x8xbf16>
    %153 = arith.truncf %144 : vector<64x8xf32> to vector<64x8xbf16>
    %cst_94 = arith.constant dense<0.000000e+00> : vector<64x64xf32>
    %154 = tpu.matmul %152, %153, %cst_94 {dimension_numbers = #tpu.dot_dimension_numbers<[1], [1], [0], [0], [0, 0, 1, 0], [], []>} : vector<64x8xbf16>, vector<64x8xbf16>, vector<64x64xf32> -> vector<64x64xf32>
    %155 = arith.addf %154, %54 : vector<64x64xf32>
    %cst_95 = arith.constant dense<0xFF800000> : vector<64xf32>
    %156 = vector.multi_reduction <maximumf>, %155, %cst_95 [1] : vector<64x64xf32> to vector<64xf32>
    %157 = vector.shape_cast %156 : vector<64xf32> to vector<64x1xf32>
    %158 = vector.broadcast %157 : vector<64x1xf32> to vector<64x64xf32>
    %159 = arith.subf %155, %158 : vector<64x64xf32>
    %160 = math.exp %159 : vector<64x64xf32>
    %cst_96 = arith.constant dense<0.000000e+00> : vector<64xf32>
    %161 = vector.multi_reduction <add>, %160, %cst_96 [1] : vector<64x64xf32> to vector<64xf32>
    %162 = vector.shape_cast %161 : vector<64xf32> to vector<64x1xf32>
    %163 = tpu.reciprocal %162 {approx = true} : vector<64x1xf32> -> vector<64x1xf32>
    %164 = vector.broadcast %163 : vector<64x1xf32> to vector<64x64xf32>
    %165 = arith.mulf %160, %164 : vector<64x64xf32>
    %166 = arith.truncf %165 : vector<64x64xf32> to vector<64x64xbf16>
    %167 = arith.truncf %151 : vector<64x8xf32> to vector<64x8xbf16>
    %cst_97 = arith.constant dense<0.000000e+00> : vector<64x8xf32>
    %168 = tpu.matmul %166, %167, %cst_97 {dimension_numbers = #tpu.dot_dimension_numbers<[1], [0], [0], [1], [0, 0, 1, 1], [], []>} : vector<64x64xbf16>, vector<64x8xbf16>, vector<64x8xf32> -> vector<64x8xf32>
    %c3 = arith.constant 3 : index
    %c0_98 = arith.constant 0 : index
    %c0_99 = arith.constant 0 : index
    %169 = vector.load %arg7[%c3, %c0_98, %c0_99] : memref<4x32x8xbf16, #tpu.memory_space<vmem>>, vector<1x32x8xbf16>
    %170 = vector.shape_cast %169 : vector<1x32x8xbf16> to vector<32x8xbf16>
    %cst_100 = arith.constant dense<0.000000e+00> : vector<64x8xf32>
    %171 = tpu.matmul %16, %170, %cst_100 {dimension_numbers = #tpu.dot_dimension_numbers<[1], [0], [0], [1], [0, 0, 1, 1], [], []>} : vector<64x32xbf16>, vector<32x8xbf16>, vector<64x8xf32> -> vector<64x8xf32>
    %c3_101 = arith.constant 3 : index
    %c0_102 = arith.constant 0 : index
    %c0_103 = arith.constant 0 : index
    %172 = vector.load %arg8[%c3_101, %c0_102, %c0_103] : memref<4x1x8xf32, #tpu.memory_space<vmem>>, vector<1x1x8xf32>
    %173 = vector.shape_cast %172 : vector<1x1x8xf32> to vector<1x8xf32>
    %174 = vector.broadcast %173 : vector<1x8xf32> to vector<64x8xf32>
    %175 = arith.addf %171, %174 : vector<64x8xf32>
    %c3_104 = arith.constant 3 : index
    %c0_105 = arith.constant 0 : index
    %c0_106 = arith.constant 0 : index
    %176 = vector.load %arg9[%c3_104, %c0_105, %c0_106] : memref<4x32x8xbf16, #tpu.memory_space<vmem>>, vector<1x32x8xbf16>
    %177 = vector.shape_cast %176 : vector<1x32x8xbf16> to vector<32x8xbf16>
    %cst_107 = arith.constant dense<0.000000e+00> : vector<64x8xf32>
    %178 = tpu.matmul %16, %177, %cst_107 {dimension_numbers = #tpu.dot_dimension_numbers<[1], [0], [0], [1], [0, 0, 1, 1], [], []>} : vector<64x32xbf16>, vector<32x8xbf16>, vector<64x8xf32> -> vector<64x8xf32>
    %c3_108 = arith.constant 3 : index
    %c0_109 = arith.constant 0 : index
    %c0_110 = arith.constant 0 : index
    %179 = vector.load %arg10[%c3_108, %c0_109, %c0_110] : memref<4x1x8xf32, #tpu.memory_space<vmem>>, vector<1x1x8xf32>
    %180 = vector.shape_cast %179 : vector<1x1x8xf32> to vector<1x8xf32>
    %181 = vector.broadcast %180 : vector<1x8xf32> to vector<64x8xf32>
    %182 = arith.addf %178, %181 : vector<64x8xf32>
    %c3_111 = arith.constant 3 : index
    %c0_112 = arith.constant 0 : index
    %c0_113 = arith.constant 0 : index
    %183 = vector.load %arg11[%c3_111, %c0_112, %c0_113] : memref<4x32x8xbf16, #tpu.memory_space<vmem>>, vector<1x32x8xbf16>
    %184 = vector.shape_cast %183 : vector<1x32x8xbf16> to vector<32x8xbf16>
    %cst_114 = arith.constant dense<0.000000e+00> : vector<64x8xf32>
    %185 = tpu.matmul %16, %184, %cst_114 {dimension_numbers = #tpu.dot_dimension_numbers<[1], [0], [0], [1], [0, 0, 1, 1], [], []>} : vector<64x32xbf16>, vector<32x8xbf16>, vector<64x8xf32> -> vector<64x8xf32>
    %c3_115 = arith.constant 3 : index
    %c0_116 = arith.constant 0 : index
    %c0_117 = arith.constant 0 : index
    %186 = vector.load %arg12[%c3_115, %c0_116, %c0_117] : memref<4x1x8xf32, #tpu.memory_space<vmem>>, vector<1x1x8xf32>
    %187 = vector.shape_cast %186 : vector<1x1x8xf32> to vector<1x8xf32>
    %188 = vector.broadcast %187 : vector<1x8xf32> to vector<64x8xf32>
    %189 = arith.addf %185, %188 : vector<64x8xf32>
    %190 = arith.truncf %175 : vector<64x8xf32> to vector<64x8xbf16>
    %191 = arith.truncf %182 : vector<64x8xf32> to vector<64x8xbf16>
    %cst_118 = arith.constant dense<0.000000e+00> : vector<64x64xf32>
    %192 = tpu.matmul %190, %191, %cst_118 {dimension_numbers = #tpu.dot_dimension_numbers<[1], [1], [0], [0], [0, 0, 1, 0], [], []>} : vector<64x8xbf16>, vector<64x8xbf16>, vector<64x64xf32> -> vector<64x64xf32>
    %193 = arith.addf %192, %54 : vector<64x64xf32>
    %cst_119 = arith.constant dense<0xFF800000> : vector<64xf32>
    %194 = vector.multi_reduction <maximumf>, %193, %cst_119 [1] : vector<64x64xf32> to vector<64xf32>
    %195 = vector.shape_cast %194 : vector<64xf32> to vector<64x1xf32>
    %196 = vector.broadcast %195 : vector<64x1xf32> to vector<64x64xf32>
    %197 = arith.subf %193, %196 : vector<64x64xf32>
    %198 = math.exp %197 : vector<64x64xf32>
    %cst_120 = arith.constant dense<0.000000e+00> : vector<64xf32>
    %199 = vector.multi_reduction <add>, %198, %cst_120 [1] : vector<64x64xf32> to vector<64xf32>
    %200 = vector.shape_cast %199 : vector<64xf32> to vector<64x1xf32>
    %201 = tpu.reciprocal %200 {approx = true} : vector<64x1xf32> -> vector<64x1xf32>
    %202 = vector.broadcast %201 : vector<64x1xf32> to vector<64x64xf32>
    %203 = arith.mulf %198, %202 : vector<64x64xf32>
    %204 = arith.truncf %203 : vector<64x64xf32> to vector<64x64xbf16>
    %205 = arith.truncf %189 : vector<64x8xf32> to vector<64x8xbf16>
    %cst_121 = arith.constant dense<0.000000e+00> : vector<64x8xf32>
    %206 = tpu.matmul %204, %205, %cst_121 {dimension_numbers = #tpu.dot_dimension_numbers<[1], [0], [0], [1], [0, 0, 1, 1], [], []>} : vector<64x64xbf16>, vector<64x8xbf16>, vector<64x8xf32> -> vector<64x8xf32>
    %207 = tpu.concatenate %92, %130, %168, %206 in 1 : vector<64x8xf32>, vector<64x8xf32>, vector<64x8xf32>, vector<64x8xf32> -> vector<64x32xf32>
    %208 = arith.truncf %207 : vector<64x32xf32> to vector<64x32xbf16>
    %c0_122 = arith.constant 0 : index
    %c0_123 = arith.constant 0 : index
    %209 = vector.load %arg13[%c0_122, %c0_123] : memref<32x32xbf16, #tpu.memory_space<vmem>>, vector<32x32xbf16>
    %cst_124 = arith.constant dense<0.000000e+00> : vector<64x32xf32>
    %210 = tpu.matmul %208, %209, %cst_124 {dimension_numbers = #tpu.dot_dimension_numbers<[1], [0], [0], [1], [0, 0, 1, 1], [], []>} : vector<64x32xbf16>, vector<32x32xbf16>, vector<64x32xf32> -> vector<64x32xf32>
    %c0_125 = arith.constant 0 : index
    %c0_126 = arith.constant 0 : index
    %211 = vector.load %arg14[%c0_125, %c0_126] : memref<1x32xf32, #tpu.memory_space<vmem>>, vector<1x32xf32>
    %212 = vector.broadcast %211 : vector<1x32xf32> to vector<64x32xf32>
    %213 = arith.addf %210, %212 : vector<64x32xf32>
    %214 = arith.addf %15, %213 : vector<64x32xf32>
    %c0_127 = arith.constant 0 : index
    %c0_128 = arith.constant 0 : index
    %215 = vector.load %arg19[%c0_127, %c0_128] : memref<1x32xf32, #tpu.memory_space<vmem>>, vector<1x32xf32>
    %c0_129 = arith.constant 0 : index
    %c0_130 = arith.constant 0 : index
    %216 = vector.load %arg20[%c0_129, %c0_130] : memref<1x32xf32, #tpu.memory_space<vmem>>, vector<1x32xf32>
    %cst_131 = arith.constant dense<0.000000e+00> : vector<64xf32>
    %217 = vector.multi_reduction <add>, %214, %cst_131 [1] : vector<64x32xf32> to vector<64xf32>
    %218 = vector.shape_cast %217 : vector<64xf32> to vector<64x1xf32>
    %cst_132 = arith.constant 3.200000e+01 : f32
    %219 = vector.broadcast %cst_132 : f32 to vector<64x1xf32>
    %220 = arith.divf %218, %219 : vector<64x1xf32>
    %221 = vector.broadcast %220 : vector<64x1xf32> to vector<64x32xf32>
    %222 = arith.subf %214, %221 : vector<64x32xf32>
    %223 = arith.mulf %222, %222 : vector<64x32xf32>
    %cst_133 = arith.constant dense<0.000000e+00> : vector<64xf32>
    %224 = vector.multi_reduction <add>, %223, %cst_133 [1] : vector<64x32xf32> to vector<64xf32>
    %225 = vector.shape_cast %224 : vector<64xf32> to vector<64x1xf32>
    %cst_134 = arith.constant 3.200000e+01 : f32
    %226 = vector.broadcast %cst_134 : f32 to vector<64x1xf32>
    %227 = arith.divf %225, %226 : vector<64x1xf32>
    %cst_135 = arith.constant 9.99999974E-6 : f32
    %228 = vector.broadcast %cst_135 : f32 to vector<64x1xf32>
    %229 = arith.addf %227, %228 : vector<64x1xf32>
    %230 = math.rsqrt %229 : vector<64x1xf32>
    %231 = vector.broadcast %230 : vector<64x1xf32> to vector<64x32xf32>
    %232 = arith.mulf %222, %231 : vector<64x32xf32>
    %233 = vector.broadcast %215 : vector<1x32xf32> to vector<64x32xf32>
    %234 = arith.mulf %232, %233 : vector<64x32xf32>
    %235 = vector.broadcast %216 : vector<1x32xf32> to vector<64x32xf32>
    %236 = arith.addf %234, %235 : vector<64x32xf32>
    %237 = arith.truncf %236 : vector<64x32xf32> to vector<64x32xbf16>
    %c0_136 = arith.constant 0 : index
    %c0_137 = arith.constant 0 : index
    %238 = vector.load %arg15[%c0_136, %c0_137] : memref<32x64xbf16, #tpu.memory_space<vmem>>, vector<32x64xbf16>
    %cst_138 = arith.constant dense<0.000000e+00> : vector<64x64xf32>
    %239 = tpu.matmul %237, %238, %cst_138 {dimension_numbers = #tpu.dot_dimension_numbers<[1], [0], [0], [1], [0, 0, 1, 1], [], []>} : vector<64x32xbf16>, vector<32x64xbf16>, vector<64x64xf32> -> vector<64x64xf32>
    %c0_139 = arith.constant 0 : index
    %c0_140 = arith.constant 0 : index
    %240 = vector.load %arg16[%c0_139, %c0_140] : memref<1x64xf32, #tpu.memory_space<vmem>>, vector<1x64xf32>
    %241 = vector.broadcast %240 : vector<1x64xf32> to vector<64x64xf32>
    %242 = arith.addf %239, %241 : vector<64x64xf32>
    %cst_141 = arith.constant 0.000000e+00 : f32
    %243 = vector.broadcast %cst_141 : f32 to vector<64x64xf32>
    %244 = arith.maximumf %242, %243 : vector<64x64xf32>
    %245 = arith.truncf %244 : vector<64x64xf32> to vector<64x64xbf16>
    %c0_142 = arith.constant 0 : index
    %c0_143 = arith.constant 0 : index
    %246 = vector.load %arg17[%c0_142, %c0_143] : memref<64x32xbf16, #tpu.memory_space<vmem>>, vector<64x32xbf16>
    %cst_144 = arith.constant dense<0.000000e+00> : vector<64x32xf32>
    %247 = tpu.matmul %245, %246, %cst_144 {dimension_numbers = #tpu.dot_dimension_numbers<[1], [0], [0], [1], [0, 0, 1, 1], [], []>} : vector<64x64xbf16>, vector<64x32xbf16>, vector<64x32xf32> -> vector<64x32xf32>
    %c0_145 = arith.constant 0 : index
    %c0_146 = arith.constant 0 : index
    %248 = vector.load %arg18[%c0_145, %c0_146] : memref<1x32xf32, #tpu.memory_space<vmem>>, vector<1x32xf32>
    %249 = vector.broadcast %248 : vector<1x32xf32> to vector<64x32xf32>
    %250 = arith.addf %247, %249 : vector<64x32xf32>
    %251 = arith.addf %236, %250 : vector<64x32xf32>
    %c0_147 = arith.constant 0 : index
    %c0_148 = arith.constant 0 : index
    %252 = vector.load %arg21[%c0_147, %c0_148] : memref<1x32xf32, #tpu.memory_space<vmem>>, vector<1x32xf32>
    %c0_149 = arith.constant 0 : index
    %c0_150 = arith.constant 0 : index
    %253 = vector.load %arg22[%c0_149, %c0_150] : memref<1x32xf32, #tpu.memory_space<vmem>>, vector<1x32xf32>
    %cst_151 = arith.constant dense<0.000000e+00> : vector<64xf32>
    %254 = vector.multi_reduction <add>, %251, %cst_151 [1] : vector<64x32xf32> to vector<64xf32>
    %255 = vector.shape_cast %254 : vector<64xf32> to vector<64x1xf32>
    %cst_152 = arith.constant 3.200000e+01 : f32
    %256 = vector.broadcast %cst_152 : f32 to vector<64x1xf32>
    %257 = arith.divf %255, %256 : vector<64x1xf32>
    %258 = vector.broadcast %257 : vector<64x1xf32> to vector<64x32xf32>
    %259 = arith.subf %251, %258 : vector<64x32xf32>
    %260 = arith.mulf %259, %259 : vector<64x32xf32>
    %cst_153 = arith.constant dense<0.000000e+00> : vector<64xf32>
    %261 = vector.multi_reduction <add>, %260, %cst_153 [1] : vector<64x32xf32> to vector<64xf32>
    %262 = vector.shape_cast %261 : vector<64xf32> to vector<64x1xf32>
    %cst_154 = arith.constant 3.200000e+01 : f32
    %263 = vector.broadcast %cst_154 : f32 to vector<64x1xf32>
    %264 = arith.divf %262, %263 : vector<64x1xf32>
    %cst_155 = arith.constant 9.99999974E-6 : f32
    %265 = vector.broadcast %cst_155 : f32 to vector<64x1xf32>
    %266 = arith.addf %264, %265 : vector<64x1xf32>
    %267 = math.rsqrt %266 : vector<64x1xf32>
    %268 = vector.broadcast %267 : vector<64x1xf32> to vector<64x32xf32>
    %269 = arith.mulf %259, %268 : vector<64x32xf32>
    %270 = vector.broadcast %252 : vector<1x32xf32> to vector<64x32xf32>
    %271 = arith.mulf %269, %270 : vector<64x32xf32>
    %272 = vector.broadcast %253 : vector<1x32xf32> to vector<64x32xf32>
    %273 = arith.addf %271, %272 : vector<64x32xf32>
    %274 = vector.shape_cast %273 : vector<64x32xf32> to vector<8x8x32xf32>
    %c0_156 = arith.constant 0 : index
    %c0_157 = arith.constant 0 : index
    %c0_158 = arith.constant 0 : index
    %275 = vector.load %arg23[%c0_156, %c0_157, %c0_158] : memref<8x8x32xf32, #tpu.memory_space<vmem>>, vector<8x8x32xf32>
    tpu.vector_store %arg23[%c0_156, %c0_157, %c0_158], %274 {strides = array<i32>} : memref<8x8x32xf32, #tpu.memory_space<vmem>>, vector<8x8x32xf32>,
    return
  }
  func.func @transform_0(%arg0: i32) -> (i32, i32, i32) {
    %c0_i32 = arith.constant 0 : i32
    %c0_i32_0 = arith.constant 0 : i32
    %c0_i32_1 = arith.constant 0 : i32
    return %c0_i32, %arg0, %c0_i32_0 : i32, i32, i32
  }
  func.func @transform_1(%arg0: i32) -> (i32, i32, i32) {
    %c0_i32 = arith.constant 0 : i32
    %c0_i32_0 = arith.constant 0 : i32
    %c0_i32_1 = arith.constant 0 : i32
    return %c0_i32, %arg0, %c0_i32_0 : i32, i32, i32
  }
  func.func @transform_2(%arg0: i32) -> (i32, i32) {
    %c0_i32 = arith.constant 0 : i32
    %c0_i32_0 = arith.constant 0 : i32
    %c0_i32_1 = arith.constant 0 : i32
    return %c0_i32, %c0_i32_0 : i32, i32
  }
  func.func @transform_3(%arg0: i32) -> (i32, i32) {
    %c0_i32 = arith.constant 0 : i32
    %c0_i32_0 = arith.constant 0 : i32
    %c0_i32_1 = arith.constant 0 : i32
    return %c0_i32, %c0_i32_0 : i32, i32
  }
  func.func @transform_4(%arg0: i32) -> (i32, i32) {
    %c0_i32 = arith.constant 0 : i32
    %c0_i32_0 = arith.constant 0 : i32
    %c0_i32_1 = arith.constant 0 : i32
    return %c0_i32, %c0_i32_0 : i32, i32
  }
  func.func @transform_5(%arg0: i32) -> (i32, i32) {
    %c0_i32 = arith.constant 0 : i32
    %c0_i32_0 = arith.constant 0 : i32
    %c0_i32_1 = arith.constant 0 : i32
    return %c0_i32, %c0_i32_0 : i32, i32
  }
  func.func @transform_6(%arg0: i32) -> (i32, i32, i32) {
    %c0_i32 = arith.constant 0 : i32
    %c0_i32_0 = arith.constant 0 : i32
    %c0_i32_1 = arith.constant 0 : i32
    %c0_i32_2 = arith.constant 0 : i32
    return %c0_i32, %c0_i32_0, %c0_i32_1 : i32, i32, i32
  }
  func.func @transform_7(%arg0: i32) -> (i32, i32, i32) {
    %c0_i32 = arith.constant 0 : i32
    %c0_i32_0 = arith.constant 0 : i32
    %c0_i32_1 = arith.constant 0 : i32
    %c0_i32_2 = arith.constant 0 : i32
    return %c0_i32, %c0_i32_0, %c0_i32_1 : i32, i32, i32
  }
  func.func @transform_8(%arg0: i32) -> (i32, i32, i32) {
    %c0_i32 = arith.constant 0 : i32
    %c0_i32_0 = arith.constant 0 : i32
    %c0_i32_1 = arith.constant 0 : i32
    %c0_i32_2 = arith.constant 0 : i32
    return %c0_i32, %c0_i32_0, %c0_i32_1 : i32, i32, i32
  }
  func.func @transform_9(%arg0: i32) -> (i32, i32, i32) {
    %c0_i32 = arith.constant 0 : i32
    %c0_i32_0 = arith.constant 0 : i32
    %c0_i32_1 = arith.constant 0 : i32
    %c0_i32_2 = arith.constant 0 : i32
    return %c0_i32, %c0_i32_0, %c0_i32_1 : i32, i32, i32
  }
  func.func @transform_10(%arg0: i32) -> (i32, i32, i32) {
    %c0_i32 = arith.constant 0 : i32
    %c0_i32_0 = arith.constant 0 : i32
    %c0_i32_1 = arith.constant 0 : i32
    %c0_i32_2 = arith.constant 0 : i32
    return %c0_i32, %c0_i32_0, %c0_i32_1 : i32, i32, i32
  }
  func.func @transform_11(%arg0: i32) -> (i32, i32, i32) {
    %c0_i32 = arith.constant 0 : i32
    %c0_i32_0 = arith.constant 0 : i32
    %c0_i32_1 = arith.constant 0 : i32
    %c0_i32_2 = arith.constant 0 : i32
    return %c0_i32, %c0_i32_0, %c0_i32_1 : i32, i32, i32
  }
  func.func @transform_12(%arg0: i32) -> (i32, i32) {
    %c0_i32 = arith.constant 0 : i32
    %c0_i32_0 = arith.constant 0 : i32
    %c0_i32_1 = arith.constant 0 : i32
    return %c0_i32, %c0_i32_0 : i32, i32
  }
  func.func @transform_13(%arg0: i32) -> (i32, i32) {
    %c0_i32 = arith.constant 0 : i32
    %c0_i32_0 = arith.constant 0 : i32
    %c0_i32_1 = arith.constant 0 : i32
    return %c0_i32, %c0_i32_0 : i32, i32
  }
  func.func @transform_14(%arg0: i32) -> (i32, i32) {
    %c0_i32 = arith.constant 0 : i32
    %c0_i32_0 = arith.constant 0 : i32
    %c0_i32_1 = arith.constant 0 : i32
    return %c0_i32, %c0_i32_0 : i32, i32
  }
  func.func @transform_15(%arg0: i32) -> (i32, i32) {
    %c0_i32 = arith.constant 0 : i32
    %c0_i32_0 = arith.constant 0 : i32
    %c0_i32_1 = arith.constant 0 : i32
    return %c0_i32, %c0_i32_0 : i32, i32
  }
  func.func @transform_16(%arg0: i32) -> (i32, i32) {
    %c0_i32 = arith.constant 0 : i32
    %c0_i32_0 = arith.constant 0 : i32
    %c0_i32_1 = arith.constant 0 : i32
    return %c0_i32, %c0_i32_0 : i32, i32
  }
  func.func @transform_17(%arg0: i32) -> (i32, i32) {
    %c0_i32 = arith.constant 0 : i32
    %c0_i32_0 = arith.constant 0 : i32
    %c0_i32_1 = arith.constant 0 : i32
    return %c0_i32, %c0_i32_0 : i32, i32
  }
  func.func @transform_18(%arg0: i32) -> (i32, i32) {
    %c0_i32 = arith.constant 0 : i32
    %c0_i32_0 = arith.constant 0 : i32
    %c0_i32_1 = arith.constant 0 : i32
    return %c0_i32, %c0_i32_0 : i32, i32
  }
  func.func @transform_19(%arg0: i32) -> (i32, i32) {
    %c0_i32 = arith.constant 0 : i32
    %c0_i32_0 = arith.constant 0 : i32
    %c0_i32_1 = arith.constant 0 : i32
    return %c0_i32, %c0_i32_0 : i32, i32
  }
  func.func @transform_20(%arg0: i32) -> (i32, i32) {
    %c0_i32 = arith.constant 0 : i32
    %c0_i32_0 = arith.constant 0 : i32
    %c0_i32_1 = arith.constant 0 : i32
    return %c0_i32, %c0_i32_0 : i32, i32
  }
  func.func @transform_21(%arg0: i32) -> (i32, i32) {
    %c0_i32 = arith.constant 0 : i32
    %c0_i32_0 = arith.constant 0 : i32
    %c0_i32_1 = arith.constant 0 : i32
    return %c0_i32, %c0_i32_0 : i32, i32
  }
  func.func @transform_22(%arg0: i32) -> (i32, i32, i32) {
    %c0_i32 = arith.constant 0 : i32
    %c0_i32_0 = arith.constant 0 : i32
    %c0_i32_1 = arith.constant 0 : i32
    return %c0_i32, %arg0, %c0_i32_0 : i32, i32, i32
  }
}

</mosaic_0001>

<bundles_post_ra>
// kernel: global_attention_transformer.1
= control target key start
LH: loop header
LB: loop body
LE: loop exit
PB: predicated region body
PF: predicated region fallthrough
CT: control target
= control target key end

     0   :  { %s7256_s0 = inlined_call_operand.vmem [shape: f32[8,16,32], index: 0, kind: input, shape index: {}]   ;;  %s7257_s1 = inlined_call_operand.vmem [shape: f32[8,16,32], index: 1, kind: input, shape index: {}]   ;;  %s7258_s2 = inlined_call_operand.vmem [shape: f32[64,32], index: 2, kind: input, shape index: {}]   ;;  %s7259_s3 = inlined_call_operand.vmem [shape: bf16[32,32], index: 3, kind: input, shape index: {}]   ;;  %s7260_s4 = inlined_call_operand.vmem [shape: bf16[32,32], index: 4, kind: input, shape index: {}]   ;;  %s7261_s5 = inlined_call_operand.vmem [shape: f32[1,32], index: 5, kind: input, shape index: {}]   ;;  %s7262_s6 = inlined_call_operand.vmem [shape: bf16[4,32,8], index: 6, kind: input, shape index: {}]   ;;  %s7263_s7 = inlined_call_operand.vmem [shape: f32[4,1,8], index: 7, kind: input, shape index: {}]   ;;  %s7264_s8 = inlined_call_operand.vmem [shape: bf16[4,32,8], index: 8, kind: input, shape index: {}]   ;;  %s7265_s9 = inlined_call_operand.hbm [shape: f32[4,1,8], index: 9, kind: input, shape index: {}]   ;;  %s7266_s10 = inlined_call_operand.vmem [shape: bf16[4,32,8], index: 10, kind: input, shape index: {}]   ;;  %s7267_s11 = inlined_call_operand.hbm [shape: f32[4,1,8], index: 11, kind: input, shape index: {}]   ;;  %s7268_s12 = inlined_call_operand.vmem [shape: bf16[32,32], index: 12, kind: input, shape index: {}]   ;;  %s7269_s13 = inlined_call_operand.hbm [shape: f32[1,32], index: 13, kind: input, shape index: {}]   ;;  %s7270_s14 = inlined_call_operand.hbm [shape: bf16[32,64], index: 14, kind: input, shape index: {}]   ;;  %s7271_s15 = inlined_call_operand.hbm [shape: f32[1,64], index: 15, kind: input, shape index: {}]   ;;  %s7272_s16 = inlined_call_operand.vmem [shape: bf16[64,32], index: 16, kind: input, shape index: {}]   ;;  %s7273_s17 = inlined_call_operand.hbm [shape: f32[1,32], index: 17, kind: input, shape index: {}]   ;;  %s7274_s18 = inlined_call_operand.hbm [shape: f32[1,32], index: 18, kind: input, shape index: {}]   ;;  %s7275_s19 = inlined_call_operand.hbm [shape: f32[1,32], index: 19, kind: input, shape index: {}]   ;;  %s7276_s20 = inlined_call_operand.hbm [shape: f32[1,32], index: 20, kind: input, shape index: {}]   ;;  %s7277_s21 = inlined_call_operand.hbm [shape: f32[1,32], index: 21, kind: input, shape index: {}]   ;;  %s7278_s22 = inlined_call_operand.hbm [shape: f32[8,16,32], index: 22, kind: output, shape index: {}]  }
   0x1   :  { %7302 = sst [smem:[#allocation34_spill]] %s7256_s0 }
   0x2   :  { %7303 = sst [smem:[#allocation35_spill]] %s7257_s1 }
   0x3   :  { %7304 = sst [smem:[#allocation36_spill]] %s7258_s2 }
   0x4   :  { %7305 = sst [smem:[#allocation37_spill]] %s7259_s3 }
   0x5   :  { %7306 = sst [smem:[#allocation38_spill]] %s7260_s4 }
   0x6   :  { %7307 = sst [smem:[#allocation39_spill]] %s7261_s5 }
   0x7   :  { %7308 = sst [smem:[#allocation40_spill]] %s7262_s6 }
   0x8   :  { %7309 = sst [smem:[#allocation41_spill]] %s7263_s7 }
   0x9   :  { %7310 = sst [smem:[#allocation42_spill]] %s7264_s8 }
   0xa   :  { %7311 = sst [smem:[#allocation43_spill]] %s7265_s9 }
   0xb   :  { %7312 = sst [smem:[#allocation44_spill]] %s7266_s10 }
   0xc   :  { %7313 = sst [smem:[#allocation45_spill]] %s7267_s11 }
   0xd   :  { %7314 = sst [smem:[#allocation46_spill]] %s7268_s12 }
   0xe   :  { %7315 = sst [smem:[#allocation47_spill]] %s7272_s16 }
   0xf   :  { %7316 = sst [smem:[#allocation48_spill]] %s7278_s22 }
  0x10   :  { %27 = vsyncpa [#allocation5], 0 }
  0x11   :  { %28 = vsyncpa [#allocation8], 0 }
  0x12   :  { %29 = vsyncpa [#allocation11], 0 }
  0x13   :  { %30 = vsyncpa [#allocation14], 0 }
  0x14   :  { %31 = vsyncpa [#allocation17], 0 }
  0x15   :  { %32 = vsyncpa [#allocation20], 0 }
  0x16   :  { %33 = vsyncpa [#allocation6], 0 }
  0x17   :  { %35 = vsyncpa [#allocation6 + $0x1], 0  ;;  %s6100_s3 = smov 0   ;;  %s6102_s28 = smov 0  }
  0x18   :  { %s6104_s29 = smov 0   ;;  %s6106_s30 = smov 0  }
  0x19 LB: > { %7317 = sst [smem:[#allocation29_spill]] %s5950_s3  ;;  %s6121_s4 = sadd.s32 4294967295, %s5962_s30   ;;  %s5962_s30 = sphi %s6106_s30, %s7372_s30   ;;  %s5958_s29 = sphi %s6104_s29, %s7376_s29   ;;  %s5954_s28 = sphi %s6102_s28, %s7375_s28   ;;  %s5950_s3 = sphi %s6100_s3, %s7374_s3  }
  0x1a   : > { %s4458_s0 = sadd.s32 4294967294, %s5962_s30   ;;  %s6125_s23 = sadd.s32 1, %s5962_s30  }
  0x1b   : > { %7318 = sst [smem:[#allocation30_spill]] %s6125_s23  ;;  %s48_s1 = sadd.s32 1, %s5958_s29 }
  0x1c   : > { %s45_s5 = ssub.s32 %s5962_s30, %s6125_s23  ;;  %p55_p0 = scmp.ne.s32.totalorder %s5958_s29, %s5954_s28 }
  0x1d   : > { %p46_p1 = scmp.eq.s32.totalorder %s45_s5, 0  ;;  %p56_p2 = scmp.eq.s32.totalorder %s5962_s30, 0 }
  0x1e   : > { %p531_p3 = scmp.eq.s32.totalorder %s6121_s4, 1  ;;  %p536_p4 = scmp.ne.s32.totalorder %s5954_s28, %s5950_s3 }
  0x1f   : > { %s6137_s24 = scalar_select %p46_p1, %s5958_s29, %s48_s1  }
  0x20   : > { %p6139_p5 = por %p56_p2, %p55_p0  ;;  %p6143_p6 = por %p531_p3, %p55_p0 }
  0x21   : > { %7319 = sst [smem:[#allocation31_spill]] %s6137_s24  ;;  %p537_p7 = scmp.eq.s32.totalorder %s4458_s0, 1 }
  0x22   : > { %s7320_s6 = scalar_select %p6139_p5, 1, 0 }
  0x23   : > { %s7321_s25 = scalar_select %p6143_p6, 1, 0 }
  0x24   : > { %p4459_p8 = scmp.ge.s32.totalorder %s5962_s30, 1  ;;  %p544_p9 = scmp.lt.s32.totalorder %s5962_s30, 3 }
  0x25   : > { %7322 = sst [smem:[#allocation32_spill]] %s7321_s25  ;;  %p6149_p10 = por %p537_p7, %p536_p4 }
  0x26   : > { %p7290_p11 = scmp.eq.s32.totalorder %s6121_s4, 0  ;;  %p6154_p12 = pnand %p4459_p8, %p544_p9 }
  0x27   : > { %s7323_s26 = scalar_select %p6149_p10, 1, 0 }
  0x28   : > { %s7325_s2 = scalar_select %p6154_p12, 1, 0 }
  0x29   : > { %7324 = sst [smem:[#allocation33_spill]] %s7323_s26  ;;  %p5254_p13 = pneg %p6154_p12 }
  0x2a   : > { %s5964_s27 = smov [#allocation7]   ;;  %s5965_s5 = smov [#allocation10]  }
  0x2b   : > { %s593_s1 = sshll.u32 %s5964_s27, 4  ;;  %p6162_p0 = pnand %p7290_p11, %p5254_p13  ;;  %s594_s1 = int_to_ptr.vmem [resolvable:$true] %s593_s1 }
  0x2c   : > { %s620_s24 = sshll.u32 %s5965_s5, 4  ;;  %s5629_s26 = scalar_lea.vmem %s594_s1, 64  ;;  %s621_s24 = int_to_ptr.vmem [resolvable:$true] %s620_s24 }
  0x2d   : > { %p6168_p1 = pneg %p6162_p0  ;;  %p5630_p2 = scmp.ne.s32.totalorder %s594_s1, %s5629_s26 }
  0x2e   : > { %p5637_p7 = scmp.lt.s32.totalorder %s594_s1, %s594_s1  ;;  %p5638_p8 = scmp.lt.s32.totalorder %s5629_s26, %s5629_s26 }
  0x2f   : > { %p5632_p3 = pnand %p5630_p2, %p6168_p1 }
  0x30   : > { %p5639_p9 = por %p5638_p8, %p5637_p7 }
  0x31   : > { %p5633_p4 = pneg %p5632_p3 }
  0x33   : > { %p5640_p13 = pnand %p5639_p9, %p5633_p4 }
  0x35   : > { %5643 = shalt.err (!%p5640_p13)
}
  0x36   : > { %s7294_s27 = smov 16   ;;  %s7295_s5 = smov 1  }
  0x37   : > { %s7328_s11 = sld [smem:[#allocation45_spill]]  ;;  %s5655_s25 = scalar_lea.vmem %s621_s24, 256 }
  0x38   : > { %p5656_p2 = scmp.ne.s32.totalorder %s621_s24, %s5655_s25  ;;  %p5663_p7 = scmp.lt.s32.totalorder %s621_s24, %s621_s24 }
  0x39   : > { %p5664_p4 = scmp.lt.s32.totalorder %s5655_s25, %s5655_s25 }
  0x3a   : > { %p5658_p3 = pnand %p5656_p2, %p6168_p1 }
  0x3b   : > { %p5665_p8 = por %p5664_p4, %p5663_p7 }
  0x3c   : > { %p5659_p11 = pneg %p5658_p3 }
  0x3d   : > { %5260 = dma.hbm_to_vmem [thread:$0]  (!%p6162_p0), %s7328_s11, 64, %s594_s1, [#allocation8], %s7294_s27, %s7294_s27, %s7295_s5  }
  0x3e   : > { %p5666_p9 = pnand %p5665_p8, %p5659_p11 }
  0x40   : > { %5669 = shalt.err (!%p5666_p9)
}
  0x41   : > { %s5968_s26 = smov 64   ;;  %s5969_s16 = smov 4  }
  0x42   : > { %5266 = dma.hbm_to_vmem [thread:$0]  (!%p6162_p0), %s7270_s14, 256, %s621_s24, [#allocation11], %s5968_s26, %s5968_s26, %s5969_s16  }
  0x43   : > { %s5970_s22 = smov [#allocation13]   ;;  %s5971_s1 = smov [#allocation16]  }
  0x44   : > { %s648_s3 = sshll.u32 %s5970_s22, 4  ;;  %s670_s27 = sshll.u32 %s5971_s1, 4  ;;  %s649_s3 = int_to_ptr.vmem [resolvable:$true] %s648_s3  ;;  %s671_s27 = int_to_ptr.vmem [resolvable:$true] %s670_s27 }
  0x45   : > { %s5681_s5 = scalar_lea.vmem %s649_s3, 16  ;;  %s5688_s25 = scalar_lea.vmem %s649_s3, 32 }
  0x46   : > { %p5682_p13 = scmp.ne.s32.totalorder %s649_s3, %s5681_s5  ;;  %p5689_p3 = scmp.lt.s32.totalorder %s649_s3, %s649_s3 }
  0x47   : > { %p5690_p7 = scmp.lt.s32.totalorder %s5688_s25, %s5681_s5 }
  0x48   : > { %p5684_p11 = pnand %p5682_p13, %p6168_p1 }
  0x49   : > { %p5691_p4 = por %p5690_p7, %p5689_p3 }
  0x4a   : > { %p5685_p2 = pneg %p5684_p11 }
  0x4c   : > { %p5692_p8 = pnand %p5691_p4, %p5685_p2 }
  0x4e   : > { %5695 = shalt.err (!%p5692_p8)
}
  0x4f   : > { %5272 = dma.hbm_to_vmem [thread:$0]  (!%p6162_p0), %s7273_s17, 16, %s649_s3, [#allocation14]  }
  0x50   : > { %s5707_s16 = scalar_lea.vmem %s671_s27, 16  ;;  %s5714_s24 = scalar_lea.vmem %s671_s27, 32 }
  0x51   : > { %p5708_p9 = scmp.ne.s32.totalorder %s671_s27, %s5707_s16  ;;  %p5715_p13 = scmp.lt.s32.totalorder %s671_s27, %s671_s27 }
  0x52   : > { %p5716_p11 = scmp.lt.s32.totalorder %s5714_s24, %s5707_s16 }
  0x53   : > { %p5710_p10 = pnand %p5708_p9, %p6168_p1 }
  0x54   : > { %p5717_p12 = por %p5716_p11, %p5715_p13 }
  0x55   : > { %p5711_p6 = pneg %p5710_p10 }
  0x57   : > { %p5718_p5 = pnand %p5717_p12, %p5711_p6 }
  0x59   : > { %5721 = shalt.err (!%p5718_p5)
}
  0x5a   : > { %5278 = dma.hbm_to_vmem [thread:$0]  (!%p6162_p0), %s7275_s19, 16, %s671_s27, [#allocation17]  }
  0x5b   : > { %s5972_s22 = smov [#allocation4]   ;;  %s5973_s1 = smov [#allocation9]  }
  0x5c   : > { %s577_s3 = sshll.u32 %s5972_s22, 4  ;;  %s610_s25 = sshll.u32 %s5973_s1, 4  ;;  %s578_s3 = int_to_ptr.vmem [resolvable:$true] %s577_s3  ;;  %s611_s25 = int_to_ptr.vmem [resolvable:$true] %s610_s25 }
  0x5d   : > { %s5733_s7 = scalar_lea.vmem %s578_s3, 64  ;;  %p5741_p6 = scmp.lt.s32.totalorder %s578_s3, %s578_s3 }
  0x5e   : > { %p5734_p10 = scmp.ne.s32.totalorder %s578_s3, %s5733_s7  ;;  %p5742_p5 = scmp.lt.s32.totalorder %s5733_s7, %s5733_s7 }
  0x60   : > { %p5736_p2 = pnand %p5734_p10, %p6168_p1  ;;  %p5743_p12 = por %p5742_p5, %p5741_p6 }
  0x62   : > { %p5737_p3 = pneg %p5736_p2 }
  0x64   : > { %p5744_p7 = pnand %p5743_p12, %p5737_p3 }
  0x66   : > { %5747 = shalt.err (!%p5744_p7)
}
  0x67   : > { %s7329_s12 = smov 1   ;;  %s7330_s27 = smov 16  }
  0x68   : > { %s7331_s9 = sld [smem:[#allocation43_spill]]  ;;  %s5759_s5 = scalar_lea.vmem %s611_s25, 16 }
  0x69   : > { %p5760_p4 = scmp.ne.s32.totalorder %s611_s25, %s5759_s5  ;;  %s5766_s26 = scalar_lea.vmem %s611_s25, 32 }
  0x6a   : > { %p5767_p13 = scmp.lt.s32.totalorder %s611_s25, %s611_s25  ;;  %p5768_p11 = scmp.lt.s32.totalorder %s5766_s26, %s5759_s5 }
  0x6b   : > { %p5762_p8 = pnand %p5760_p4, %p6168_p1 }
  0x6c   : > { %p5769_p10 = por %p5768_p11, %p5767_p13 }
  0x6d   : > { %p5763_p9 = pneg %p5762_p8 }
  0x6e   : > { %5257 = dma.hbm_to_vmem [thread:$0]  (!%p6162_p0), %s7331_s9, 64, %s578_s3, [#allocation5], %s7330_s27, %s7330_s27, %s7329_s12  }
  0x6f   : > { %p5770_p2 = pnand %p5769_p10, %p5763_p9 }
  0x71   : > { %5773 = shalt.err (!%p5770_p2)
}
  0x72   : > { %5263 = dma.hbm_to_vmem [thread:$0]  (!%p6162_p0), %s7269_s13, 16, %s611_s25, [#allocation8]  }
  0x73   : > { %s5974_s7 = smov [#allocation12]   ;;  %s5975_s12 = smov [#allocation15]  }
  0x74   : > { %s634_s3 = sshll.u32 %s5974_s7, 4  ;;  %s659_s27 = sshll.u32 %s5975_s12, 4  ;;  %s635_s3 = int_to_ptr.vmem [resolvable:$true] %s634_s3  ;;  %s660_s27 = int_to_ptr.vmem [resolvable:$true] %s659_s27 }
  0x75   : > { %s5785_s16 = scalar_lea.vmem %s635_s3, 16  ;;  %s5792_s24 = scalar_lea.vmem %s635_s3, 32 }
  0x76   : > { %p5786_p3 = scmp.ne.s32.totalorder %s635_s3, %s5785_s16  ;;  %p5793_p12 = scmp.lt.s32.totalorder %s635_s3, %s635_s3 }
  0x77   : > { %p5794_p7 = scmp.lt.s32.totalorder %s5792_s24, %s5785_s16 }
  0x78   : > { %p5788_p6 = pnand %p5786_p3, %p6168_p1 }
  0x79   : > { %p5795_p4 = por %p5794_p7, %p5793_p12 }
  0x7a   : > { %p5789_p5 = pneg %p5788_p6 }
  0x7c   : > { %p5796_p8 = pnand %p5795_p4, %p5789_p5 }
  0x7e   : > { %5799 = shalt.err (!%p5796_p8)
}
  0x7f   : > { %5269 = dma.hbm_to_vmem [thread:$0]  (!%p6162_p0), %s7271_s15, 16, %s635_s3, [#allocation11]  }
  0x80   : > { %s5811_s26 = scalar_lea.vmem %s660_s27, 16  ;;  %s5818_s22 = scalar_lea.vmem %s660_s27, 32 }
  0x81   : > { %p5812_p9 = scmp.ne.s32.totalorder %s660_s27, %s5811_s26  ;;  %p5819_p10 = scmp.lt.s32.totalorder %s660_s27, %s660_s27 }
  0x82   : > { %p5820_p2 = scmp.lt.s32.totalorder %s5818_s22, %s5811_s26 }
  0x83   : > { %p5814_p13 = pnand %p5812_p9, %p6168_p1 }
  0x84   : > { %p5821_p3 = por %p5820_p2, %p5819_p10 }
  0x85   : > { %p5815_p11 = pneg %p5814_p13 }
  0x87   : > { %p5822_p6 = pnand %p5821_p3, %p5815_p11 }
  0x89   : > { %5825 = shalt.err (!%p5822_p6)
}
  0x8a   : > { %5275 = dma.hbm_to_vmem [thread:$0]  (!%p6162_p0), %s7274_s18, 16, %s660_s27, [#allocation14]  }
  0x8b   : > { %s5976_s12 = smov [#allocation18]   ;;  %s5977_s16 = smov [#allocation19]  }
  0x8c   : > { %s681_s3 = sshll.u32 %s5976_s12, 4  ;;  %s692_s24 = sshll.u32 %s5977_s16, 4  ;;  %s682_s3 = int_to_ptr.vmem [resolvable:$true] %s681_s3  ;;  %s693_s24 = int_to_ptr.vmem [resolvable:$true] %s692_s24 }
  0x8d   : > { %s5837_s25 = scalar_lea.vmem %s682_s3, 16  ;;  %s5844_s5 = scalar_lea.vmem %s682_s3, 32 }
  0x8e   : > { %p5838_p5 = scmp.ne.s32.totalorder %s682_s3, %s5837_s25  ;;  %p5845_p4 = scmp.lt.s32.totalorder %s682_s3, %s682_s3 }
  0x8f   : > { %p5846_p8 = scmp.lt.s32.totalorder %s5844_s5, %s5837_s25 }
  0x90   : > { %p5840_p12 = pnand %p5838_p5, %p6168_p1 }
  0x91   : > { %p5847_p9 = por %p5846_p8, %p5845_p4 }
  0x92   : > { %p5841_p7 = pneg %p5840_p12 }
  0x94   : > { %p5848_p13 = pnand %p5847_p9, %p5841_p7 }
  0x96   : > { %5851 = shalt.err (!%p5848_p13)
}
  0x97   : > { %5281 = dma.hbm_to_vmem [thread:$0]  (!%p6162_p0), %s7276_s20, 16, %s682_s3, [#allocation17]  }
  0x98   : > { %s5863_s22 = scalar_lea.vmem %s693_s24, 16  ;;  %s5870_s1 = scalar_lea.vmem %s693_s24, 32 }
  0x99   : > { %p5864_p11 = scmp.ne.s32.totalorder %s693_s24, %s5863_s22  ;;  %p5871_p3 = scmp.lt.s32.totalorder %s693_s24, %s693_s24 }
  0x9a   : > { %p5872_p6 = scmp.lt.s32.totalorder %s5870_s1, %s5863_s22 }
  0x9b   : > { %p5866_p10 = pnand %p5864_p11, %p6168_p1 }
  0x9c   : > { %p5873_p5 = por %p5872_p6, %p5871_p3 }
  0x9d   : > { %p5867_p2 = pneg %p5866_p10 }
  0x9f   : > { %p5874_p12 = pnand %p5873_p5, %p5867_p2 }
  0xa1   : > { %5877 = shalt.err (!%p5874_p12)
}
  0xa2   : > { %5284 = dma.hbm_to_vmem [thread:$0]  (!%p6162_p0), %s7277_s21, 16, %s693_s24, [#allocation20]  }
  0xa3   : > { %p4470_p7 = scmp.ge.s32.totalorder %s5962_s30, 2 }
  0xa4   : > { %p7332_p1 = scmp.ne.s32.totalorder (!%p4470_p7), %s7320_s6, 0 }
  0xa5   : > { %699 = sbr.rel (%p4470_p7) target bundleno = 199 (0xc7), region = 96 }
  0xaa   : > { %702 = sbr.rel (!%p7332_p1) target bundleno = 184 (0xb8), region = 100  ;;  %s704_s23 = sand.u32 (%p7332_p1), 1, %s5958_s29  }
  0xab   : > { %s4472_s3 = sshll.u32 (%p7332_p1), %s5962_s30, 3  ;;  %s4471_s16 = sshll.u32 (%p7332_p1), %s704_s23, 6 }
  0xac   : > { %s7333_s0 = sld [smem:[#allocation34_spill]] (%p7332_p1)  ;;  %s706_s24 = scalar_lea.vmem (%p7332_p1), [#allocation2], %s4471_s16 }
  0xb2   : > { %s708_s27 = scalar_lea.vmem %s7333_s0, %s4472_s3 }
  0xb3   : > { %v751_v0 = vld [vmem:[%s708_s27] sm:$0xff]  ;;  %v753_v1 = vld [vmem:[%s708_s27 + $0x10] sm:$0xff] }
  0xb4   : > { %v755_v2 = vld [vmem:[%s708_s27 + $0x20] sm:$0xff]  ;;  %752 = vst [vmem:[%s706_s24] sm:$0xff] %v751_v0  ;;  %754 = vst [vmem:[%s706_s24 + $0x8] sm:$0xff] %v753_v1  ;;  %v757_v3 = vld [vmem:[%s708_s27 + $0x30] sm:$0xff] }
  0xb5   : > { %756 = vst [vmem:[%s706_s24 + $0x10] sm:$0xff] %v755_v2  ;;  %v759_v4 = vld [vmem:[%s708_s27 + $0x40] sm:$0xff]  ;;  %v761_v5 = vld [vmem:[%s708_s27 + $0x50] sm:$0xff]  ;;  %758 = vst [vmem:[%s706_s24 + $0x18] sm:$0xff] %v757_v3 }
  0xb6   : > { %760 = vst [vmem:[%s706_s24 + $0x20] sm:$0xff] %v759_v4  ;;  %762 = vst [vmem:[%s706_s24 + $0x28] sm:$0xff] %v761_v5  ;;  %v763_v6 = vld [vmem:[%s708_s27 + $0x60] sm:$0xff]  ;;  %v765_v7 = vld [vmem:[%s708_s27 + $0x70] sm:$0xff] }
  0xb7   : > { %764 = vst [vmem:[%s706_s24 + $0x30] sm:$0xff] %v763_v6  ;;  %766 = vst [vmem:[%s706_s24 + $0x38] sm:$0xff] %v765_v7 }
  0xb8 PF: > { %p7334_p0 = scmp.ne.s32.totalorder %s7320_s6, 0 }
  0xb9   : > { %s774_s26 = sand.u32 (%p7334_p0), 1, %s5958_s29   ;;  %s4474_s22 = sshll.u32 (%p7334_p0), %s5962_s30, 3 }
  0xba   : > { %772 = sbr.rel (!%p7334_p0) target bundleno = 199 (0xc7), region = 138  ;;  %s4473_s1 = sshll.u32 (%p7334_p0), %s774_s26, 6 }
  0xbb   : > { %s7335_s23 = sld [smem:[#allocation35_spill]] (%p7334_p0)  ;;  %s776_s16 = scalar_lea.vmem (%p7334_p0), [#allocation3], %s4473_s1 }
  0xc1   : > { %s778_s3 = scalar_lea.vmem %s7335_s23, %s4474_s22 }
  0xc2   : > { %v821_v8 = vld [vmem:[%s778_s3] sm:$0xff]  ;;  %v823_v9 = vld [vmem:[%s778_s3 + $0x10] sm:$0xff] }
  0xc3   : > { %v825_v10 = vld [vmem:[%s778_s3 + $0x20] sm:$0xff]  ;;  %822 = vst [vmem:[%s776_s16] sm:$0xff] %v821_v8  ;;  %824 = vst [vmem:[%s776_s16 + $0x8] sm:$0xff] %v823_v9  ;;  %v827_v11 = vld [vmem:[%s778_s3 + $0x30] sm:$0xff] }
  0xc4   : > { %826 = vst [vmem:[%s776_s16 + $0x10] sm:$0xff] %v825_v10  ;;  %v829_v12 = vld [vmem:[%s778_s3 + $0x40] sm:$0xff]  ;;  %v831_v13 = vld [vmem:[%s778_s3 + $0x50] sm:$0xff]  ;;  %828 = vst [vmem:[%s776_s16 + $0x18] sm:$0xff] %v827_v11 }
  0xc5   : > { %830 = vst [vmem:[%s776_s16 + $0x20] sm:$0xff] %v829_v12  ;;  %832 = vst [vmem:[%s776_s16 + $0x28] sm:$0xff] %v831_v13  ;;  %v833_v14 = vld [vmem:[%s778_s3 + $0x60] sm:$0xff]  ;;  %v835_v15 = vld [vmem:[%s778_s3 + $0x70] sm:$0xff] }
  0xc6   : > { %834 = vst [vmem:[%s776_s16 + $0x30] sm:$0xff] %v833_v14  ;;  %836 = vst [vmem:[%s776_s16 + $0x38] sm:$0xff] %v835_v15 }
  0xc7 PF: > { %p7336_p4 = scmp.ne.s32.totalorder %s7325_s2, 0 }
  0xc8   : > { %s7299_s6 = sand.u32 (!%p7336_p4), 1, %s5954_s28   ;;  %p7337_p8 = scmp.eq.s32.totalorder (!%p7336_p4), %s6121_s4, 0 }
  0xc9   : > { %845 = sbr.rel (%p7336_p4) target bundleno = 5015 (0x1397), region = 176  ;;  %s6270_s25 = sshll.u32 (!%p7336_p4), %s7299_s6, 6 }
  0xca   : > { %s6273_s5 = scalar_lea.vmem (!%p7336_p4), [#allocation2], %s6270_s25  ;;  %s6276_s0 = scalar_lea.vmem (!%p7336_p4), [#allocation3], %s6270_s25 }
  0xce   : > { %5921 = dma.done.wait (%p7337_p8), [#allocation5], 64   ;;  %p7338_p9 = pmov %p7337_p8 }
  0xcf   : > { %p7339_p13 = pmov %p7337_p8 }
  0xd0   : > { %5923 = vsyncadd (%p7338_p9), [#allocation5], 4294967232 }
  0xd1   : > { %5925 = dma.done.wait (%p7339_p13), [#allocation8], 80   ;;  %p7340_p11 = pmov %p7337_p8 }
  0xd2   : > { %p7341_p10 = pmov %p7337_p8 }
  0xd3   : > { %5927 = vsyncadd (%p7340_p11), [#allocation8], 4294967216 }
  0xd4   : > { %5929 = dma.done.wait (%p7341_p10), [#allocation11], 272   ;;  %p7342_p2 = pmov %p7337_p8 }
  0xd6   : > { %5931 = vsyncadd (%p7342_p2), [#allocation11], 4294967024  ;;  %p7343_p3 = pmov %p7342_p2 }
  0xd7   : > { %p7344_p6 = pmov %p7342_p2 }
  0xd8   : > { %5933 = dma.done.wait (%p7343_p3), [#allocation14], 32  }
  0xd9   : > { %5935 = vsyncadd (%p7344_p6), [#allocation14], 4294967264  ;;  %p7345_p5 = pmov %p7342_p2 }
  0xda   : > { %p7346_p12 = pmov %p7342_p2 }
  0xdb   : > { %5937 = dma.done.wait (%p7345_p5), [#allocation17], 32  }
  0xdc   : > { %5939 = vsyncadd (%p7346_p12), [#allocation17], 4294967264  ;;  %p7347_p1 = pmov %p7342_p2 }
  0xde   : > { %5941 = dma.done.wait (%p7347_p1), [#allocation20], 16   ;;  %p7348_p0 = pmov %p7347_p1 }
  0xdf   : > { %s7349_s24 = sld [smem:[#allocation38_spill]]  ;;  %v965_v18 = vld [vmem:[%s6273_s5 + $0x20] sm:$0xff]  ;;  %v966_v19 = vld [vmem:[%s6273_s5 + $0x28] sm:$0xff]  ;;  %vm1005_vm0 = vcmask 261120   ;;  %v967_v20 = vld [vmem:[%s6273_s5 + $0x30] sm:$0xff]  ;;  %vm1626_vm1 = vcmask 64512  }
  0xe0   : > { %5943 = vsyncadd (%p7348_p0), [#allocation20], 4294967280  ;;  %v987_v21 = vpack.c.bf16 %v966_v19, %v965_v18  ;;  %v968_v22 = vld [vmem:[%s6273_s5 + $0x38] sm:$0xff]  ;;  %s7350_s12 = sld [smem:[#allocation37_spill]]  ;;  %v961_v24 = vld [vmem:[%s6273_s5] sm:$0xff]  ;;  %vm1716_vm5 = vcmask 523264  }
  0xe1   : > { %v962_v25 = vld [vmem:[%s6273_s5 + $0x8] sm:$0xff]  ;;  %v963_v27 = vld [vmem:[%s6273_s5 + $0x10] sm:$0xff]  ;;  %v964_v28 = vld [vmem:[%s6273_s5 + $0x18] sm:$0xff]  ;;  %v988_v29 = vpack.c.bf16 %v968_v22, %v967_v20  ;;  %s7351_s8 = sld [smem:[#allocation42_spill]]  ;;  %s7298_s3 = smov 8   ;;  %vm3614_vm11 = vcmask 130048  }
  0xe2   : > { %4864 = vmatprep.mubr.msk.bf16.mxu1 %vm1005_vm0, %v987_v21  ;;  %v985_v26 = vpack.c.bf16 %v962_v25, %v961_v24  ;;  %v986_v30 = vpack.c.bf16 %v964_v28, %v963_v27  ;;  %v969_v31 = vld [vmem:[%s6276_s0] sm:$0xff]  ;;  %v970_v32 = vld [vmem:[%s6276_s0 + $0x8] sm:$0xff]  ;;  %v971_v35 = vld [vmem:[%s6276_s0 + $0x10] sm:$0xff]  ;;  %s7352_s26 = sld [smem:[#allocation40_spill]]  ;;  %s5980_s16 = smov 16   ;;  %vm3623_vm12 = vcmask 195584  }
  0xe3   : > { %v977_v34 = vpack.c.bf16 %v970_v32, %v969_v31  ;;  %v972_v36 = vld [vmem:[%s6276_s0 + $0x18] sm:$0xff]  ;;  %v973_v37 = vld [vmem:[%s6276_s0 + $0x20] sm:$0xff]  ;;  %v974_v38 = vld [vmem:[%s6276_s0 + $0x28] sm:$0xff]  ;;  %s7353_s10 = sld [smem:[#allocation44_spill]]  ;;  %s5981_s23 = smov 24  }
  0xe4   : > { %4860 = vmatprep.mubr.msk.bf16.mxu0 %vm1005_vm0, %v985_v26  ;;  %v978_v39 = vpack.c.bf16 %v972_v36, %v971_v35  ;;  %v979_v40 = vpack.c.bf16 %v974_v38, %v973_v37  ;;  %v975_v41 = vld [vmem:[%s6276_s0 + $0x30] sm:$0xff]  ;;  %v976_v42 = vld [vmem:[%s6276_s0 + $0x38] sm:$0xff]  ;;  %s7354_s2 = sld [smem:[#allocation39_spill]]  ;;  %s4685_s0 = sshll.u32 %s6121_s4, 7 }
  0xe5   : > { %v5422_v16 = vld [vmem:[%s7349_s24 + $0x8] sm:$0xff]   ;;  %v5423_v17 = vld [vmem:[%s7349_s24] sm:$0xff]   ;;  %v980_v43 = vpack.c.bf16 %v976_v42, %v975_v41  ;;  %s7355_s22 = sld [smem:[#allocation36_spill]]  ;;  %s7366_s4 = sand.u32 1, %s5954_s28  }
  0xe6   : > { %5192 = vmatprep.subr.bf16.mxu1 %v5422_v16  ;;  %4856 = vmatprep.subr.bf16.mxu0 %v5422_v16  ;;  %v5424_v23 = vld [vmem:[%s7350_s12 + $0x8] sm:$0xff]   ;;  %v5425_v33 = vld [vmem:[%s7350_s12] sm:$0xff]   ;;  %s7356_s1 = sld [smem:[#allocation41_spill]] }
  0xe7   : > { %5194 = vmatpush3.bf16.msra.mxu1 %v5422_v16  ;;  %4857 = vmatpush3.bf16.msra.mxu0 %v5422_v16  ;;  %v5426_v44 = vld [vmem:[%s7351_s8 + $0x8] sm:$0xff]   ;;  %v5428_v46 = vld [vmem:[%s7351_s8] sm:$0xff]   ;;  %s7361_s27 = sld [smem:[#allocation46_spill]] }
  0xe8   : > { %5193 = vmatprep.subr.bf16.mxu1 %v5423_v17  ;;  %4858 = vmatprep.subr.bf16.mxu0 %v5423_v17  ;;  %v5427_v45 = vld [vmem:[%s7352_s26 + $0x8] sm:$0xff]   ;;  %v5429_v47 = vld [vmem:[%s7352_s26] sm:$0xff]   ;;  %s7365_s5 = sld [smem:[#allocation48_spill]] }
  0xe9   : > { %v5430_v48 = vld [vmem:[%s7353_s10 + $0x8] sm:$0xff]  }
  0xea   : > { %v4501_v61 = vld [vmem:[%s7354_s2] ss:$0 sm:$0xff]  ;;  %s7363_s2 = sld [smem:[#allocation47_spill]] }
  0xeb   : > { %5195 = vmatpush3.bf16.msra.mxu1 %v5423_v17  ;;  %4859 = vmatpush3.bf16.msra.mxu0 %v5423_v17  ;;  %v1190_v3 = vld [vmem:[%s7355_s22 + $0x18] sm:$0xff]  ;;  %v1187_v6 = vld [vmem:[%s7355_s22] sm:$0xff]  ;;  %v1188_v7 = vld [vmem:[%s7355_s22 + $0x8] sm:$0xff] }
  0xec   : > { %4868 = vmatprep.subr.bf16.mxu1 %v5424_v23  ;;  %4880 = vmatprep.subr.bf16.mxu0 %v5427_v45  ;;  %v1189_v9 = vld [vmem:[%s7355_s22 + $0x10] sm:$0xff]  ;;  %v1194_v26 = vld [vmem:[%s7355_s22 + $0x38] sm:$0xff] }
  0xed   : > { %v1193_v31 = vld [vmem:[%s7355_s22 + $0x30] sm:$0xff] }
  0xee   : > { %4865 = vmatmul.mubr.msk.bf16.vlgmr.msra.gmra.mxu1 %vm1005_vm0, %v988_v29  ;;  %4861 = vmatmul.mubr.msk.bf16.vlgmr.msra.gmra.mxu0 %vm1005_vm0, %v986_v30  ;;  %v1191_v29 = vld [vmem:[%s7355_s22 + $0x20] sm:$0xff]  ;;  %v1192_v30 = vld [vmem:[%s7355_s22 + $0x28] sm:$0xff]  ;;  %s7206_s6 = scalar_lea.hbm %s7365_s5, %s4685_s0 }
  0xef   : > { %4869 = vmatpush3.bf16.msra.mxu1 %v5424_v23  ;;  %4872 = vmatprep.mubr.msk.bf16.mxu1 %vm1005_vm0, %v977_v34  ;;  %v5431_v23 = vld [vmem:[%s7353_s10] sm:$0xff]  }
  0xf0   : > { %4870 = vmatprep.subr.bf16.mxu1 %v5425_v33  ;;  %4881 = vmatpush3.bf16.msra.mxu0 %v5427_v45  ;;  %v6446_v45 = vld [vmem:[%s7356_s1] ss:$0 sm:$0xff] }
  0xf1   : > { %4882 = vmatprep.subr.bf16.mxu0 %v5429_v47 }
  0xf3   : > { %4871 = vmatpush3.bf16.msra.mxu1 %v5425_v33 }
  0xf4   : > { %4892 = vmatprep.subr.bf16.mxu1 %v5426_v44  ;;  %4883 = vmatpush3.bf16.msra.mxu0 %v5429_v47 }
  0xf5   : > { %4904 = vmatprep.subr.bf16.mxu0 %v5430_v48 }
  0xf6   : > { %4873 = vmatmul.mubr.msk.bf16.vlgmr.msra.gmra.mxu1 %vm1005_vm0, %v978_v39 }
  0xf7   : > { %4876 = vmatprep.mubr.msk.bf16.mxu1 %vm1005_vm0, %v979_v40  ;;  %4893 = vmatpush3.bf16.msra.mxu1 %v5426_v44 }
  0xf8   : > { %4894 = vmatprep.subr.bf16.mxu1 %v5428_v46 }
  0xfb   : > { %4895 = vmatpush3.bf16.msra.mxu1 %v5428_v46 }
  0xfe   : > { %4877 = vmatmul.mubr.msk.bf16.gmra.mxu1 %vm1005_vm0, %v980_v43 }
 0x1ae   : > { %v4866_v49 = vpop.f32.mrf.mxu1  ;;  %v4862_v51 = vpop.f32.mrf.mxu0 }
 0x1b0   : > { %v1068_v50 = vpop.f32.mrf.mxu1  ;;  %v1052_v53 = vpop.f32.mrf.mxu0 }
 0x1b2   : > { %v4867_v52 = vpop.f32.mrf.mxu1  ;;  %v4863_v56 = vpop.f32.mrf.mxu0 }
 0x1b4   : > { %v1071_v54 = vpop.f32.mrf.mxu1  ;;  %v1055_v63 = vpop.f32.mrf.mxu0 }
 0x1b6   : > { %v4874_v55 = vpop.f32.mrf.mxu1 }
 0x1b7   : > { %v1150_v59 = vadd.f32 %v4874_v55, %v4862_v51  ;;  %v4509_v55 = vld [vmem:[#allocation4] ss:$0 sm:$0xff] }
 0x1b8   : > { %v1141_v57 = vpop.f32.mrf.mxu1 }
 0x1b9   : > { %v1142_v58 = vadd.f32 %v1141_v57, %v1052_v53  ;;  %v1181_v5 = vadd.f32 %v4501_v61, %v1150_v59 }
 0x1ba   : > { %v4875_v60 = vpop.f32.mrf.mxu1 }
 0x1bb   : > { %v1153_v62 = vadd.f32 %v4875_v60, %v4863_v56  ;;  %v1179_v1 = vadd.f32 %v4501_v61, %v1142_v58  ;;  %v6374_v16 = vadd.f32 %v1189_v9, %v1181_v5 }
 0x1bc   : > { %v1144_v0 = vpop.f32.mrf.mxu1 }
 0x1bd   : > { %v1182_v2 = vadd.f32 %v4501_v61, %v1153_v62  ;;  %v1145_v4 = vadd.f32 %v1144_v0, %v1055_v63  ;;  %v6370_v13 = vadd.f32 %v1187_v6, %v1179_v1 }
 0x1be   : > { %v4878_v8 = vpop.f32.mrf.mxu1 }
 0x1bf   : > { %v1180_v10 = vadd.f32 %v4501_v61, %v1145_v4  ;;  %v6368_v11 = vadd.f32 %v1190_v3, %v1182_v2  ;;  %v1166_v17 = vadd.f32 %v4878_v8, %v4866_v49 }
 0x1c0   : > { %v1157_v12 = vpop.f32.mrf.mxu1 }
 0x1c1   : > { %v6372_v14 = vadd.f32 %v1188_v7, %v1180_v10  ;;  %v1158_v15 = vadd.f32 %v1157_v12, %v1068_v50  ;;  %v6382_v21 = vpack.c.bf16 %v6368_v11, %v6374_v16  ;;  %v1185_v28 = vadd.f32 %v4501_v61, %v1166_v17  ;;  %v4516_v17 = vld [vmem:[#allocation7] ss:$0 sm:$0xff] }
 0x1c2   : > { %v4879_v18 = vpop.f32.mrf.mxu1 }
 0x1c3   : > { %v6378_v19 = vpack.c.bf16 %v6372_v14, %v6370_v13  ;;  %v1169_v20 = vadd.f32 %v4879_v18, %v4867_v52  ;;  %v1183_v24 = vadd.f32 %v4501_v61, %v1158_v15  ;;  %v6413_v36 = vadd.f32 %v1193_v31, %v1185_v28 }
 0x1c4   : > { %v1160_v22 = vpop.f32.mrf.mxu1 }
 0x1c5   : > { %v1186_v25 = vadd.f32 %v4501_v61, %v1169_v20  ;;  %v1161_v27 = vadd.f32 %v1160_v22, %v1071_v54  ;;  %4884 = vmatprep.mubr.msk.bf16.mxu0 %vm1005_vm0, %v6378_v19  ;;  %4896 = vmatprep.mubr.msk.bf16.mxu1 %vm1005_vm0, %v6378_v19  ;;  %v6409_v34 = vadd.f32 %v1191_v29, %v1183_v24 }
 0x1c6   : > { %4885 = vmatmul.mubr.msk.bf16.vlgmr.msra.gmra.mxu0 %vm1005_vm0, %v6382_v21  ;;  %4897 = vmatmul.mubr.msk.bf16.vlgmr.msra.gmra.mxu1 %vm1005_vm0, %v6382_v21 }
 0x1c7   : > { %v1184_v32 = vadd.f32 %v4501_v61, %v1161_v27  ;;  %4905 = vmatpush3.bf16.msra.mxu0 %v5430_v48  ;;  %v6407_v33 = vadd.f32 %v1194_v26, %v1186_v25 }
 0x1c8   : > { %4906 = vmatprep.subr.bf16.mxu0 %v5431_v23 }
 0x1c9   : > { %v6411_v35 = vadd.f32 %v1192_v30, %v1184_v32  ;;  %v6421_v38 = vpack.c.bf16 %v6407_v33, %v6413_v36 }
 0x1cb   : > { %v6417_v37 = vpack.c.bf16 %v6411_v35, %v6409_v34  ;;  %4907 = vmatpush3.bf16.msra.mxu0 %v5431_v23 }
 0x1cd   : > { %4888 = vmatprep.mubr.msk.bf16.mxu0 %vm1005_vm0, %v6417_v37  ;;  %4900 = vmatprep.mubr.msk.bf16.mxu1 %vm1005_vm0, %v6417_v37 }
 0x1ce   : > { %4889 = vmatmul.mubr.msk.bf16.gmra.mxu0 %vm1005_vm0, %v6421_v38  ;;  %4901 = vmatmul.mubr.msk.bf16.gmra.mxu1 %vm1005_vm0, %v6421_v38 }
 0x1cf   : > { %4908 = vmatprep.mubr.msk.bf16.mxu0 %vm1005_vm0, %v6378_v19 }
 0x1d6   : > { %4909 = vmatmul.mubr.msk.bf16.vlgmr.msra.gmra.mxu0 %vm1005_vm0, %v6382_v21 }
 0x1d7   : > { %4912 = vmatprep.mubr.msk.bf16.mxu0 %vm1005_vm0, %v6417_v37 }
 0x1de   : > { %4913 = vmatmul.mubr.msk.bf16.gmra.mxu0 %vm1005_vm0, %v6421_v38 }
 0x286   : > { %v6439_v39 = vpop.f32.mrf.mxu0  ;;  %v4898_v40 = vpop.f32.mrf.mxu1 }
 0x287   : > { %v1508_v8 = vadd.f32 %v4898_v40, %v4509_v55 }
 0x288   : > { %v1411_v41 = vpop.f32.mrf.mxu0  ;;  %v1499_v42 = vpop.f32.mrf.mxu1 }
 0x289   : > { %v1412_v48 = vadd.f32 %v6446_v45, %v1411_v41  ;;  %v1500_v25 = vadd.f32 %v4509_v55, %v1499_v42  ;;  %v5432_v42 = vld [vmem:[%s7351_s8 + $0x18] sm:$0xff]  }
 0x28a   : > { %v6441_v43 = vpop.f32.mrf.mxu0  ;;  %v4899_v44 = vpop.f32.mrf.mxu1 }
 0x28b   : > { %v1511_v6 = vadd.f32 %v4899_v44, %v4509_v55 }
 0x28c   : > { %v1414_v46 = vpop.f32.mrf.mxu0  ;;  %v1502_v47 = vpop.f32.mrf.mxu1 }
 0x28d   : > { %v1415_v49 = vadd.f32 %v6446_v45, %v1414_v46  ;;  %v1623_v10 = vpack.c.bf16 %v1511_v6, %v1508_v8  ;;  %v1503_v20 = vadd.f32 %v4509_v55, %v1502_v47 }
 0x28e   : > { %v6450_v50 = vpop.f32.mrf.mxu0  ;;  %v4902_v51 = vpop.f32.mrf.mxu1 }
 0x28f   : > { %v1618_v52 = vpack.c.bf16 %v1415_v49, %v1412_v48  ;;  %v1524_v58 = vadd.f32 %v4902_v51, %v4509_v55  ;;  %v1622_v29 = vpack.c.bf16 %v1503_v20, %v1500_v25  ;;  %v1643_v32 = vsel %vm1626_vm1, %v1623_v10, 0 }
 0x290   : > { %v6452_v53 = vpop.f32.mrf.mxu0  ;;  %v1515_v54 = vpop.f32.mrf.mxu1  ;;  %v1423_v49 = vadd.f32 %v6441_v43, %v6446_v45 }
 0x291   : > { %4924 = vmatprep.mubr.msk.bf16.mxu1 %vm1626_vm1, %v1618_v52  ;;  %v1516_v62 = vadd.f32 %v4509_v55, %v1515_v54  ;;  %v1640_v48 = vsel %vm1626_vm1, %v1622_v29, 0  ;;  %v1420_v52 = vadd.f32 %v6439_v39, %v6446_v45  ;;  %v1428_v54 = vadd.f32 %v6446_v45, %v6452_v53 }
 0x292   : > { %v6455_v56 = vpop.f32.mrf.mxu0  ;;  %v4903_v57 = vpop.f32.mrf.mxu1  ;;  %v1436_v39 = vadd.f32 %v6450_v50, %v6446_v45 }
 0x293   : > { %v1527_v59 = vadd.f32 %v4903_v57, %v4509_v55  ;;  %v5433_v57 = vld [vmem:[%s7351_s8 + $0x10] sm:$0xff]   ;;  %v1439_v43 = vadd.f32 %v6455_v56, %v6446_v45  ;;  %v1207_v56 = vlaneseq }
 0x294   : > { %v1430_v60 = vpop.f32.mrf.mxu0  ;;  %v1518_v61 = vpop.f32.mrf.mxu1 }
 0x295   : > { %v1625_v63 = vpack.c.bf16 %v1527_v59, %v1524_v58  ;;  %v1519_v0 = vadd.f32 %v4509_v55, %v1518_v61  ;;  %v1431_v51 = vadd.f32 %v6446_v45, %v1430_v60  ;;  %v1619_v55 = vpack.c.bf16 %v1423_v49, %v1420_v52 }
 0x296   : > { %v4910_v1 = vpop.f32.mrf.mxu0  ;;  %v1621_v53 = vpack.c.bf16 %v1439_v43, %v1436_v39  ;;  %v1208_v59 = vshrl.u32 %v1207_v56, 7  ;;  %v1217_v45 = vand.u32 127, %v1207_v56 }
 0x297   : > { %v1624_v2 = vpack.c.bf16 %v1519_v0, %v1516_v62  ;;  %5196 = vmatprep.subr.msk.bf16.mxu1 %vm1626_vm1, %v1625_v63  ;;  %v1649_v3 = vsel %vm1626_vm1, %v1625_v63, 0  ;;  %v1596_v40 = vadd.f32 %v4910_v1, %v4516_v17  ;;  %v1620_v58 = vpack.c.bf16 %v1431_v51, %v1428_v54 }
 0x298   : > { %v1587_v4 = vpop.f32.mrf.mxu0  ;;  %4917 = vmatpush3.bf16.xpose.msra.mxu1 %v1649_v3  ;;  %v1210_v60 = vadd.s32 16, %v1208_v59  ;;  %v1318_v61 = vand.u32 7, %v1217_v45  ;;  %v1211_v62 = vadd.s32 24, %v1208_v59  ;;  %v1222_v63 = vand.u32 7, %v1208_v59 }
 0x299   : > { %5197 = vmatprep.subr.msk.bf16.mxu1 %vm1626_vm1, %v1624_v2  ;;  %v1646_v12 = vsel %vm1626_vm1, %v1624_v2, 0  ;;  %v1588_v46 = vadd.f32 %v4516_v17, %v1587_v4  ;;  %v1209_v0 = vadd.s32 8, %v1208_v59  ;;  %v1212_v3 = vadd.s32 32, %v1208_v59 }
 0x29a   : > { %v4911_v5 = vpop.f32.mrf.mxu0  ;;  %v1236_v50 = vand.u32 7, %v1210_v60  ;;  %v1243_v1 = vand.u32 7, %v1211_v62  ;;  %vm1326_vm3 = vcmp.eq.s32.totalorder %v1222_v63, %v1318_v61  ;;  %v5978_v4 = vmov -1e+30   ;;  %v4547_v62 = vld [vmem:[#allocation4 + $0x1] ss:$0 sm:$0xff] }
 0x29b   : > { %v1599_v30 = vadd.f32 %v4911_v5, %v4516_v17  ;;  %v1229_v2 = vand.u32 7, %v1209_v0  ;;  %v1214_v6 = vadd.s32 48, %v1208_v59  ;;  %v6495_v8 = vsel %vm1326_vm3, 0.0, %v5978_v4 }
 0x29c   : > { %v1590_v7 = vpop.f32.mrf.mxu0  ;;  %vm1328_vm2 = vcmp.eq.s32.totalorder %v1236_v50, %v1318_v61  ;;  %vm1329_vm4 = vcmp.eq.s32.totalorder %v1243_v1, %v1318_v61 }
 0x29d   : > { %v1810_v41 = vpack.c.bf16 %v1599_v30, %v1596_v40  ;;  %v1591_v44 = vadd.f32 %v4516_v17, %v1590_v7  ;;  %v6493_v5 = vsel %vm1328_vm2, 0.0, %v5978_v4  ;;  %vm1327_vm6 = vcmp.eq.s32.totalorder %v1229_v2, %v1318_v61 }
 0x29e   : > { %v4914_v9 = vpop.f32.mrf.mxu0  ;;  %v6507_v25 = vsel %vm1327_vm6, 0.0, %v5978_v4 }
 0x29f   : > { %v1612_v22 = vadd.f32 %v4914_v9, %v4516_v17  ;;  %v1809_v47 = vpack.c.bf16 %v1591_v44, %v1588_v46 }
 0x2a0   : > { %v1603_v15 = vpop.f32.mrf.mxu0  ;;  %4919 = vmatpush3.bf16.xpose.msra.mxu1 %v1646_v12  ;;  %v1213_v12 = vadd.s32 40, %v1208_v59 }
 0x2a1   : > { %5198 = vmatprep.subr.msk.bf16.mxu1 %vm1626_vm1, %v1623_v10  ;;  %v1604_v26 = vadd.f32 %v4516_v17, %v1603_v15  ;;  %v1250_v10 = vand.u32 7, %v1212_v3 }
 0x2a2   : > { %v4915_v18 = vpop.f32.mrf.mxu0 }
 0x2a3   : > { %v1615_v23 = vadd.f32 %v4915_v18, %v4516_v17  ;;  %vm1330_vm7 = vcmp.eq.s32.totalorder %v1250_v10, %v1318_v61 }
 0x2a4   : > { %v1606_v24 = vpop.f32.mrf.mxu0 }
 0x2a5   : > { %v1812_v27 = vpack.c.bf16 %v1615_v23, %v1612_v22  ;;  %v1607_v28 = vadd.f32 %v4516_v17, %v1606_v24  ;;  %v6500_v17 = vsel %vm1329_vm4, 0.0, %v5978_v4  ;;  %v1264_v22 = vand.u32 7, %v1214_v6 }
 0x2a6   : > { %v1215_v23 = vadd.s32 56, %v1208_v59 }
 0x2a7   : > { %v1811_v31 = vpack.c.bf16 %v1607_v28, %v1604_v26  ;;  %4932 = vmatprep.subr.bf16.mxu0 %v1812_v27  ;;  %v1257_v28 = vand.u32 7, %v1213_v12  ;;  %vm1332_vm8 = vcmp.eq.s32.totalorder %v1264_v22, %v1318_v61 }
 0x2a8   : > { %4921 = vmatpush3.bf16.xpose.msra.mxu1 %v1643_v32  ;;  %4933 = vmatpush3.bf16.msra.mxu0 %v1812_v27  ;;  %v1271_v32 = vand.u32 7, %v1215_v23  ;;  %v6523_v46 = vsel %vm1332_vm8, 0.0, %v5978_v4 }
 0x2a9   : > { %5199 = vmatprep.subr.msk.bf16.mxu1 %vm1626_vm1, %v1622_v29  ;;  %4934 = vmatprep.subr.bf16.mxu0 %v1811_v31  ;;  %vm1331_vm9 = vcmp.eq.s32.totalorder %v1257_v28, %v1318_v61 }
 0x2aa   : > { %vm1333_vm10 = vcmp.eq.s32.totalorder %v1271_v32, %v1318_v61  ;;  %v6528_v49 = vsel %vm1331_vm9, 0.0, %v5978_v4 }
 0x2ab   : > { %v6535_v54 = vsel %vm1333_vm10, 0.0, %v5978_v4 }
 0x2ac   : > { %4935 = vmatpush3.bf16.msra.mxu0 %v1811_v31 }
 0x2ad   : > { %4936 = vmatprep.subr.bf16.mxu0 %v1810_v41 }
 0x2b0   : > { %4923 = vmatpush3.bf16.xpose.msra.mxu1 %v1640_v48  ;;  %4937 = vmatpush3.bf16.msra.mxu0 %v1810_v41  ;;  %v6519_v41 = vsel %vm1330_vm7, 0.0, %v5978_v4 }
 0x2b1   : > { %4938 = vmatprep.subr.bf16.mxu0 %v1809_v47  ;;  %4960 = vmatprep.subr.bf16.mxu1 %v5432_v42 }
 0x2b4   : > { %4939 = vmatpush3.bf16.msra.mxu0 %v1809_v47 }
 0x2b7   : > { %4925 = vmatmul.mubr.msk.bf16.vlgmr.msra.gmra.mxu1 %vm1626_vm1, %v1619_v55 }
 0x2b8   : > { %4928 = vmatprep.mubr.msk.bf16.mxu1 %vm1626_vm1, %v1620_v58  ;;  %4961 = vmatpush3.bf16.msra.mxu1 %v5432_v42 }
 0x2b9   : > { %4962 = vmatprep.subr.bf16.mxu1 %v5433_v57 }
 0x2bc   : > { %4963 = vmatpush3.bf16.msra.mxu1 %v5433_v57 }
 0x2bf   : > { %4929 = vmatmul.mubr.msk.bf16.gmra.mxu1 %vm1626_vm1, %v1621_v53 }
 0x2c0   : > { %4964 = vmatprep.mubr.msk.bf16.mxu1 %vm1005_vm0, %v6378_v19 }
 0x2c7   : > { %4965 = vmatmul.mubr.msk.bf16.vlgmr.msra.gmra.mxu1 %vm1005_vm0, %v6382_v21 }
 0x2c8   : > { %4968 = vmatprep.mubr.msk.bf16.mxu1 %vm1005_vm0, %v6417_v37 }
 0x2cf   : > { %4969 = vmatmul.mubr.msk.bf16.gmra.mxu1 %vm1005_vm0, %v6421_v38 }
 0x377   : > { %v4926_v7 = vpop.f32.mrf.mxu1 }
 0x378   : > { %v6498_v9 = vadd.f32 %v4926_v7, %v6493_v5 }
 0x379   : > { %v1685_v15 = vpop.f32.mrf.mxu1 }
 0x37a   : > { %v6503_v18 = vadd.f32 %v1685_v15, %v6495_v8  ;;  %v1723_v20 = vsel %vm1716_vm5, %v6498_v9, -inf }
 0x37b   : > { %1724 = vmax.xlane.f32.xlu1 %v1723_v20  ;;  %v4927_v24 = vpop.f32.mrf.mxu1 }
 0x37c   : > { %v6510_v26 = vadd.f32 %v4927_v24, %v6500_v17  ;;  %v1717_v27 = vsel %vm1716_vm5, %v6503_v18, -inf }
 0x37d   : > { %v1688_v29 = vpop.f32.mrf.mxu1  ;;  %1718 = vmax.xlane.f32.xlu0 %v1717_v27 }
 0x37e   : > { %v6515_v30 = vadd.f32 %v1688_v29, %v6507_v25  ;;  %v1726_v31 = vsel %vm1716_vm5, %v6510_v26, -inf }
 0x37f   : > { %1727 = vmax.xlane.f32.xlu1 %v1726_v31  ;;  %v4930_v40 = vpop.f32.mrf.mxu1 }
 0x380   : > { %v1720_v44 = vsel %vm1716_vm5, %v6515_v30, -inf  ;;  %v6531_v51 = vadd.f32 %v4930_v40, %v6523_v46 }
 0x381   : > { %v1701_v42 = vpop.f32.mrf.mxu1  ;;  %1721 = vmax.xlane.f32.xlu0 %v1720_v44 }
 0x382   : > { %v6526_v47 = vadd.f32 %v1701_v42, %v6519_v41  ;;  %v1735_v53 = vsel %vm1716_vm5, %v6531_v51, -inf }
 0x383   : > { %v4931_v48 = vpop.f32.mrf.mxu1 }
 0x384   : > { %v1729_v52 = vsel %vm1716_vm5, %v6526_v47, -inf  ;;  %v6541_v43 = vadd.f32 %v4931_v48, %v6535_v54 }
 0x385   : > { %v1704_v55 = vpop.f32.mrf.mxu1  ;;  %1730 = vmax.xlane.f32.xlu0 %v1729_v52 }
 0x386   : > { %v6538_v57 = vadd.f32 %v1704_v55, %v6528_v49  ;;  %v1738_v60 = vsel %vm1716_vm5, %v6541_v43, -inf }
 0x387   : > { %v4966_v58 = vpop.f32.mrf.mxu1 }
 0x388   : > { %v1732_v39 = vsel %vm1716_vm5, %v6538_v57, -inf  ;;  %v2048_v15 = vadd.f32 %v4966_v58, %v4547_v62 }
 0x389   : > { %v2039_v56 = vpop.f32.mrf.mxu1  ;;  %1733 = vmax.xlane.f32.xlu1 %v1732_v39  ;;  %1736 = vmax.xlane.f32.xlu0 %v1735_v53 }
 0x38a   : > { %v2040_v24 = vadd.f32 %v4547_v62, %v2039_v56 }
 0x38b   : > { %v4967_v59 = vpop.f32.mrf.mxu1 }
 0x38c   : > { %v2051_v12 = vadd.f32 %v4967_v59, %v4547_v62 }
 0x38d   : > { %v2042_v45 = vpop.f32.mrf.mxu1  ;;  %1739 = vmax.xlane.f32.xlu1 %v1738_v60 }
 0x38e   : > { %v2165_v20 = vpack.c.bf16 %v2051_v12, %v2048_v15  ;;  %v2043_v23 = vadd.f32 %v4547_v62, %v2042_v45 }
 0x38f   : > { %v4970_v50 = vpop.f32.mrf.mxu1 }
 0x390   : > { %v2064_v0 = vadd.f32 %v4970_v50, %v4547_v62  ;;  %v2164_v27 = vpack.c.bf16 %v2043_v23, %v2040_v24  ;;  %v2184_v28 = vsel %vm1626_vm1, %v2165_v20, 0  ;;  %v5434_v24 = vld [vmem:[%s7352_s26 + $0x18] sm:$0xff]  }
 0x391   : > { %v2055_v61 = vpop.f32.mrf.mxu1  ;;  %4948 = vmatprep.subr.bf16.mxu0 %v5434_v24 }
 0x392   : > { %v2056_v3 = vadd.f32 %v4547_v62, %v2055_v61  ;;  %v2181_v29 = vsel %vm1626_vm1, %v2164_v27, 0 }
 0x393   : > { %v4971_v63 = vpop.f32.mrf.mxu1 }
 0x394   : > { %v2067_v1 = vadd.f32 %v4971_v63, %v4547_v62 }
 0x395   : > { %v2058_v2 = vpop.f32.mrf.mxu1 }
 0x396   : > { %v2167_v4 = vpack.c.bf16 %v2067_v1, %v2064_v0  ;;  %v2059_v6 = vadd.f32 %v4547_v62, %v2058_v2 }
 0x398   : > { %v2166_v7 = vpack.c.bf16 %v2059_v6, %v2056_v3  ;;  %5200 = vmatprep.subr.msk.bf16.mxu1 %vm1626_vm1, %v2167_v4  ;;  %v2190_v10 = vsel %vm1626_vm1, %v2167_v4, 0 }
 0x399   : > { %4985 = vmatpush3.bf16.xpose.msra.mxu1 %v2190_v10 }
 0x39a   : > { %5201 = vmatprep.subr.msk.bf16.mxu1 %vm1626_vm1, %v2166_v7  ;;  %v2187_v22 = vsel %vm1626_vm1, %v2166_v7, 0 }
 0x3a1   : > { %4987 = vmatpush3.bf16.xpose.msra.mxu1 %v2187_v22 }
 0x3a2   : > { %5202 = vmatprep.subr.msk.bf16.mxu1 %vm1626_vm1, %v2165_v20 }
 0x3a9   : > { %4989 = vmatpush3.bf16.xpose.msra.mxu1 %v2184_v28 }
 0x3aa   : > { %5203 = vmatprep.subr.msk.bf16.mxu1 %vm1626_vm1, %v2164_v27 }
 0x3b1   : > { %4991 = vmatpush3.bf16.xpose.msra.mxu1 %v2181_v29 }
 0x404   : > { %v1725_v31 = vpop.xlane.xlu1 %1724 }
 0x405   : > { %v1743_v32 = vsub.f32 %v6498_v9, %v1725_v31 }
 0x406   : > { %v1719_v40 = vpop.xlane.xlu0 %1718 }
 0x407   : > { %v1741_v44 = vsub.f32 %v6503_v18, %v1719_v40  ;;  %v1753_v48 = vmul.f32 1.442695, %v1743_v32 }
 0x408   : > { %v1728_v42 = vpop.xlane.xlu1 %1727 }
 0x409   : > { %v1749_v52 = vmul.f32 1.442695, %v1741_v44  ;;  %v1744_v55 = vsub.f32 %v6510_v26, %v1728_v42 }
 0x40a   : > { %v1722_v58 = vpop.xlane.xlu0 %1721 }
 0x40b   : > { %5458 = vpow2.f32 %v1749_v52  ;;  %v1742_v39 = vsub.f32 %v6515_v30, %v1722_v58  ;;  %v1755_v53 = vmul.f32 1.442695, %v1744_v55 }
 0x40c   : > { %5460 = vpow2.f32 %v1753_v48 }
 0x40d   : > { %v1751_v56 = vmul.f32 1.442695, %v1742_v39 }
 0x40e   : > { %v1731_v59 = vpop.xlane.xlu0 %1730 }
 0x40f   : > { %5462 = vpow2.f32 %v1751_v56  ;;  %v1745_v60 = vsub.f32 %v6526_v47, %v1731_v59 }
 0x410   : > { %5464 = vpow2.f32 %v1755_v53 }
 0x411   : > { %v1757_v9 = vmul.f32 1.442695, %v1745_v60 }
 0x412   : > { %v1734_v45 = vpop.xlane.xlu1 %1733  ;;  %v1737_v18 = vpop.xlane.xlu0 %1736 }
 0x413   : > { %5466 = vpow2.f32 %v1757_v9  ;;  %v1746_v50 = vsub.f32 %v6538_v57, %v1734_v45  ;;  %v1747_v26 = vsub.f32 %v6531_v51, %v1737_v18  ;;  %v5435_v18 = vld [vmem:[%s7352_s26 + $0x10] sm:$0xff]  }
 0x415   : > { %v1759_v61 = vmul.f32 1.442695, %v1746_v50  ;;  %v1761_v62 = vmul.f32 1.442695, %v1747_v26 }
 0x416   : > { %v1740_v63 = vpop.xlane.xlu1 %1739 }
 0x417   : > { %5468 = vpow2.f32 %v1759_v61  ;;  %v1748_v30 = vsub.f32 %v6541_v43, %v1740_v63 }
 0x418   : > { %v5459_v0 = vpop.eup %5458  ;;  %5470 = vpow2.f32 %v1761_v62 }
 0x419   : > { %v1763_v1 = vmul.f32 1.442695, %v1748_v30  ;;  %v1765_v47 = vsel %vm1716_vm5, %v5459_v0, 0.0  ;;  %v5461_v2 = vpop.eup %5460  ;;  %v5436_v30 = vld [vmem:[%s7353_s10 + $0x18] sm:$0xff]  }
 0x41a   : > { %1766 = vadd.xlane.f32.xlu0 %v1765_v47  ;;  %v1771_v4 = vsel %vm1716_vm5, %v5461_v2, 0.0 }
 0x41b   : > { %5472 = vpow2.f32 %v1763_v1 }
 0x41c   : > { %v5463_v3 = vpop.eup %5462 }
 0x41d   : > { %v1768_v57 = vsel %vm1716_vm5, %v5463_v3, 0.0  ;;  %v5465_v51 = vpop.eup %5464 }
 0x41e   : > { %1772 = vadd.xlane.f32.xlu0 %v1771_v4  ;;  %1769 = vadd.xlane.f32.xlu1 %v1768_v57  ;;  %v1774_v7 = vsel %vm1716_vm5, %v5465_v51, 0.0  ;;  %v5438_v4 = vld [vmem:[%s7351_s8 + $0x28] sm:$0xff]  }
 0x41f   : > { %5028 = vmatprep.subr.bf16.mxu1 %v5438_v4 }
 0x420   : > { %v5467_v6 = vpop.eup %5466 }
 0x421   : > { %v1777_v43 = vsel %vm1716_vm5, %v5467_v6, 0.0 }
 0x422   : > { %1775 = vadd.xlane.f32.xlu1 %v1774_v7  ;;  %1778 = vadd.xlane.f32.xlu0 %v1777_v43 }
 0x424   : > { %v5469_v10 = vpop.eup %5468 }
 0x425   : > { %v5471_v12 = vpop.eup %5470  ;;  %v1780_v15 = vsel %vm1716_vm5, %v5469_v10, 0.0 }
 0x426   : > { %1781 = vadd.xlane.f32.xlu1 %v1780_v15  ;;  %v1783_v20 = vsel %vm1716_vm5, %v5471_v12, 0.0 }
 0x427   : > { %1784 = vadd.xlane.f32.xlu0 %v1783_v20 }
 0x428   : > { %v5473_v22 = vpop.eup %5472 }
 0x429   : > { %v1786_v23 = vsel %vm1716_vm5, %v5473_v22, 0.0 }
 0x42a   : > { %1787 = vadd.xlane.f32.xlu1 %v1786_v23 }
 0x4a3   : > { %v1767_v27 = vpop.xlane.xlu0 %1766 }
 0x4a4   : > { %5474 = vrcp.f32 %v1767_v27 }
 0x4a7   : > { %v1770_v28 = vpop.xlane.xlu1 %1769  ;;  %v1773_v29 = vpop.xlane.xlu0 %1772 }
 0x4a8   : > { %5476 = vrcp.f32 %v1770_v28 }
 0x4a9   : > { %5478 = vrcp.f32 %v1773_v29 }
 0x4ab   : > { %v1776_v31 = vpop.xlane.xlu1 %1775  ;;  %v1779_v32 = vpop.xlane.xlu0 %1778 }
 0x4ac   : > { %5480 = vrcp.f32 %v1776_v31 }
 0x4ad   : > { %5482 = vrcp.f32 %v1779_v32 }
 0x4af   : > { %v1782_v40 = vpop.xlane.xlu1 %1781 }
 0x4b0   : > { %5484 = vrcp.f32 %v1782_v40  ;;  %v1785_v44 = vpop.xlane.xlu0 %1784 }
 0x4b1   : > { %5486 = vrcp.f32 %v1785_v44  ;;  %v5475_v42 = vpop.eup %5474 }
 0x4b2   : > { %v1797_v55 = vmul.f32 %v5475_v42, %v5459_v0 }
 0x4b3   : > { %v1788_v48 = vpop.xlane.xlu1 %1787 }
 0x4b4   : > { %5488 = vrcp.f32 %v1788_v48 }
 0x4b5   : > { %v5477_v52 = vpop.eup %5476 }
 0x4b6   : > { %v1798_v58 = vmul.f32 %v5477_v52, %v5463_v3  ;;  %v5479_v39 = vpop.eup %5478  ;;  %v5437_v3 = vld [vmem:[%s7353_s10 + $0x10] sm:$0xff]   ;;  %v5439_v52 = vld [vmem:[%s7351_s8 + $0x20] sm:$0xff]  }
 0x4b7   : > { %v1799_v59 = vmul.f32 %v5479_v39, %v5461_v2 }
 0x4b8   : > { %v1805_v53 = vpack.c.bf16 %v1798_v58, %v1797_v55 }
 0x4b9   : > { %v5481_v56 = vpop.eup %5480 }
 0x4ba   : > { %v1800_v60 = vmul.f32 %v5481_v56, %v5465_v51  ;;  %4940 = vmatprep.mubr.msk.bf16.mxu0 %vm1716_vm5, %v1805_v53  ;;  %v5483_v9 = vpop.eup %5482 }
 0x4bb   : > { %v1801_v26 = vmul.f32 %v5483_v9, %v5467_v6 }
 0x4bc   : > { %v1806_v45 = vpack.c.bf16 %v1800_v60, %v1799_v59 }
 0x4bd   : > { %v5485_v50 = vpop.eup %5484 }
 0x4be   : > { %4941 = vmatmul.mubr.msk.bf16.vlgmr.msra.gmra.mxu0 %vm1716_vm5, %v1806_v45  ;;  %v1802_v61 = vmul.f32 %v5485_v50, %v5469_v10  ;;  %v5487_v62 = vpop.eup %5486 }
 0x4bf   : > { %4949 = vmatpush3.bf16.msra.mxu0 %v5434_v24  ;;  %v1803_v1 = vmul.f32 %v5487_v62, %v5471_v12  ;;  %v4536_v24 = vld [vmem:[%s7356_s1 + $0x1] ss:$0 sm:$0xff] }
 0x4c0   : > { %v1807_v63 = vpack.c.bf16 %v1802_v61, %v1801_v26  ;;  %4950 = vmatprep.subr.bf16.mxu0 %v5435_v18 }
 0x4c1   : > { %v5489_v0 = vpop.eup %5488 }
 0x4c2   : > { %4944 = vmatprep.mubr.msk.bf16.mxu0 %vm1716_vm5, %v1807_v63  ;;  %v1804_v47 = vmul.f32 %v5489_v0, %v5473_v22  ;;  %v4558_v63 = vld [vmem:[#allocation7 + $0x1] ss:$0 sm:$0xff] }
 0x4c3   : > { %4951 = vmatpush3.bf16.msra.mxu0 %v5435_v18 }
 0x4c4   : > { %v1808_v2 = vpack.c.bf16 %v1804_v47, %v1803_v1  ;;  %4972 = vmatprep.subr.bf16.mxu0 %v5436_v30 }
 0x4c6   : > { %4945 = vmatmul.mubr.msk.bf16.gmra.mxu0 %vm1716_vm5, %v1808_v2 }
 0x4c7   : > { %4952 = vmatprep.mubr.msk.bf16.mxu0 %vm1005_vm0, %v6378_v19 }
 0x4ce   : > { %4953 = vmatmul.mubr.msk.bf16.vlgmr.msra.gmra.mxu0 %vm1005_vm0, %v6382_v21 }
 0x4cf   : > { %4956 = vmatprep.mubr.msk.bf16.mxu0 %vm1005_vm0, %v6417_v37  ;;  %4973 = vmatpush3.bf16.msra.mxu0 %v5436_v30 }
 0x4d0   : > { %4974 = vmatprep.subr.bf16.mxu0 %v5437_v3 }
 0x4d3   : > { %4975 = vmatpush3.bf16.msra.mxu0 %v5437_v3 }
 0x4d6   : > { %4957 = vmatmul.mubr.msk.bf16.gmra.mxu0 %vm1005_vm0, %v6421_v38 }
 0x4d7   : > { %4976 = vmatprep.mubr.msk.bf16.mxu0 %vm1005_vm0, %v6378_v19 }
 0x4de   : > { %4977 = vmatmul.mubr.msk.bf16.vlgmr.msra.gmra.mxu0 %vm1005_vm0, %v6382_v21 }
 0x4df   : > { %4980 = vmatprep.mubr.msk.bf16.mxu0 %vm1005_vm0, %v6417_v37 }
 0x4e6   : > { %4981 = vmatmul.mubr.msk.bf16.gmra.mxu0 %vm1005_vm0, %v6421_v38 }
 0x57e   : > { %v6608_v57 = vpop.f32.mrf.mxu0 }
 0x580   : > { %v6610_v51 = vpop.f32.mrf.mxu0 }
 0x582   : > { %v6612_v6 = vpop.f32.mrf.mxu0 }
 0x584   : > { %v6614_v7 = vpop.f32.mrf.mxu0 }
 0x586   : > { %v6616_v43 = vpop.f32.mrf.mxu0 }
 0x588   : > { %v6618_v10 = vpop.f32.mrf.mxu0 }
 0x58a   : > { %v6620_v12 = vpop.f32.mrf.mxu0 }
 0x58c   : > { %v6622_v15 = vpop.f32.mrf.mxu0 }
 0x58e   : > { %v4954_v20 = vpop.f32.mrf.mxu0 }
 0x58f   : > { %v1958_v32 = vadd.f32 %v4954_v20, %v4536_v24 }
 0x590   : > { %v1949_v22 = vpop.f32.mrf.mxu0 }
 0x591   : > { %v1950_v29 = vadd.f32 %v4536_v24, %v1949_v22 }
 0x592   : > { %v4955_v23 = vpop.f32.mrf.mxu0 }
 0x593   : > { %v1961_v27 = vadd.f32 %v4955_v23, %v4536_v24 }
 0x594   : > { %v1952_v28 = vpop.f32.mrf.mxu0 }
 0x595   : > { %v1953_v31 = vadd.f32 %v4536_v24, %v1952_v28  ;;  %v2161_v42 = vpack.c.bf16 %v1961_v27, %v1958_v32 }
 0x596   : > { %v4958_v40 = vpop.f32.mrf.mxu0 }
 0x597   : > { %v2160_v44 = vpack.c.bf16 %v1953_v31, %v1950_v29  ;;  %v1974_v59 = vadd.f32 %v4958_v40, %v4536_v24 }
 0x598   : > { %v1965_v48 = vpop.f32.mrf.mxu0 }
 0x599   : > { %4992 = vmatprep.mubr.msk.bf16.mxu1 %vm1626_vm1, %v2160_v44  ;;  %v1966_v53 = vadd.f32 %v4536_v24, %v1965_v48 }
 0x59a   : > { %v4959_v55 = vpop.f32.mrf.mxu0  ;;  %4993 = vmatmul.mubr.msk.bf16.vlgmr.msra.gmra.mxu1 %vm1626_vm1, %v2161_v42 }
 0x59b   : > { %5029 = vmatpush3.bf16.msra.mxu1 %v5438_v4  ;;  %v1977_v58 = vadd.f32 %v4959_v55, %v4536_v24 }
 0x59c   : > { %v1968_v39 = vpop.f32.mrf.mxu0  ;;  %5030 = vmatprep.subr.bf16.mxu1 %v5439_v52 }
 0x59d   : > { %v1969_v56 = vadd.f32 %v4536_v24, %v1968_v39  ;;  %v2163_v45 = vpack.c.bf16 %v1977_v58, %v1974_v59 }
 0x59e   : > { %v4978_v60 = vpop.f32.mrf.mxu0 }
 0x59f   : > { %v2162_v9 = vpack.c.bf16 %v1969_v56, %v1966_v53  ;;  %5031 = vmatpush3.bf16.msra.mxu1 %v5439_v52  ;;  %v2138_v23 = vadd.f32 %v4978_v60, %v4558_v63 }
 0x5a0   : > { %v2129_v18 = vpop.f32.mrf.mxu0 }
 0x5a1   : > { %4996 = vmatprep.mubr.msk.bf16.mxu1 %vm1626_vm1, %v2162_v9  ;;  %v2130_v28 = vadd.f32 %v4558_v63, %v2129_v18 }
 0x5a2   : > { %v4979_v50 = vpop.f32.mrf.mxu0  ;;  %4997 = vmatmul.mubr.msk.bf16.gmra.mxu1 %vm1626_vm1, %v2163_v45 }
 0x5a3   : > { %5032 = vmatprep.mubr.msk.bf16.mxu1 %vm1005_vm0, %v6378_v19  ;;  %v2141_v20 = vadd.f32 %v4979_v50, %v4558_v63 }
 0x5a4   : > { %v2132_v26 = vpop.f32.mrf.mxu0 }
 0x5a5   : > { %v2350_v24 = vpack.c.bf16 %v2141_v20, %v2138_v23  ;;  %v2133_v27 = vadd.f32 %v4558_v63, %v2132_v26 }
 0x5a6   : > { %v4982_v61 = vpop.f32.mrf.mxu0 }
 0x5a7   : > { %v2154_v0 = vadd.f32 %v4982_v61, %v4558_v63  ;;  %v2349_v29 = vpack.c.bf16 %v2133_v27, %v2130_v28 }
 0x5a8   : > { %v2145_v62 = vpop.f32.mrf.mxu0 }
 0x5a9   : > { %v2146_v2 = vadd.f32 %v4558_v63, %v2145_v62 }
 0x5aa   : > { %v4983_v30 = vpop.f32.mrf.mxu0  ;;  %5033 = vmatmul.mubr.msk.bf16.vlgmr.msra.gmra.mxu1 %vm1005_vm0, %v6382_v21 }
 0x5ab   : > { %v2157_v1 = vadd.f32 %v4983_v30, %v4558_v63  ;;  %5036 = vmatprep.mubr.msk.bf16.mxu1 %vm1005_vm0, %v6417_v37 }
 0x5ac   : > { %v2148_v47 = vpop.f32.mrf.mxu0 }
 0x5ad   : > { %v2352_v3 = vpack.c.bf16 %v2157_v1, %v2154_v0  ;;  %v2149_v4 = vadd.f32 %v4558_v63, %v2148_v47 }
 0x5af   : > { %v2351_v22 = vpack.c.bf16 %v2149_v4, %v2146_v2  ;;  %5000 = vmatprep.subr.bf16.mxu0 %v2352_v3 }
 0x5b0   : > { %5001 = vmatpush3.bf16.msra.mxu0 %v2352_v3 }
 0x5b1   : > { %5002 = vmatprep.subr.bf16.mxu0 %v2351_v22 }
 0x5b2   : > { %5037 = vmatmul.mubr.msk.bf16.gmra.mxu1 %vm1005_vm0, %v6421_v38 }
 0x5b4   : > { %5003 = vmatpush3.bf16.msra.mxu0 %v2351_v22  ;;  %v4589_v22 = vld [vmem:[#allocation4 + $0x2] ss:$0 sm:$0xff] }
 0x5b5   : > { %5004 = vmatprep.subr.bf16.mxu0 %v2350_v24 }
 0x5b8   : > { %5005 = vmatpush3.bf16.msra.mxu0 %v2350_v24 }
 0x5b9   : > { %5006 = vmatprep.subr.bf16.mxu0 %v2349_v29 }
 0x5bc   : > { %5007 = vmatpush3.bf16.msra.mxu0 %v2349_v29 }
 0x65a   : > { %v4994_v31 = vpop.f32.mrf.mxu1 }
 0x65b   : > { %v6646_v42 = vadd.f32 %v4994_v31, %v6493_v5 }
 0x65c   : > { %v2226_v32 = vpop.f32.mrf.mxu1 }
 0x65d   : > { %v6643_v40 = vadd.f32 %v2226_v32, %v6495_v8  ;;  %v2263_v56 = vsel %vm1716_vm5, %v6646_v42, -inf }
 0x65e   : > { %v4995_v44 = vpop.f32.mrf.mxu1 }
 0x65f   : > { %v2257_v48 = vsel %vm1716_vm5, %v6643_v40, -inf  ;;  %v6654_v39 = vadd.f32 %v4995_v44, %v6500_v17 }
 0x660   : > { %v2229_v52 = vpop.f32.mrf.mxu1  ;;  %2258 = vmax.xlane.f32.xlu0 %v2257_v48 }
 0x661   : > { %v6651_v55 = vadd.f32 %v2229_v52, %v6507_v25  ;;  %v2266_v18 = vsel %vm1716_vm5, %v6654_v39, -inf }
 0x662   : > { %v4998_v58 = vpop.f32.mrf.mxu1 }
 0x663   : > { %v2260_v53 = vsel %vm1716_vm5, %v6651_v55, -inf  ;;  %v6664_v45 = vadd.f32 %v4998_v58, %v6523_v46 }
 0x664   : > { %v2242_v59 = vpop.f32.mrf.mxu1  ;;  %2261 = vmax.xlane.f32.xlu1 %v2260_v53  ;;  %2264 = vmax.xlane.f32.xlu0 %v2263_v56 }
 0x665   : > { %v6661_v60 = vadd.f32 %v2242_v59, %v6519_v41  ;;  %v2275_v0 = vsel %vm1716_vm5, %v6664_v45, -inf }
 0x666   : > { %v4999_v9 = vpop.f32.mrf.mxu1 }
 0x667   : > { %v2269_v50 = vsel %vm1716_vm5, %v6661_v60, -inf  ;;  %v6674_v63 = vadd.f32 %v4999_v9, %v6535_v54 }
 0x668   : > { %v2245_v26 = vpop.f32.mrf.mxu1  ;;  %2267 = vmax.xlane.f32.xlu1 %v2266_v18  ;;  %2270 = vmax.xlane.f32.xlu0 %v2269_v50 }
 0x669   : > { %v6671_v61 = vadd.f32 %v2245_v26, %v6528_v49  ;;  %v2278_v2 = vsel %vm1716_vm5, %v6674_v63, -inf }
 0x66a   : > { %v5034_v62 = vpop.f32.mrf.mxu1 }
 0x66b   : > { %v2272_v30 = vsel %vm1716_vm5, %v6671_v61, -inf  ;;  %v2588_v58 = vadd.f32 %v5034_v62, %v4589_v22 }
 0x66c   : > { %v2579_v1 = vpop.f32.mrf.mxu1  ;;  %2273 = vmax.xlane.f32.xlu1 %v2272_v30  ;;  %2276 = vmax.xlane.f32.xlu0 %v2275_v0 }
 0x66d   : > { %v2580_v9 = vadd.f32 %v4589_v22, %v2579_v1 }
 0x66e   : > { %v5035_v47 = vpop.f32.mrf.mxu1 }
 0x66f   : > { %v2591_v52 = vadd.f32 %v5035_v47, %v4589_v22 }
 0x670   : > { %v2582_v3 = vpop.f32.mrf.mxu1  ;;  %2279 = vmax.xlane.f32.xlu1 %v2278_v2 }
 0x671   : > { %v2705_v53 = vpack.c.bf16 %v2591_v52, %v2588_v58  ;;  %v2583_v59 = vadd.f32 %v4589_v22, %v2582_v3 }
 0x672   : > { %v5038_v4 = vpop.f32.mrf.mxu1 }
 0x673   : > { %v2604_v24 = vadd.f32 %v5038_v4, %v4589_v22  ;;  %v2704_v18 = vpack.c.bf16 %v2583_v59, %v2580_v9  ;;  %v2724_v50 = vsel %vm1626_vm1, %v2705_v53, 0 }
 0x674   : > { %v2595_v20 = vpop.f32.mrf.mxu1 }
 0x675   : > { %v2596_v29 = vadd.f32 %v4589_v22, %v2595_v20  ;;  %v2721_v26 = vsel %vm1626_vm1, %v2704_v18, 0 }
 0x676   : > { %v5039_v23 = vpop.f32.mrf.mxu1 }
 0x677   : > { %v2607_v27 = vadd.f32 %v5039_v23, %v4589_v22 }
 0x678   : > { %v2598_v28 = vpop.f32.mrf.mxu1 }
 0x679   : > { %v2707_v31 = vpack.c.bf16 %v2607_v27, %v2604_v24  ;;  %v2599_v32 = vadd.f32 %v4589_v22, %v2598_v28 }
 0x67b   : > { %v2706_v44 = vpack.c.bf16 %v2599_v32, %v2596_v29  ;;  %5204 = vmatprep.subr.msk.bf16.mxu1 %vm1626_vm1, %v2707_v31  ;;  %v2730_v48 = vsel %vm1626_vm1, %v2707_v31, 0 }
 0x67c   : > { %5053 = vmatpush3.bf16.xpose.msra.mxu1 %v2730_v48 }
 0x67d   : > { %5205 = vmatprep.subr.msk.bf16.mxu1 %vm1626_vm1, %v2706_v44  ;;  %v2727_v56 = vsel %vm1626_vm1, %v2706_v44, 0 }
 0x684   : > { %5055 = vmatpush3.bf16.xpose.msra.mxu1 %v2727_v56 }
 0x685   : > { %5206 = vmatprep.subr.msk.bf16.mxu1 %vm1626_vm1, %v2705_v53 }
 0x68c   : > { %5057 = vmatpush3.bf16.xpose.msra.mxu1 %v2724_v50 }
 0x68d   : > { %5207 = vmatprep.subr.msk.bf16.mxu1 %vm1626_vm1, %v2704_v18 }
 0x694   : > { %5059 = vmatpush3.bf16.xpose.msra.mxu1 %v2721_v26 }
 0x6e9   : > { %v2259_v30 = vpop.xlane.xlu0 %2258 }
 0x6ea   : > { %v2281_v62 = vsub.f32 %v6643_v40, %v2259_v30 }
 0x6ec   : > { %v2289_v0 = vmul.f32 1.442695, %v2281_v62 }
 0x6ed   : > { %v2262_v47 = vpop.xlane.xlu1 %2261  ;;  %v2265_v2 = vpop.xlane.xlu0 %2264 }
 0x6ee   : > { %5490 = vpow2.f32 %v2289_v0  ;;  %v2282_v4 = vsub.f32 %v6651_v55, %v2262_v47  ;;  %v2283_v1 = vsub.f32 %v6646_v42, %v2265_v2  ;;  %v5440_v2 = vld [vmem:[%s7352_s26 + $0x28] sm:$0xff]  }
 0x6ef   : > { %5016 = vmatprep.subr.bf16.mxu0 %v5440_v2 }
 0x6f0   : > { %v2291_v3 = vmul.f32 1.442695, %v2282_v4  ;;  %v2293_v20 = vmul.f32 1.442695, %v2283_v1 }
 0x6f1   : > { %v2268_v22 = vpop.xlane.xlu1 %2267  ;;  %v2271_v23 = vpop.xlane.xlu0 %2270 }
 0x6f2   : > { %5492 = vpow2.f32 %v2291_v3  ;;  %v2284_v24 = vsub.f32 %v6654_v39, %v2268_v22  ;;  %v2285_v27 = vsub.f32 %v6661_v60, %v2271_v23 }
 0x6f3   : > { %5494 = vpow2.f32 %v2293_v20 }
 0x6f4   : > { %v2295_v28 = vmul.f32 1.442695, %v2284_v24  ;;  %v2297_v40 = vmul.f32 1.442695, %v2285_v27 }
 0x6f5   : > { %v2274_v29 = vpop.xlane.xlu1 %2273  ;;  %v2277_v31 = vpop.xlane.xlu0 %2276 }
 0x6f6   : > { %5496 = vpow2.f32 %v2295_v28  ;;  %v2286_v32 = vsub.f32 %v6671_v61, %v2274_v29  ;;  %v2287_v55 = vsub.f32 %v6664_v45, %v2277_v31 }
 0x6f7   : > { %5498 = vpow2.f32 %v2297_v40 }
 0x6f8   : > { %v2299_v42 = vmul.f32 1.442695, %v2286_v32  ;;  %v2301_v44 = vmul.f32 1.442695, %v2287_v55 }
 0x6f9   : > { %v2280_v48 = vpop.xlane.xlu1 %2279 }
 0x6fa   : > { %5500 = vpow2.f32 %v2299_v42  ;;  %v2288_v52 = vsub.f32 %v6674_v63, %v2280_v48 }
 0x6fb   : > { %v5491_v39 = vpop.eup %5490  ;;  %5502 = vpow2.f32 %v2301_v44 }
 0x6fc   : > { %v2303_v60 = vmul.f32 1.442695, %v2288_v52  ;;  %v2305_v58 = vsel %vm1716_vm5, %v5491_v39, 0.0 }
 0x6fd   : > { %2306 = vadd.xlane.f32.xlu0 %v2305_v58  ;;  %v5441_v58 = vld [vmem:[%s7352_s26 + $0x20] sm:$0xff]  }
 0x6fe   : > { %5504 = vpow2.f32 %v2303_v60 }
 0x6ff   : > { %v5493_v53 = vpop.eup %5492 }
 0x700   : > { %v5495_v56 = vpop.eup %5494  ;;  %v2308_v61 = vsel %vm1716_vm5, %v5493_v53, 0.0 }
 0x701   : > { %2309 = vadd.xlane.f32.xlu1 %v2308_v61  ;;  %v2311_v45 = vsel %vm1716_vm5, %v5495_v56, 0.0 }
 0x702   : > { %2312 = vadd.xlane.f32.xlu0 %v2311_v45 }
 0x703   : > { %v5497_v59 = vpop.eup %5496 }
 0x704   : > { %v5499_v9 = vpop.eup %5498  ;;  %v2314_v18 = vsel %vm1716_vm5, %v5497_v59, 0.0 }
 0x705   : > { %2315 = vadd.xlane.f32.xlu1 %v2314_v18  ;;  %v2317_v63 = vsel %vm1716_vm5, %v5499_v9, 0.0 }
 0x706   : > { %2318 = vadd.xlane.f32.xlu0 %v2317_v63 }
 0x707   : > { %v5501_v50 = vpop.eup %5500 }
 0x708   : > { %v5503_v26 = vpop.eup %5502  ;;  %v2320_v30 = vsel %vm1716_vm5, %v5501_v50, 0.0 }
 0x709   : > { %2321 = vadd.xlane.f32.xlu1 %v2320_v30  ;;  %v2323_v62 = vsel %vm1716_vm5, %v5503_v26, 0.0 }
 0x70a   : > { %2324 = vadd.xlane.f32.xlu0 %v2323_v62 }
 0x70b   : > { %v5505_v0 = vpop.eup %5504 }
 0x70c   : > { %v2326_v47 = vsel %vm1716_vm5, %v5505_v0, 0.0 }
 0x70d   : > { %2327 = vadd.xlane.f32.xlu1 %v2326_v47 }
 0x786   : > { %v2307_v4 = vpop.xlane.xlu0 %2306 }
 0x787   : > { %5506 = vrcp.f32 %v2307_v4 }
 0x78a   : > { %v2310_v1 = vpop.xlane.xlu1 %2309 }
 0x78b   : > { %5508 = vrcp.f32 %v2310_v1  ;;  %v2313_v3 = vpop.xlane.xlu0 %2312 }
 0x78c   : > { %5510 = vrcp.f32 %v2313_v3 }
 0x78e   : > { %v2316_v20 = vpop.xlane.xlu1 %2315 }
 0x78f   : > { %5512 = vrcp.f32 %v2316_v20  ;;  %v2319_v22 = vpop.xlane.xlu0 %2318 }
 0x790   : > { %5514 = vrcp.f32 %v2319_v22 }
 0x792   : > { %v2322_v23 = vpop.xlane.xlu1 %2321 }
 0x793   : > { %5516 = vrcp.f32 %v2322_v23  ;;  %v2325_v24 = vpop.xlane.xlu0 %2324 }
 0x794   : > { %5518 = vrcp.f32 %v2325_v24  ;;  %v5507_v27 = vpop.eup %5506 }
 0x795   : > { %v2337_v29 = vmul.f32 %v5507_v27, %v5491_v39 }
 0x796   : > { %v2328_v28 = vpop.xlane.xlu1 %2327 }
 0x797   : > { %5520 = vrcp.f32 %v2328_v28 }
 0x798   : > { %v5509_v40 = vpop.eup %5508 }
 0x799   : > { %v2338_v31 = vmul.f32 %v5509_v40, %v5493_v53  ;;  %v5511_v32 = vpop.eup %5510 }
 0x79a   : > { %v2339_v44 = vmul.f32 %v5511_v32, %v5495_v56  ;;  %v5442_v56 = vld [vmem:[%s7353_s10 + $0x28] sm:$0xff]  }
 0x79b   : > { %v2345_v55 = vpack.c.bf16 %v2338_v31, %v2337_v29  ;;  %v4578_v31 = vld [vmem:[%s7356_s1 + $0x2] ss:$0 sm:$0xff] }
 0x79c   : > { %v5513_v42 = vpop.eup %5512 }
 0x79d   : > { %v2340_v48 = vmul.f32 %v5513_v42, %v5497_v59  ;;  %5008 = vmatprep.mubr.msk.bf16.mxu0 %vm1716_vm5, %v2345_v55  ;;  %v5515_v52 = vpop.eup %5514 }
 0x79e   : > { %v2341_v45 = vmul.f32 %v5515_v52, %v5499_v9  ;;  %v5443_v9 = vld [vmem:[%s7353_s10 + $0x20] sm:$0xff]  }
 0x79f   : > { %v2346_v60 = vpack.c.bf16 %v2340_v48, %v2339_v44 }
 0x7a0   : > { %v5517_v61 = vpop.eup %5516 }
 0x7a1   : > { %5009 = vmatmul.mubr.msk.bf16.vlgmr.msra.gmra.mxu0 %vm1716_vm5, %v2346_v60  ;;  %v2342_v18 = vmul.f32 %v5517_v61, %v5501_v50  ;;  %v5519_v39 = vpop.eup %5518  ;;  %v5444_v50 = vld [vmem:[%s7351_s8 + $0x38] sm:$0xff]  }
 0x7a2   : > { %5017 = vmatpush3.bf16.msra.mxu0 %v5440_v2  ;;  %v2343_v63 = vmul.f32 %v5519_v39, %v5503_v26  ;;  %5096 = vmatprep.subr.bf16.mxu1 %v5444_v50 }
 0x7a3   : > { %v2347_v53 = vpack.c.bf16 %v2342_v18, %v2341_v45  ;;  %5018 = vmatprep.subr.bf16.mxu0 %v5441_v58  ;;  %v5445_v45 = vld [vmem:[%s7351_s8 + $0x30] sm:$0xff]   ;;  %s5982_s8 = smov [#allocation21]  }
 0x7a4   : > { %v5521_v59 = vpop.eup %5520 }
 0x7a5   : > { %5012 = vmatprep.mubr.msk.bf16.mxu0 %vm1716_vm5, %v2347_v53  ;;  %v2344_v30 = vmul.f32 %v5521_v59, %v5505_v0 }
 0x7a6   : > { %5019 = vmatpush3.bf16.msra.mxu0 %v5441_v58 }
 0x7a7   : > { %v2348_v62 = vpack.c.bf16 %v2344_v30, %v2343_v63  ;;  %5040 = vmatprep.subr.bf16.mxu0 %v5442_v56 }
 0x7a9   : > { %5013 = vmatmul.mubr.msk.bf16.gmra.mxu0 %vm1716_vm5, %v2348_v62 }
 0x7aa   : > { %5020 = vmatprep.mubr.msk.bf16.mxu0 %vm1005_vm0, %v6378_v19 }
 0x7b1   : > { %5021 = vmatmul.mubr.msk.bf16.vlgmr.msra.gmra.mxu0 %vm1005_vm0, %v6382_v21 }
 0x7b2   : > { %5024 = vmatprep.mubr.msk.bf16.mxu0 %vm1005_vm0, %v6417_v37  ;;  %5041 = vmatpush3.bf16.msra.mxu0 %v5442_v56 }
 0x7b3   : > { %5042 = vmatprep.subr.bf16.mxu0 %v5443_v9 }
 0x7b6   : > { %5043 = vmatpush3.bf16.msra.mxu0 %v5443_v9 }
 0x7b9   : > { %5025 = vmatmul.mubr.msk.bf16.gmra.mxu0 %vm1005_vm0, %v6421_v38 }
 0x7ba   : > { %5044 = vmatprep.mubr.msk.bf16.mxu0 %vm1005_vm0, %v6378_v19 }
 0x7c1   : > { %5045 = vmatmul.mubr.msk.bf16.vlgmr.msra.gmra.mxu0 %vm1005_vm0, %v6382_v21 }
 0x7c2   : > { %5048 = vmatprep.mubr.msk.bf16.mxu0 %vm1005_vm0, %v6417_v37 }
 0x7c9   : > { %5049 = vmatmul.mubr.msk.bf16.gmra.mxu0 %vm1005_vm0, %v6421_v38 }
 0x861   : > { %v6741_v26 = vpop.f32.mrf.mxu0 }
 0x863   : > { %v6743_v0 = vpop.f32.mrf.mxu0 }
 0x865   : > { %v6745_v47 = vpop.f32.mrf.mxu0 }
 0x867   : > { %v6749_v4 = vpop.f32.mrf.mxu0 }
 0x869   : > { %v6753_v3 = vpop.f32.mrf.mxu0 }
 0x86b   : > { %v6755_v20 = vpop.f32.mrf.mxu0 }
 0x86d   : > { %v6757_v22 = vpop.f32.mrf.mxu0 }
 0x86f   : > { %v6761_v24 = vpop.f32.mrf.mxu0 }
 0x871   : > { %v5022_v28 = vpop.f32.mrf.mxu0 }
 0x872   : > { %v2498_v48 = vadd.f32 %v5022_v28, %v4578_v31 }
 0x873   : > { %v2489_v40 = vpop.f32.mrf.mxu0 }
 0x874   : > { %v2490_v42 = vadd.f32 %v4578_v31, %v2489_v40 }
 0x875   : > { %v5023_v29 = vpop.f32.mrf.mxu0 }
 0x876   : > { %v2501_v32 = vadd.f32 %v5023_v29, %v4578_v31 }
 0x877   : > { %v2492_v55 = vpop.f32.mrf.mxu0 }
 0x878   : > { %v2493_v44 = vadd.f32 %v4578_v31, %v2492_v55  ;;  %v2701_v58 = vpack.c.bf16 %v2501_v32, %v2498_v48  ;;  %v4600_v55 = vld [vmem:[#allocation7 + $0x2] ss:$0 sm:$0xff] }
 0x879   : > { %v5026_v52 = vpop.f32.mrf.mxu0 }
 0x87a   : > { %v2700_v60 = vpack.c.bf16 %v2493_v44, %v2490_v42  ;;  %v2514_v63 = vadd.f32 %v5026_v52, %v4578_v31 }
 0x87b   : > { %v2505_v61 = vpop.f32.mrf.mxu0 }
 0x87c   : > { %5060 = vmatprep.mubr.msk.bf16.mxu1 %vm1626_vm1, %v2700_v60  ;;  %v2506_v56 = vadd.f32 %v4578_v31, %v2505_v61 }
 0x87d   : > { %v5027_v18 = vpop.f32.mrf.mxu0  ;;  %5061 = vmatmul.mubr.msk.bf16.vlgmr.msra.gmra.mxu1 %vm1626_vm1, %v2701_v58 }
 0x87e   : > { %5097 = vmatpush3.bf16.msra.mxu1 %v5444_v50  ;;  %v2517_v39 = vadd.f32 %v5027_v18, %v4578_v31 }
 0x87f   : > { %v2508_v53 = vpop.f32.mrf.mxu0  ;;  %5098 = vmatprep.subr.bf16.mxu1 %v5445_v45 }
 0x880   : > { %v2509_v59 = vadd.f32 %v4578_v31, %v2508_v53  ;;  %v2703_v9 = vpack.c.bf16 %v2517_v39, %v2514_v63 }
 0x881   : > { %v5046_v30 = vpop.f32.mrf.mxu0 }
 0x882   : > { %v2702_v62 = vpack.c.bf16 %v2509_v59, %v2506_v56  ;;  %5099 = vmatpush3.bf16.msra.mxu1 %v5445_v45  ;;  %v2678_v18 = vadd.f32 %v5046_v30, %v4600_v55 }
 0x883   : > { %v2669_v28 = vpop.f32.mrf.mxu0 }
 0x884   : > { %5064 = vmatprep.mubr.msk.bf16.mxu1 %vm1626_vm1, %v2702_v62  ;;  %v2670_v56 = vadd.f32 %v4600_v55, %v2669_v28 }
 0x885   : > { %v5047_v40 = vpop.f32.mrf.mxu0  ;;  %5065 = vmatmul.mubr.msk.bf16.gmra.mxu1 %vm1626_vm1, %v2703_v9 }
 0x886   : > { %5100 = vmatprep.mubr.msk.bf16.mxu1 %vm1005_vm0, %v6378_v19  ;;  %v2681_v61 = vadd.f32 %v5047_v40, %v4600_v55 }
 0x887   : > { %v2672_v50 = vpop.f32.mrf.mxu0 }
 0x888   : > { %v2890_v39 = vpack.c.bf16 %v2681_v61, %v2678_v18  ;;  %v2673_v53 = vadd.f32 %v4600_v55, %v2672_v50 }
 0x889   : > { %v5050_v29 = vpop.f32.mrf.mxu0 }
 0x88a   : > { %v2694_v31 = vadd.f32 %v5050_v29, %v4600_v55  ;;  %v2889_v59 = vpack.c.bf16 %v2673_v53, %v2670_v56 }
 0x88b   : > { %v2685_v32 = vpop.f32.mrf.mxu0 }
 0x88c   : > { %v2686_v52 = vadd.f32 %v4600_v55, %v2685_v32 }
 0x88d   : > { %v5051_v42 = vpop.f32.mrf.mxu0  ;;  %5101 = vmatmul.mubr.msk.bf16.vlgmr.msra.gmra.mxu1 %vm1005_vm0, %v6382_v21 }
 0x88e   : > { %v2697_v44 = vadd.f32 %v5051_v42, %v4600_v55  ;;  %5104 = vmatprep.mubr.msk.bf16.mxu1 %vm1005_vm0, %v6417_v37 }
 0x88f   : > { %v2688_v48 = vpop.f32.mrf.mxu0 }
 0x890   : > { %v2892_v60 = vpack.c.bf16 %v2697_v44, %v2694_v31  ;;  %v2689_v58 = vadd.f32 %v4600_v55, %v2688_v48 }
 0x892   : > { %v2891_v45 = vpack.c.bf16 %v2689_v58, %v2686_v52  ;;  %5068 = vmatprep.subr.bf16.mxu0 %v2892_v60 }
 0x893   : > { %5069 = vmatpush3.bf16.msra.mxu0 %v2892_v60 }
 0x894   : > { %5070 = vmatprep.subr.bf16.mxu0 %v2891_v45 }
 0x895   : > { %5105 = vmatmul.mubr.msk.bf16.gmra.mxu1 %vm1005_vm0, %v6421_v38 }
 0x897   : > { %5071 = vmatpush3.bf16.msra.mxu0 %v2891_v45 }
 0x898   : > { %5072 = vmatprep.subr.bf16.mxu0 %v2890_v39 }
 0x89b   : > { %5073 = vmatpush3.bf16.msra.mxu0 %v2890_v39 }
 0x89c   : > { %5074 = vmatprep.subr.bf16.mxu0 %v2889_v59 }
 0x89f   : > { %5075 = vmatpush3.bf16.msra.mxu0 %v2889_v59 }
 0x93d   : > { %v5062_v63 = vpop.f32.mrf.mxu1 }
 0x93e   : > { %v6787_v30 = vadd.f32 %v5062_v63, %v6493_v5 }
 0x93f   : > { %v2766_v62 = vpop.f32.mrf.mxu1 }
 0x940   : > { %v6784_v9 = vadd.f32 %v2766_v62, %v6495_v8  ;;  %v2803_v31 = vsel %vm1716_vm5, %v6787_v30, -inf }
 0x941   : > { %v5063_v40 = vpop.f32.mrf.mxu1 }
 0x942   : > { %v2797_v29 = vsel %vm1716_vm5, %v6784_v9, -inf  ;;  %v6795_v55 = vadd.f32 %v5063_v40, %v6500_v17 }
 0x943   : > { %v2769_v50 = vpop.f32.mrf.mxu1  ;;  %2798 = vmax.xlane.f32.xlu0 %v2797_v29 }
 0x944   : > { %v6792_v28 = vadd.f32 %v2769_v50, %v6507_v25  ;;  %v2806_v58 = vsel %vm1716_vm5, %v6795_v55, -inf }
 0x945   : > { %v5066_v32 = vpop.f32.mrf.mxu1 }
 0x946   : > { %v2800_v42 = vsel %vm1716_vm5, %v6792_v28, -inf  ;;  %v6805_v60 = vadd.f32 %v5066_v32, %v6523_v46 }
 0x947   : > { %v2782_v44 = vpop.f32.mrf.mxu1  ;;  %2801 = vmax.xlane.f32.xlu1 %v2800_v42  ;;  %2804 = vmax.xlane.f32.xlu0 %v2803_v31  ;;  %v4631_v42 = vld [vmem:[#allocation4 + $0x3] ss:$0 sm:$0xff] }
 0x948   : > { %v6802_v48 = vadd.f32 %v2782_v44, %v6519_v41  ;;  %v2815_v59 = vsel %vm1716_vm5, %v6805_v60, -inf }
 0x949   : > { %v5067_v52 = vpop.f32.mrf.mxu1 }
 0x94a   : > { %v2809_v61 = vsel %vm1716_vm5, %v6802_v48, -inf  ;;  %v6815_v53 = vadd.f32 %v5067_v52, %v6535_v54 }
 0x94b   : > { %v2785_v45 = vpop.f32.mrf.mxu1  ;;  %2807 = vmax.xlane.f32.xlu1 %v2806_v58  ;;  %2810 = vmax.xlane.f32.xlu0 %v2809_v61 }
 0x94c   : > { %v6812_v18 = vadd.f32 %v2785_v45, %v6528_v49  ;;  %v2818_v40 = vsel %vm1716_vm5, %v6815_v53, -inf }
 0x94d   : > { %v5102_v39 = vpop.f32.mrf.mxu1 }
 0x94e   : > { %v2812_v56 = vsel %vm1716_vm5, %v6812_v18, -inf }
 0x94f   : > { %v3119_v63 = vpop.f32.mrf.mxu1  ;;  %2813 = vmax.xlane.f32.xlu1 %v2812_v56  ;;  %2816 = vmax.xlane.f32.xlu0 %v2815_v59 }
 0x951   : > { %v5103_v62 = vpop.f32.mrf.mxu1 }
 0x952   : > { %v3131_v59 = vadd.f32 %v5103_v62, %v4631_v42 }
 0x953   : > { %v3122_v29 = vpop.f32.mrf.mxu1  ;;  %2819 = vmax.xlane.f32.xlu1 %v2818_v40  ;;  %v3128_v40 = vadd.f32 %v5102_v39, %v4631_v42 }
 0x955   : > { %v5106_v50 = vpop.f32.mrf.mxu1  ;;  %v3245_v1 = vpack.c.bf16 %v3131_v59, %v3128_v40 }
 0x956   : > { %v3144_v44 = vadd.f32 %v5106_v50, %v4631_v42  ;;  %v3123_v50 = vadd.f32 %v4631_v42, %v3122_v29 }
 0x957   : > { %v3135_v32 = vpop.f32.mrf.mxu1 }
 0x958   : > { %v3136_v61 = vadd.f32 %v4631_v42, %v3135_v32  ;;  %v3120_v32 = vadd.f32 %v4631_v42, %v3119_v63 }
 0x959   : > { %v5107_v31 = vpop.f32.mrf.mxu1 }
 0x95a   : > { %v3147_v52 = vadd.f32 %v5107_v31, %v4631_v42  ;;  %v3244_v31 = vpack.c.bf16 %v3123_v50, %v3120_v32 }
 0x95b   : > { %v3138_v58 = vpop.f32.mrf.mxu1 }
 0x95c   : > { %v3247_v45 = vpack.c.bf16 %v3147_v52, %v3144_v44  ;;  %v3139_v23 = vadd.f32 %v4631_v42, %v3138_v58  ;;  %v3261_v44 = vsel %vm1626_vm1, %v3244_v31, 0 }
 0x95e   : > { %v3246_v27 = vpack.c.bf16 %v3139_v23, %v3136_v61  ;;  %5208 = vmatprep.subr.msk.bf16.mxu1 %vm1626_vm1, %v3247_v45  ;;  %v3270_v56 = vsel %vm1626_vm1, %v3247_v45, 0  ;;  %v3264_v23 = vsel %vm1626_vm1, %v3245_v1, 0 }
 0x95f   : > { %5121 = vmatpush3.bf16.xpose.msra.mxu1 %v3270_v56 }
 0x960   : > { %5209 = vmatprep.subr.msk.bf16.mxu1 %vm1626_vm1, %v3246_v27  ;;  %v3267_v2 = vsel %vm1626_vm1, %v3246_v27, 0 }
 0x967   : > { %5123 = vmatpush3.bf16.xpose.msra.mxu1 %v3267_v2 }
 0x968   : > { %5210 = vmatprep.subr.msk.bf16.mxu1 %vm1626_vm1, %v3245_v1 }
 0x96f   : > { %5125 = vmatpush3.bf16.xpose.msra.mxu1 %v3264_v23 }
 0x970   : > { %5211 = vmatprep.subr.msk.bf16.mxu1 %vm1626_vm1, %v3244_v31 }
 0x977   : > { %5127 = vmatpush3.bf16.xpose.msra.mxu1 %v3261_v44 }
 0x9cc   : > { %v2799_v52 = vpop.xlane.xlu0 %2798 }
 0x9cd   : > { %v2821_v39 = vsub.f32 %v6784_v9, %v2799_v52 }
 0x9cf   : > { %v2829_v62 = vmul.f32 1.442695, %v2821_v39 }
 0x9d0   : > { %v2802_v58 = vpop.xlane.xlu1 %2801  ;;  %v2805_v27 = vpop.xlane.xlu0 %2804 }
 0x9d1   : > { %5522 = vpow2.f32 %v2829_v62  ;;  %v2822_v2 = vsub.f32 %v6792_v28, %v2802_v58  ;;  %v2823_v63 = vsub.f32 %v6787_v30, %v2805_v27 }
 0x9d3   : > { %v2831_v29 = vmul.f32 1.442695, %v2822_v2  ;;  %v2833_v42 = vmul.f32 1.442695, %v2823_v63 }
 0x9d4   : > { %v2808_v1 = vpop.xlane.xlu1 %2807  ;;  %v2811_v61 = vpop.xlane.xlu0 %2810 }
 0x9d5   : > { %5524 = vpow2.f32 %v2831_v29  ;;  %v2824_v45 = vsub.f32 %v6795_v55, %v2808_v1  ;;  %v2825_v56 = vsub.f32 %v6802_v48, %v2811_v61 }
 0x9d6   : > { %5526 = vpow2.f32 %v2833_v42 }
 0x9d7   : > { %v2835_v59 = vmul.f32 1.442695, %v2824_v45  ;;  %v2837_v9 = vmul.f32 1.442695, %v2825_v56  ;;  %v5446_v56 = vld [vmem:[%s7352_s26 + $0x38] sm:$0xff]  }
 0x9d8   : > { %v2814_v40 = vpop.xlane.xlu1 %2813  ;;  %v2817_v50 = vpop.xlane.xlu0 %2816  ;;  %5084 = vmatprep.subr.bf16.mxu0 %v5446_v56 }
 0x9d9   : > { %5528 = vpow2.f32 %v2835_v59  ;;  %v2826_v32 = vsub.f32 %v6812_v18, %v2814_v40  ;;  %v2827_v28 = vsub.f32 %v6805_v60, %v2817_v50 }
 0x9da   : > { %5530 = vpow2.f32 %v2837_v9 }
 0x9db   : > { %v2839_v30 = vmul.f32 1.442695, %v2826_v32  ;;  %v2841_v31 = vmul.f32 1.442695, %v2827_v28 }
 0x9dc   : > { %v2820_v23 = vpop.xlane.xlu1 %2819 }
 0x9dd   : > { %5532 = vpow2.f32 %v2839_v30  ;;  %v2828_v44 = vsub.f32 %v6815_v53, %v2820_v23 }
 0x9de   : > { %v5523_v55 = vpop.eup %5522  ;;  %5534 = vpow2.f32 %v2841_v31 }
 0x9df   : > { %v2843_v48 = vmul.f32 1.442695, %v2828_v44  ;;  %v2845_v52 = vsel %vm1716_vm5, %v5523_v55, 0.0 }
 0x9e0   : > { %2846 = vadd.xlane.f32.xlu0 %v2845_v52 }
 0x9e1   : > { %5536 = vpow2.f32 %v2843_v48 }
 0x9e2   : > { %v5525_v39 = vpop.eup %5524 }
 0x9e3   : > { %v5527_v62 = vpop.eup %5526  ;;  %v2848_v18 = vsel %vm1716_vm5, %v5525_v39, 0.0 }
 0x9e4   : > { %2849 = vadd.xlane.f32.xlu1 %v2848_v18  ;;  %v2851_v60 = vsel %vm1716_vm5, %v5527_v62, 0.0 }
 0x9e5   : > { %2852 = vadd.xlane.f32.xlu0 %v2851_v60 }
 0x9e6   : > { %v5529_v58 = vpop.eup %5528 }
 0x9e7   : > { %v5531_v27 = vpop.eup %5530  ;;  %v2854_v2 = vsel %vm1716_vm5, %v5529_v58, 0.0 }
 0x9e8   : > { %2855 = vadd.xlane.f32.xlu1 %v2854_v2  ;;  %v2857_v53 = vsel %vm1716_vm5, %v5531_v27, 0.0 }
 0x9e9   : > { %2858 = vadd.xlane.f32.xlu0 %v2857_v53 }
 0x9ea   : > { %v5533_v63 = vpop.eup %5532 }
 0x9eb   : > { %v5535_v29 = vpop.eup %5534  ;;  %v2860_v42 = vsel %vm1716_vm5, %v5533_v63, 0.0 }
 0x9ec   : > { %2861 = vadd.xlane.f32.xlu1 %v2860_v42  ;;  %v2863_v1 = vsel %vm1716_vm5, %v5535_v29, 0.0 }
 0x9ed   : > { %2864 = vadd.xlane.f32.xlu0 %v2863_v1 }
 0x9ee   : > { %v5537_v61 = vpop.eup %5536 }
 0x9ef   : > { %v2866_v45 = vsel %vm1716_vm5, %v5537_v61, 0.0 }
 0x9f0   : > { %2867 = vadd.xlane.f32.xlu1 %v2866_v45 }
 0xa69   : > { %v2847_v59 = vpop.xlane.xlu0 %2846 }
 0xa6a   : > { %5538 = vrcp.f32 %v2847_v59  ;;  %v5447_v59 = vld [vmem:[%s7352_s26 + $0x30] sm:$0xff]  }
 0xa6d   : > { %v2850_v9 = vpop.xlane.xlu1 %2849 }
 0xa6e   : > { %5540 = vrcp.f32 %v2850_v9  ;;  %v2853_v40 = vpop.xlane.xlu0 %2852 }
 0xa6f   : > { %5542 = vrcp.f32 %v2853_v40 }
 0xa71   : > { %v2856_v50 = vpop.xlane.xlu1 %2855 }
 0xa72   : > { %5544 = vrcp.f32 %v2856_v50  ;;  %v2859_v32 = vpop.xlane.xlu0 %2858 }
 0xa73   : > { %5546 = vrcp.f32 %v2859_v32 }
 0xa75   : > { %v2862_v28 = vpop.xlane.xlu1 %2861 }
 0xa76   : > { %5548 = vrcp.f32 %v2862_v28  ;;  %v2865_v30 = vpop.xlane.xlu0 %2864 }
 0xa77   : > { %5550 = vrcp.f32 %v2865_v30  ;;  %v5539_v31 = vpop.eup %5538 }
 0xa78   : > { %v2877_v48 = vmul.f32 %v5539_v31, %v5523_v55 }
 0xa79   : > { %v2868_v23 = vpop.xlane.xlu1 %2867 }
 0xa7a   : > { %5552 = vrcp.f32 %v2868_v23 }
 0xa7b   : > { %v5541_v44 = vpop.eup %5540 }
 0xa7c   : > { %v2878_v52 = vmul.f32 %v5541_v44, %v5525_v39  ;;  %v5543_v18 = vpop.eup %5542 }
 0xa7d   : > { %v2879_v53 = vmul.f32 %v5543_v18, %v5527_v62  ;;  %v5448_v62 = vld [vmem:[%s7353_s10 + $0x38] sm:$0xff]  }
 0xa7e   : > { %v2885_v60 = vpack.c.bf16 %v2878_v52, %v2877_v48 }
 0xa7f   : > { %v5545_v2 = vpop.eup %5544 }
 0xa80   : > { %v2880_v42 = vmul.f32 %v5545_v2, %v5529_v58  ;;  %5076 = vmatprep.mubr.msk.bf16.mxu0 %vm1716_vm5, %v2885_v60  ;;  %v5547_v1 = vpop.eup %5546  ;;  %v4620_v2 = vld [vmem:[%s7356_s1 + $0x3] ss:$0 sm:$0xff]  ;;  %s7214_s1 = scalar_lea.sflag [#allocation6], %s7366_s4 }
 0xa81   : > { %v2881_v40 = vmul.f32 %v5547_v1, %v5531_v27  ;;  %v5449_v27 = vld [vmem:[%s7353_s10 + $0x30] sm:$0xff]  }
 0xa82   : > { %v2886_v45 = vpack.c.bf16 %v2880_v42, %v2879_v53 }
 0xa83   : > { %v5549_v9 = vpop.eup %5548 }
 0xa84   : > { %5077 = vmatmul.mubr.msk.bf16.vlgmr.msra.gmra.mxu0 %vm1716_vm5, %v2886_v45  ;;  %v2882_v50 = vmul.f32 %v5549_v9, %v5533_v63  ;;  %v5551_v55 = vpop.eup %5550 }
 0xa85   : > { %5085 = vmatpush3.bf16.msra.mxu0 %v5446_v56  ;;  %v2883_v32 = vmul.f32 %v5551_v55, %v5535_v29 }
 0xa86   : > { %v2887_v39 = vpack.c.bf16 %v2882_v50, %v2881_v40  ;;  %5086 = vmatprep.subr.bf16.mxu0 %v5447_v59 }
 0xa87   : > { %v5553_v58 = vpop.eup %5552 }
 0xa88   : > { %5080 = vmatprep.mubr.msk.bf16.mxu0 %vm1716_vm5, %v2887_v39  ;;  %v2884_v28 = vmul.f32 %v5553_v58, %v5537_v61 }
 0xa89   : > { %5087 = vmatpush3.bf16.msra.mxu0 %v5447_v59 }
 0xa8a   : > { %v2888_v30 = vpack.c.bf16 %v2884_v28, %v2883_v32  ;;  %5108 = vmatprep.subr.bf16.mxu0 %v5448_v62 }
 0xa8c   : > { %5081 = vmatmul.mubr.msk.bf16.gmra.mxu0 %vm1716_vm5, %v2888_v30 }
 0xa8d   : > { %5088 = vmatprep.mubr.msk.bf16.mxu0 %vm1005_vm0, %v6378_v19 }
 0xa94   : > { %5089 = vmatmul.mubr.msk.bf16.vlgmr.msra.gmra.mxu0 %vm1005_vm0, %v6382_v21 }
 0xa95   : > { %5092 = vmatprep.mubr.msk.bf16.mxu0 %vm1005_vm0, %v6417_v37  ;;  %5109 = vmatpush3.bf16.msra.mxu0 %v5448_v62 }
 0xa96   : > { %5110 = vmatprep.subr.bf16.mxu0 %v5449_v27 }
 0xa99   : > { %5111 = vmatpush3.bf16.msra.mxu0 %v5449_v27 }
 0xa9c   : > { %5093 = vmatmul.mubr.msk.bf16.gmra.mxu0 %vm1005_vm0, %v6421_v38 }
 0xa9d   : > { %5112 = vmatprep.mubr.msk.bf16.mxu0 %vm1005_vm0, %v6378_v19 }
 0xaa4   : > { %5113 = vmatmul.mubr.msk.bf16.vlgmr.msra.gmra.mxu0 %vm1005_vm0, %v6382_v21 }
 0xaa5   : > { %5116 = vmatprep.mubr.msk.bf16.mxu0 %vm1005_vm0, %v6417_v37 }
 0xaac   : > { %5117 = vmatmul.mubr.msk.bf16.gmra.mxu0 %vm1005_vm0, %v6421_v38 }
 0xb44   : > { %v6879_v63 = vpop.f32.mrf.mxu0 }
 0xb46   : > { %v6881_v29 = vpop.f32.mrf.mxu0 }
 0xb48   : > { %v6883_v61 = vpop.f32.mrf.mxu0 }
 0xb49   : > { %v5377_v56 = vpack.i.bf16 %v6883_v61, %v6879_v63 }
 0xb4a   : > { %v6887_v31 = vpop.f32.mrf.mxu0 }
 0xb4b   : > { %v5372_v19 = vpack.i.bf16 %v6887_v31, %v6881_v29 }
 0xb4c   : > { %v6891_v21 = vpop.f32.mrf.mxu0 }
 0xb4e   : > { %v6893_v37 = vpop.f32.mrf.mxu0 }
 0xb50   : > { %v6895_v23 = vpop.f32.mrf.mxu0 }
 0xb51   : > { %v5407_v38 = vpack.i.bf16 %v6895_v23, %v6891_v21 }
 0xb52   : > { %v6899_v44 = vpop.f32.mrf.mxu0 }
 0xb54   : > { %v5090_v52 = vpop.f32.mrf.mxu0 }
 0xb55   : > { %v3038_v59 = vadd.f32 %v5090_v52, %v4620_v2 }
 0xb56   : > { %v3029_v18 = vpop.f32.mrf.mxu0 }
 0xb57   : > { %v3030_v1 = vadd.f32 %v4620_v2, %v3029_v18 }
 0xb58   : > { %v5091_v60 = vpop.f32.mrf.mxu0 }
 0xb59   : > { %v3041_v53 = vadd.f32 %v5091_v60, %v4620_v2 }
 0xb5a   : > { %v3032_v42 = vpop.f32.mrf.mxu0 }
 0xb5b   : > { %v3033_v45 = vadd.f32 %v4620_v2, %v3032_v42  ;;  %v3241_v50 = vpack.c.bf16 %v3041_v53, %v3038_v59 }
 0xb5c   : > { %v5094_v9 = vpop.f32.mrf.mxu0 }
 0xb5d   : > { %v3240_v40 = vpack.c.bf16 %v3033_v45, %v3030_v1  ;;  %v3054_v30 = vadd.f32 %v5094_v9, %v4620_v2  ;;  %v4642_v45 = vld [vmem:[#allocation7 + $0x3] ss:$0 sm:$0xff] }
 0xb5e   : > { %v3045_v55 = vpop.f32.mrf.mxu0 }
 0xb5f   : > { %5128 = vmatprep.mubr.msk.bf16.mxu1 %vm1626_vm1, %v3240_v40  ;;  %v3046_v32 = vadd.f32 %v4620_v2, %v3045_v55 }
 0xb60   : > { %v5095_v39 = vpop.f32.mrf.mxu0  ;;  %5129 = vmatmul.mubr.msk.bf16.vlgmr.msra.gmra.mxu1 %vm1626_vm1, %v3241_v50 }
 0xb61   : > { %v3057_v62 = vadd.f32 %v5095_v39, %v4620_v2 }
 0xb62   : > { %v3048_v58 = vpop.f32.mrf.mxu0 }
 0xb63   : > { %v3049_v28 = vadd.f32 %v4620_v2, %v3048_v58  ;;  %v3243_v48 = vpack.c.bf16 %v3057_v62, %v3054_v30 }
 0xb64   : > { %v5114_v27 = vpop.f32.mrf.mxu0 }
 0xb65   : > { %v3242_v60 = vpack.c.bf16 %v3049_v28, %v3046_v32  ;;  %v3218_v62 = vadd.f32 %v5114_v27, %v4642_v45 }
 0xb66   : > { %v3209_v18 = vpop.f32.mrf.mxu0 }
 0xb67   : > { %5132 = vmatprep.mubr.msk.bf16.mxu1 %vm1626_vm1, %v3242_v60 }
 0xb68   : > { %v5115_v52 = vpop.f32.mrf.mxu0  ;;  %5133 = vmatmul.mubr.msk.bf16.gmra.mxu1 %vm1626_vm1, %v3243_v48  ;;  %v3210_v48 = vadd.f32 %v4642_v45, %v3209_v18 }
 0xb69   : > { %v3221_v9 = vadd.f32 %v5115_v52, %v4642_v45 }
 0xb6a   : > { %v3212_v53 = vpop.f32.mrf.mxu0 }
 0xb6b   : > { %v3430_v28 = vpack.c.bf16 %v3221_v9, %v3218_v62  ;;  %v3213_v30 = vadd.f32 %v4642_v45, %v3212_v53 }
 0xb6c   : > { %v5118_v42 = vpop.f32.mrf.mxu0 }
 0xb6d   : > { %v3234_v40 = vadd.f32 %v5118_v42, %v4642_v45  ;;  %v3429_v60 = vpack.c.bf16 %v3213_v30, %v3210_v48 }
 0xb6e   : > { %v3225_v1 = vpop.f32.mrf.mxu0 }
 0xb6f   : > { %v3226_v55 = vadd.f32 %v4642_v45, %v3225_v1 }
 0xb70   : > { %v5119_v59 = vpop.f32.mrf.mxu0 }
 0xb71   : > { %v3237_v50 = vadd.f32 %v5119_v59, %v4642_v45 }
 0xb72   : > { %v3228_v39 = vpop.f32.mrf.mxu0 }
 0xb73   : > { %v3432_v58 = vpack.c.bf16 %v3237_v50, %v3234_v40  ;;  %v3229_v2 = vadd.f32 %v4642_v45, %v3228_v39 }
 0xb75   : > { %v3431_v32 = vpack.c.bf16 %v3229_v2, %v3226_v55  ;;  %5136 = vmatprep.subr.bf16.mxu0 %v3432_v58 }
 0xb76   : > { %5137 = vmatpush3.bf16.msra.mxu0 %v3432_v58 }
 0xb77   : > { %5138 = vmatprep.subr.bf16.mxu0 %v3431_v32 }
 0xb7a   : > { %5139 = vmatpush3.bf16.msra.mxu0 %v3431_v32 }
 0xb7b   : > { %5140 = vmatprep.subr.bf16.mxu0 %v3430_v28 }
 0xb7e   : > { %5141 = vmatpush3.bf16.msra.mxu0 %v3430_v28 }
 0xb7f   : > { %5142 = vmatprep.subr.bf16.mxu0 %v3429_v60 }
 0xb82   : > { %5143 = vmatpush3.bf16.msra.mxu0 %v3429_v60 }
 0xc20   : > { %v5130_v42 = vpop.f32.mrf.mxu1 }
 0xc21   : > { %v3315_v52 = vadd.f32 %v5130_v42, %v6493_v5 }
 0xc22   : > { %v3306_v59 = vpop.f32.mrf.mxu1 }
 0xc23   : > { %v3307_v1 = vadd.f32 %v3306_v59, %v6495_v8  ;;  %v3343_v55 = vsel %vm1716_vm5, %v3315_v52, -inf }
 0xc24   : > { %v5131_v40 = vpop.f32.mrf.mxu1 }
 0xc25   : > { %v3337_v50 = vsel %vm1716_vm5, %v3307_v1, -inf  ;;  %v3318_v18 = vadd.f32 %v5131_v40, %v6500_v17 }
 0xc26   : > { %v3309_v27 = vpop.f32.mrf.mxu1  ;;  %3338 = vmax.xlane.f32.xlu0 %v3337_v50 }
 0xc27   : > { %v3310_v53 = vadd.f32 %v3309_v27, %v6507_v25  ;;  %v3346_v9 = vsel %vm1716_vm5, %v3318_v18, -inf }
 0xc28   : > { %v5134_v39 = vpop.f32.mrf.mxu1 }
 0xc29   : > { %v3340_v45 = vsel %vm1716_vm5, %v3310_v53, -inf  ;;  %v3331_v5 = vadd.f32 %v5134_v39, %v6523_v46 }
 0xc2a   : > { %v3322_v58 = vpop.f32.mrf.mxu1  ;;  %3341 = vmax.xlane.f32.xlu1 %v3340_v45  ;;  %3344 = vmax.xlane.f32.xlu0 %v3343_v55 }
 0xc2b   : > { %v3323_v8 = vadd.f32 %v3322_v58, %v6519_v41  ;;  %v3355_v30 = vsel %vm1716_vm5, %v3331_v5, -inf }
 0xc2c   : > { %v5135_v2 = vpop.f32.mrf.mxu1 }
 0xc2d   : > { %v3349_v32 = vsel %vm1716_vm5, %v3323_v8, -inf  ;;  %v3334_v62 = vadd.f32 %v5135_v2, %v6535_v54 }
 0xc2e   : > { %v3325_v25 = vpop.f32.mrf.mxu1  ;;  %3347 = vmax.xlane.f32.xlu1 %v3346_v9  ;;  %3350 = vmax.xlane.f32.xlu0 %v3349_v32 }
 0xc2f   : > { %v3326_v17 = vadd.f32 %v3325_v25, %v6528_v49  ;;  %v3358_v41 = vsel %vm1716_vm5, %v3334_v62, -inf }
 0xc31   : > { %v3352_v28 = vsel %vm1716_vm5, %v3326_v17, -inf }
 0xc32   : > { %3353 = vmax.xlane.f32.xlu1 %v3352_v28  ;;  %3356 = vmax.xlane.f32.xlu0 %v3355_v30 }
 0xc36   : > { %3359 = vmax.xlane.f32.xlu1 %v3358_v41 }
 0xcaf   : > { %v3339_v46 = vpop.xlane.xlu0 %3338 }
 0xcb0   : > { %v3361_v48 = vsub.f32 %v3307_v1, %v3339_v46 }
 0xcb2   : > { %v3369_v60 = vmul.f32 1.442695, %v3361_v48 }
 0xcb3   : > { %v3342_v42 = vpop.xlane.xlu1 %3341  ;;  %v3345_v59 = vpop.xlane.xlu0 %3344 }
 0xcb4   : > { %5554 = vpow2.f32 %v3369_v60  ;;  %v3362_v40 = vsub.f32 %v3310_v53, %v3342_v42  ;;  %v3363_v50 = vsub.f32 %v3315_v52, %v3345_v59 }
 0xcb6   : > { %v3371_v49 = vmul.f32 1.442695, %v3362_v40  ;;  %v3373_v27 = vmul.f32 1.442695, %v3363_v50 }
 0xcb7   : > { %v3348_v54 = vpop.xlane.xlu1 %3347  ;;  %v3351_v39 = vpop.xlane.xlu0 %3350 }
 0xcb8   : > { %5556 = vpow2.f32 %v3371_v49  ;;  %v3364_v45 = vsub.f32 %v3318_v18, %v3348_v54  ;;  %v3365_v55 = vsub.f32 %v3323_v8, %v3351_v39 }
 0xcb9   : > { %5558 = vpow2.f32 %v3373_v27 }
 0xcba   : > { %v3375_v58 = vmul.f32 1.442695, %v3364_v45  ;;  %v3377_v2 = vmul.f32 1.442695, %v3365_v55  ;;  %v7357_v45 = vpack.i.bf16 %v6745_v47, %v6741_v26  ;;  %v7358_v55 = vpack.i.bf16 %v6749_v4, %v6743_v0 }
 0xcbb   : > { %v3354_v9 = vpop.xlane.xlu1 %3353  ;;  %v3357_v32 = vpop.xlane.xlu0 %3356  ;;  %v7360_v26 = vpack.i.bf16 %v6757_v22, %v6753_v3 }
 0xcbc   : > { %5560 = vpow2.f32 %v3375_v58  ;;  %v3366_v1 = vsub.f32 %v3326_v17, %v3354_v9  ;;  %v3367_v25 = vsub.f32 %v3331_v5, %v3357_v32  ;;  %v7359_v58 = vpack.i.bf16 %v6761_v24, %v6755_v20 }
 0xcbd   : > { %5562 = vpow2.f32 %v3377_v2 }
 0xcbe   : > { %v3379_v28 = vmul.f32 1.442695, %v3366_v1  ;;  %v3381_v30 = vmul.f32 1.442695, %v3367_v25 }
 0xcbf   : > { %v3360_v53 = vpop.xlane.xlu1 %3359 }
 0xcc0   : > { %5564 = vpow2.f32 %v3379_v28  ;;  %v3368_v52 = vsub.f32 %v3334_v62, %v3360_v53 }
 0xcc1   : > { %v5555_v41 = vpop.eup %5554  ;;  %5566 = vpow2.f32 %v3381_v30 }
 0xcc2   : > { %v3383_v46 = vmul.f32 1.442695, %v3368_v52  ;;  %v3385_v18 = vsel %vm1716_vm5, %v5555_v41, 0.0 }
 0xcc3   : > { %3386 = vadd.xlane.f32.xlu0 %v3385_v18 }
 0xcc4   : > { %5568 = vpow2.f32 %v3383_v46 }
 0xcc5   : > { %v5557_v8 = vpop.eup %5556 }
 0xcc6   : > { %v5559_v48 = vpop.eup %5558  ;;  %v3388_v60 = vsel %vm1716_vm5, %v5557_v8, 0.0 }
 0xcc7   : > { %3389 = vadd.xlane.f32.xlu1 %v3388_v60  ;;  %v3391_v5 = vsel %vm1716_vm5, %v5559_v48, 0.0 }
 0xcc8   : > { %3392 = vadd.xlane.f32.xlu0 %v3391_v5 }
 0xcc9   : > { %v5561_v17 = vpop.eup %5560 }
 0xcca   : > { %v5563_v42 = vpop.eup %5562  ;;  %v3394_v59 = vsel %vm1716_vm5, %v5561_v17, 0.0 }
 0xccb   : > { %3395 = vadd.xlane.f32.xlu1 %v3394_v59  ;;  %v3397_v62 = vsel %vm1716_vm5, %v5563_v42, 0.0 }
 0xccc   : > { %3398 = vadd.xlane.f32.xlu0 %v3397_v62 }
 0xccd   : > { %v5565_v40 = vpop.eup %5564 }
 0xcce   : > { %v5567_v50 = vpop.eup %5566  ;;  %v3400_v49 = vsel %vm1716_vm5, %v5565_v40, 0.0 }
 0xccf   : > { %3401 = vadd.xlane.f32.xlu1 %v3400_v49  ;;  %v3403_v27 = vsel %vm1716_vm5, %v5567_v50, 0.0 }
 0xcd0   : > { %3404 = vadd.xlane.f32.xlu0 %v3403_v27 }
 0xcd1   : > { %v5569_v54 = vpop.eup %5568 }
 0xcd2   : > { %v3406_v39 = vsel %vm1716_vm5, %v5569_v54, 0.0 }
 0xcd3   : > { %3407 = vadd.xlane.f32.xlu1 %v3406_v39 }
 0xce4   : > { %5368 = vrot.lane.b32.xlu1 %v7357_v45, %s7298_s3 }
 0xce6   : > { %5363 = vrot.lane.b32.xlu0 %v7358_v55, %s7298_s3  ;;  %v7362_v55 = vpack.i.bf16 %v6899_v44, %v6893_v37 }
 0xce8   : > { %5373 = vrot.lane.b32.xlu1 %v5372_v19, %s5980_s16 }
 0xcea   : > { %5383 = vrot.lane.b32.xlu0 %v7359_v58, %s7298_s3 }
 0xcec   : > { %5378 = vrot.lane.b32.xlu1 %v5377_v56, %s5980_s16 }
 0xcf0   : > { %5388 = vrot.lane.b32.xlu1 %v7360_v26, %s7298_s3  ;;  %s7180_s3 = scalar_lea.vmem [#allocation21], %s6270_s25  ;;  %s7364_s25 = sld [smem:[#allocation32_spill]] }
 0xcf1   : > { %s4274_s7 = sshll.u32 %s7180_s3, 4  ;;  %s7208_s7 = int_to_ptr.vmem [resolvable:$true] %s4274_s7 }
 0xcf6   : > { %p7367_p8 = scmp.ne.s32.totalorder %s7364_s25, 0 }
 0xd4c   : > { %v3387_v0 = vpop.xlane.xlu0 %3386 }
 0xd4d   : > { %5570 = vrcp.f32 %v3387_v0 }
 0xd50   : > { %v3390_v47 = vpop.xlane.xlu1 %3389 }
 0xd51   : > { %5572 = vrcp.f32 %v3390_v47  ;;  %v3393_v4 = vpop.xlane.xlu0 %3392 }
 0xd52   : > { %5574 = vrcp.f32 %v3393_v4 }
 0xd54   : > { %v3396_v29 = vpop.xlane.xlu1 %3395 }
 0xd55   : > { %5576 = vrcp.f32 %v3396_v29  ;;  %v3399_v20 = vpop.xlane.xlu0 %3398 }
 0xd56   : > { %5578 = vrcp.f32 %v3399_v20 }
 0xd58   : > { %v3402_v24 = vpop.xlane.xlu1 %3401 }
 0xd59   : > { %5580 = vrcp.f32 %v3402_v24  ;;  %v3405_v31 = vpop.xlane.xlu0 %3404 }
 0xd5a   : > { %5582 = vrcp.f32 %v3405_v31  ;;  %v5571_v63 = vpop.eup %5570 }
 0xd5b   : > { %v3417_v3 = vmul.f32 %v5571_v63, %v5555_v41 }
 0xd5c   : > { %v3408_v61 = vpop.xlane.xlu1 %3407 }
 0xd5d   : > { %5584 = vrcp.f32 %v3408_v61  ;;  %v5364_v29 = vpop.permute.xlu0 %5363 }
 0xd5e   : > { %v5573_v56 = vpop.eup %5572  ;;  %v5366_v24 = vunpack.i.h.bf16 %v5364_v29  ;;  %v5365_v31 = vunpack.i.l.bf16 %v5364_v29 }
 0xd5f   : > { %v3418_v22 = vmul.f32 %v5573_v56, %v5557_v8  ;;  %v5575_v19 = vpop.eup %5574 }
 0xd60   : > { %v3419_v32 = vmul.f32 %v5575_v19, %v5559_v48  ;;  %v5450_v48 = vld [vmem:[%s7361_s27 + $0x8] sm:$0xff]   ;;  %v5369_v0 = vpop.permute.xlu1 %5368  ;;  %v3607_v19 = vsel %vm1626_vm1, %v6614_v7, %v5366_v24 }
 0xd61   : > { %v3425_v2 = vpack.c.bf16 %v3418_v22, %v3417_v3  ;;  %5152 = vmatprep.subr.bf16.mxu0 %v5450_v48  ;;  %v5371_v21 = vunpack.i.h.bf16 %v5369_v0  ;;  %v5370_v23 = vunpack.i.l.bf16 %v5369_v0 }
 0xd62   : > { %v5577_v9 = vpop.eup %5576 }
 0xd63   : > { %v3420_v1 = vmul.f32 %v5577_v9, %v5561_v17  ;;  %5144 = vmatprep.mubr.msk.bf16.mxu0 %vm1716_vm5, %v3425_v2  ;;  %v5579_v25 = vpop.eup %5578  ;;  %v5451_v17 = vld [vmem:[%s7361_s27] sm:$0xff]   ;;  %v3606_v2 = vsel %vm1626_vm1, %v6610_v51, %v5365_v31  ;;  %v3609_v9 = vsel %vm1626_vm1, %v6612_v6, %v5371_v21 }
 0xd64   : > { %v3421_v53 = vmul.f32 %v5579_v25, %v5563_v42  ;;  %v5374_v47 = vpop.permute.xlu1 %5373 }
 0xd65   : > { %v3426_v28 = vpack.c.bf16 %v3420_v1, %v3419_v32  ;;  %v5376_v56 = vunpack.i.h.bf16 %v5374_v47  ;;  %v5375_v3 = vunpack.i.l.bf16 %v5374_v47  ;;  %v3608_v32 = vsel %vm1626_vm1, %v6608_v57, %v5370_v23 }
 0xd66   : > { %v5581_v30 = vpop.eup %5580 }
 0xd67   : > { %5145 = vmatmul.mubr.msk.bf16.vlgmr.msra.gmra.mxu0 %vm1716_vm5, %v3426_v28  ;;  %v3422_v52 = vmul.f32 %v5581_v30, %v5565_v40  ;;  %v5583_v46 = vpop.eup %5582  ;;  %v3616_v7 = vsel %vm3614_vm11, %v3607_v19, %v5376_v56 }
 0xd68   : > { %v3423_v41 = vmul.f32 %v5583_v46, %v5567_v50  ;;  %5153 = vmatpush3.bf16.msra.mxu0 %v5450_v48  ;;  %v5379_v4 = vpop.permute.xlu1 %5378 }
 0xd69   : > { %v3427_v18 = vpack.c.bf16 %v3422_v52, %v3421_v53  ;;  %5154 = vmatprep.subr.bf16.mxu0 %v5451_v17  ;;  %v5381_v63 = vunpack.i.h.bf16 %v5379_v4  ;;  %v5380_v61 = vunpack.i.l.bf16 %v5379_v4  ;;  %v3615_v52 = vsel %vm3614_vm11, %v3606_v2, %v5375_v3 }
 0xd6a   : > { %v5585_v60 = vpop.eup %5584 }
 0xd6b   : > { %5148 = vmatprep.mubr.msk.bf16.mxu0 %vm1716_vm5, %v3427_v18  ;;  %v3424_v8 = vmul.f32 %v5585_v60, %v5569_v54  ;;  %v3617_v25 = vsel %vm3614_vm11, %v3608_v32, %v5380_v61  ;;  %v3618_v28 = vsel %vm3614_vm11, %v3609_v9, %v5381_v63 }
 0xd6c   : > { %5155 = vmatpush3.bf16.msra.mxu0 %v5451_v17  ;;  %v5389_v20 = vpop.permute.xlu1 %5388 }
 0xd6d   : > { %v3428_v5 = vpack.c.bf16 %v3424_v8, %v3423_v41  ;;  %v5391_v8 = vunpack.i.h.bf16 %v5389_v20 }
 0xd6f   : > { %5149 = vmatmul.mubr.msk.bf16.gmra.mxu0 %vm1716_vm5, %v3428_v5  ;;  %v5390_v5 = vunpack.i.l.bf16 %v5389_v20 }
 0xe27   : > { %v5146_v42 = vpop.f32.mrf.mxu0 }
 0xe29   : > { %v3479_v59 = vpop.f32.mrf.mxu0 }
 0xe2b   : > { %v5147_v62 = vpop.f32.mrf.mxu0 }
 0xe2c   : > { %v5392_v40 = vpack.i.bf16 %v5147_v62, %v5146_v42 }
 0xe2d   : > { %v3482_v50 = vpop.f32.mrf.mxu0 }
 0xe2e   : > { %v5397_v49 = vpack.i.bf16 %v3482_v50, %v3479_v59  ;;  %5393 = vrot.lane.b32.xlu1 %v5392_v40, %s5981_s23 }
 0xe2f   : > { %v5150_v27 = vpop.f32.mrf.mxu0 }
 0xe30   : > { %5398 = vrot.lane.b32.xlu0 %v5397_v49, %s5981_s23 }
 0xe31   : > { %v3495_v54 = vpop.f32.mrf.mxu0 }
 0xe32   : > { %5408 = vrot.lane.b32.xlu1 %v5407_v38, %s5980_s16  ;;  %v5384_v38 = vpop.permute.xlu0 %5383 }
 0xe33   : > { %v5151_v39 = vpop.f32.mrf.mxu0  ;;  %v5386_v6 = vunpack.i.h.bf16 %v5384_v38  ;;  %v5385_v41 = vunpack.i.l.bf16 %v5384_v38  ;;  %v4657_v38 = vld [vmem:[#allocation9] ss:$0 sm:$0xff] }
 0xe34   : > { %v5417_v45 = vpack.i.bf16 %v5151_v39, %v5150_v27  ;;  %5403 = vrot.lane.b32.xlu0 %v7362_v55, %s5980_s16  ;;  %v3613_v55 = vsel %vm1626_vm1, %v6620_v12, %v5391_v8 }
 0xe35   : > { %v3498_v58 = vpop.f32.mrf.mxu0  ;;  %v3611_v39 = vsel %vm1626_vm1, %v6622_v15, %v5386_v6 }
 0xe36   : > { %v5412_v26 = vpack.i.bf16 %v3498_v58, %v3495_v54  ;;  %5418 = vrot.lane.b32.xlu1 %v5417_v45, %s5981_s23  ;;  %v3610_v45 = vsel %vm1626_vm1, %v6618_v10, %v5385_v41  ;;  %v3612_v58 = vsel %vm1626_vm1, %v6616_v43, %v5390_v5 }
 0xe38   : > { %5413 = vrot.lane.b32.xlu0 %v5412_v26, %s5981_s23  ;;  %s5882_s23 = sshll.u32 %s5982_s8, 4  ;;  %s5883_s23 = int_to_ptr.vmem [resolvable:$false] %s5882_s23 }
 0xe39   : > { %s5884_s0 = scalar_lea.vmem %s5883_s23, 2048  ;;  %p5885_p11 = scmp.lt.s32.totalorder %s7208_s7, %s5883_s23 }
 0xea0   : > { %v5394_v37 = vpop.permute.xlu1 %5393 }
 0xea1   : > { %v5396_v44 = vunpack.i.h.bf16 %v5394_v37  ;;  %v5395_v22 = vunpack.i.l.bf16 %v5394_v37 }
 0xea2   : > { %v5399_v1 = vpop.permute.xlu0 %5398 }
 0xea3   : > { %v5401_v30 = vunpack.i.h.bf16 %v5399_v1  ;;  %v5400_v53 = vunpack.i.l.bf16 %v5399_v1  ;;  %v3627_v46 = vsel %vm3623_vm12, %v3618_v28, %v5396_v44  ;;  %v3626_v51 = vsel %vm3623_vm12, %v3617_v25, %v5395_v22 }
 0xea4   : > { %v5409_v18 = vpop.permute.xlu1 %5408  ;;  %v3633_v42 = vpack.c.bf16 %v3627_v46, %v3626_v51 }
 0xea5   : > { %v3624_v60 = vsel %vm3623_vm12, %v3615_v52, %v5400_v53  ;;  %v3625_v57 = vsel %vm3623_vm12, %v3616_v7, %v5401_v30  ;;  %v5411_v59 = vunpack.i.h.bf16 %v5409_v18  ;;  %v5410_v62 = vunpack.i.l.bf16 %v5409_v18 }
 0xea6   : > { %v3632_v48 = vpack.c.bf16 %v3625_v57, %v3624_v60  ;;  %v5404_v17 = vpop.permute.xlu0 %5403 }
 0xea7   : > { %v5406_v40 = vunpack.i.h.bf16 %v5404_v17  ;;  %v5405_v50 = vunpack.i.l.bf16 %v5404_v17  ;;  %v3622_v0 = vsel %vm3614_vm11, %v3613_v55, %v5411_v59  ;;  %v3621_v47 = vsel %vm3614_vm11, %v3612_v58, %v5410_v62 }
 0xea8   : > { %v5419_v49 = vpop.permute.xlu1 %5418  ;;  %5156 = vmatprep.mubr.msk.bf16.mxu0 %vm1005_vm0, %v3632_v48 }
 0xea9   : > { %v5421_v27 = vunpack.i.h.bf16 %v5419_v49  ;;  %v5420_v54 = vunpack.i.l.bf16 %v5419_v49  ;;  %5157 = vmatmul.mubr.msk.bf16.vlgmr.msra.gmra.mxu0 %vm1005_vm0, %v3633_v42  ;;  %v3619_v20 = vsel %vm3614_vm11, %v3610_v45, %v5405_v50  ;;  %v3620_v15 = vsel %vm3614_vm11, %v3611_v39, %v5406_v40 }
 0xeaa   : > { %v5414_v26 = vpop.permute.xlu0 %5413 }
 0xeab   : > { %v5416_v4 = vunpack.i.h.bf16 %v5414_v26  ;;  %v5415_v29 = vunpack.i.l.bf16 %v5414_v26  ;;  %v3631_v24 = vsel %vm3623_vm12, %v3622_v0, %v5421_v27  ;;  %v3630_v10 = vsel %vm3623_vm12, %v3621_v47, %v5420_v54 }
 0xeac   : > { %v3635_v21 = vpack.c.bf16 %v3631_v24, %v3630_v10 }
 0xead   : > { %v3628_v12 = vsel %vm3623_vm12, %v3619_v20, %v5415_v29  ;;  %v3629_v31 = vsel %vm3623_vm12, %v3620_v15, %v5416_v4 }
 0xeae   : > { %v3634_v43 = vpack.c.bf16 %v3629_v31, %v3628_v12 }
 0xeb0   : > { %5160 = vmatprep.mubr.msk.bf16.mxu0 %vm1005_vm0, %v3634_v43 }
 0xeb1   : > { %5161 = vmatmul.mubr.msk.bf16.gmra.mxu0 %vm1005_vm0, %v3635_v21 }
 0xf69   : > { %v5158_v23 = vpop.f32.mrf.mxu0 }
 0xf6a   : > { %v3714_v61 = vadd.f32 %v5158_v23, %v4657_v38 }
 0xf6b   : > { %v3705_v63 = vpop.f32.mrf.mxu0 }
 0xf6c   : > { %v3706_v56 = vadd.f32 %v4657_v38, %v3705_v63  ;;  %v3738_v9 = vadd.f32 %v3714_v61, %v6374_v16 }
 0xf6d   : > { %v5159_v3 = vpop.f32.mrf.mxu0 }
 0xf6e   : > { %v3736_v37 = vadd.f32 %v3706_v56, %v6370_v13  ;;  %v3717_v22 = vadd.f32 %v5159_v3, %v4657_v38  ;;  %v3752_v53 = vsel %vm1005_vm0, %v3738_v9, 0.0 }
 0xf6f   : > { %v3708_v44 = vpop.f32.mrf.mxu0 }
 0xf70   : > { %v3709_v19 = vadd.f32 %v4657_v38, %v3708_v44  ;;  %v3746_v2 = vsel %vm1005_vm0, %v3736_v37, 0.0  ;;  %v3739_v52 = vadd.f32 %v3717_v22, %v6368_v11 }
 0xf71   : > { %v5162_v32 = vpop.f32.mrf.mxu0  ;;  %3747 = vadd.xlane.f32.xlu0 %v3746_v2  ;;  %v5453_v2 = vld [vmem:[#allocation10] sm:$0xff]  }
 0xf72   : > { %v3737_v1 = vadd.f32 %v3709_v19, %v6372_v14  ;;  %v3730_v7 = vadd.f32 %v5162_v32, %v4657_v38  ;;  %v3755_v16 = vsel %vm1005_vm0, %v3739_v52, 0.0  ;;  %v5452_v19 = vld [vmem:[#allocation10 + $0x8] sm:$0xff]  }
 0xf73   : > { %v3721_v25 = vpop.f32.mrf.mxu0  ;;  %5164 = vmatprep.subr.bf16.mxu1 %v5452_v19 }
 0xf74   : > { %v3722_v28 = vadd.f32 %v4657_v38, %v3721_v25  ;;  %v3749_v30 = vsel %vm1005_vm0, %v3737_v1, 0.0  ;;  %v3742_v41 = vadd.f32 %v3730_v7, %v6413_v36  ;;  %5165 = vmatpush3.bf16.msra.mxu1 %v5452_v19 }
 0xf75   : > { %v5163_v13 = vpop.f32.mrf.mxu0  ;;  %3750 = vadd.xlane.f32.xlu1 %v3749_v30  ;;  %3753 = vadd.xlane.f32.xlu0 %v3752_v53 }
 0xf76   : > { %v3733_v51 = vadd.f32 %v5163_v13, %v4657_v38  ;;  %v3740_v6 = vadd.f32 %v3722_v28, %v6409_v34  ;;  %v3764_v5 = vsel %vm1005_vm0, %v3742_v41, 0.0  ;;  %5166 = vmatprep.subr.bf16.mxu1 %v5453_v2 }
 0xf77   : > { %v3724_v46 = vpop.f32.mrf.mxu0 }
 0xf78   : > { %v3725_v18 = vadd.f32 %v4657_v38, %v3724_v46  ;;  %v3758_v57 = vsel %vm1005_vm0, %v3740_v6, 0.0  ;;  %v3743_v11 = vadd.f32 %v3733_v51, %v6407_v33  ;;  %5167 = vmatpush3.bf16.msra.mxu1 %v5453_v2 }
 0xf79   : > { %3756 = vadd.xlane.f32.xlu0 %v3755_v16 }
 0xf7a   : > { %v3741_v14 = vadd.f32 %v3725_v18, %v6411_v35  ;;  %v3767_v8 = vsel %vm1005_vm0, %v3743_v11, 0.0 }
 0xf7c   : > { %v3761_v60 = vsel %vm1005_vm0, %v3741_v14, 0.0 }
 0xf7d   : > { %3762 = vadd.xlane.f32.xlu1 %v3761_v60  ;;  %3759 = vadd.xlane.f32.xlu0 %v3758_v57 }
 0xf81   : > { %3768 = vadd.xlane.f32.xlu1 %v3767_v8  ;;  %3765 = vadd.xlane.f32.xlu0 %v3764_v5 }
 0xffa   : > { %v3748_v34 = vpop.xlane.xlu0 %3747 }
 0xffb   : > { %v3771_v48 = vmul.f32 0.03125, %v3748_v34 }
 0xffd   : > { %v7028_v17 = vsub.f32 %v3736_v37, %v3771_v48 }
 0xffe   : > { %v3751_v35 = vpop.xlane.xlu1 %3750  ;;  %v3754_v42 = vpop.xlane.xlu0 %3753 }
 0xfff   : > { %v3772_v59 = vmul.f32 0.03125, %v3751_v35  ;;  %v3773_v62 = vmul.f32 0.03125, %v3754_v42  ;;  %v3787_v33 = vmul.f32 %v7028_v17, %v7028_v17 }
0x1001   : > { %v7032_v36 = vsub.f32 %v3737_v1, %v3772_v59  ;;  %v7034_v40 = vsub.f32 %v3738_v9, %v3773_v62  ;;  %v3795_v50 = vsel %vm1005_vm0, %v3787_v33, 0.0  ;;  %v5454_v9 = vld [vmem:[%s7363_s2 + $0x18] sm:$0xff]  }
0x1002   : > { %3796 = vadd.xlane.f32.xlu0 %v3795_v50  ;;  %v3757_v49 = vpop.xlane.xlu0 %3756  ;;  %5176 = vmatprep.subr.bf16.mxu0 %v5454_v9  ;;  %v4664_v62 = vld [vmem:[#allocation15] ss:$0 sm:$0xff] }
0x1003   : > { %v3774_v27 = vmul.f32 0.03125, %v3757_v49  ;;  %v3788_v54 = vmul.f32 %v7032_v36, %v7032_v36  ;;  %v3789_v39 = vmul.f32 %v7034_v40, %v7034_v40  ;;  %5177 = vmatpush3.bf16.msra.mxu0 %v5454_v9 }
0x1005   : > { %v7041_v45 = vsub.f32 %v3739_v52, %v3774_v27  ;;  %v3798_v55 = vsel %vm1005_vm0, %v3788_v54, 0.0  ;;  %v3801_v58 = vsel %vm1005_vm0, %v3789_v39, 0.0  ;;  %v4665_v39 = vld [vmem:[#allocation16] ss:$0 sm:$0xff] }
0x1006   : > { %3799 = vadd.xlane.f32.xlu1 %v3798_v55  ;;  %v3763_v26 = vpop.xlane.xlu1 %3762  ;;  %3802 = vadd.xlane.f32.xlu0 %v3801_v58  ;;  %v3760_v0 = vpop.xlane.xlu0 %3759 }
0x1007   : > { %v3776_v47 = vmul.f32 0.03125, %v3763_v26  ;;  %v3775_v4 = vmul.f32 0.03125, %v3760_v0  ;;  %v3790_v29 = vmul.f32 %v7041_v45, %v7041_v45 }
0x1009   : > { %v7047_v20 = vsub.f32 %v3741_v14, %v3776_v47  ;;  %v7049_v15 = vsub.f32 %v3740_v6, %v3775_v4  ;;  %v3804_v24 = vsel %vm1005_vm0, %v3790_v29, 0.0 }
0x100a   : > { %v3769_v10 = vpop.xlane.xlu1 %3768  ;;  %3805 = vadd.xlane.f32.xlu1 %v3804_v24  ;;  %v3766_v12 = vpop.xlane.xlu0 %3765 }
0x100b   : > { %v3778_v31 = vmul.f32 0.03125, %v3769_v10  ;;  %v3777_v43 = vmul.f32 0.03125, %v3766_v12  ;;  %v3792_v21 = vmul.f32 %v7047_v20, %v7047_v20  ;;  %v3791_v23 = vmul.f32 %v7049_v15, %v7049_v15 }
0x100d   : > { %v7056_v38 = vsub.f32 %v3743_v11, %v3778_v31  ;;  %v7058_v63 = vsub.f32 %v3742_v41, %v3777_v43  ;;  %v3810_v61 = vsel %vm1005_vm0, %v3792_v21, 0.0  ;;  %v3807_v56 = vsel %vm1005_vm0, %v3791_v23, 0.0 }
0x100e   : > { %3811 = vadd.xlane.f32.xlu1 %v3810_v61  ;;  %3808 = vadd.xlane.f32.xlu0 %v3807_v56 }
0x100f   : > { %v3794_v3 = vmul.f32 %v7056_v38, %v7056_v38  ;;  %v3793_v37 = vmul.f32 %v7058_v63, %v7058_v63 }
0x1011   : > { %v3816_v44 = vsel %vm1005_vm0, %v3794_v3, 0.0  ;;  %v3813_v22 = vsel %vm1005_vm0, %v3793_v37, 0.0 }
0x1012   : > { %3817 = vadd.xlane.f32.xlu1 %v3816_v44  ;;  %3814 = vadd.xlane.f32.xlu0 %v3813_v22 }
0x108b   : > { %v3797_v32 = vpop.xlane.xlu0 %3796 }
0x108c   : > { %v3819_v1 = vmul.f32 0.03125, %v3797_v32  ;;  %v5457_v32 = vld [vmem:[%s7363_s2] sm:$0xff]  }
0x108e   : > { %v3827_v25 = vadd.f32 1e-05, %v3819_v1 }
0x108f   : > { %v3800_v28 = vpop.xlane.xlu1 %3799  ;;  %v3803_v30 = vpop.xlane.xlu0 %3802 }
0x1090   : > { %5586 = vrsqrt.f32 %v3827_v25  ;;  %v3820_v53 = vmul.f32 0.03125, %v3800_v28  ;;  %v3821_v52 = vmul.f32 0.03125, %v3803_v30  ;;  %v4666_v28 = vld [vmem:[#allocation12] ss:$0 sm:$0xff] }
0x1092   : > { %v3828_v13 = vadd.f32 1e-05, %v3820_v53  ;;  %v3829_v7 = vadd.f32 1e-05, %v3821_v52 }
0x1093   : > { %v3806_v46 = vpop.xlane.xlu1 %3805 }
0x1094   : > { %5588 = vrsqrt.f32 %v3828_v13  ;;  %v3822_v51 = vmul.f32 0.03125, %v3806_v46 }
0x1095   : > { %5590 = vrsqrt.f32 %v3829_v7 }
0x1096   : > { %v3830_v18 = vadd.f32 1e-05, %v3822_v51 }
0x1097   : > { %v3812_v16 = vpop.xlane.xlu1 %3811  ;;  %v3809_v6 = vpop.xlane.xlu0 %3808 }
0x1098   : > { %5592 = vrsqrt.f32 %v3830_v18  ;;  %v3824_v14 = vmul.f32 0.03125, %v3812_v16  ;;  %v3823_v60 = vmul.f32 0.03125, %v3809_v6 }
0x109a   : > { %v3832_v57 = vadd.f32 1e-05, %v3824_v14  ;;  %v3831_v11 = vadd.f32 1e-05, %v3823_v60 }
0x109b   : > { %v3818_v41 = vpop.xlane.xlu1 %3817  ;;  %v3815_v8 = vpop.xlane.xlu0 %3814 }
0x109c   : > { %5594 = vrsqrt.f32 %v3832_v57  ;;  %v3826_v5 = vmul.f32 0.03125, %v3818_v41  ;;  %v3825_v34 = vmul.f32 0.03125, %v3815_v8 }
0x109d   : > { %v5587_v48 = vpop.eup %5586  ;;  %5596 = vrsqrt.f32 %v3831_v11 }
0x109e   : > { %v3834_v35 = vadd.f32 1e-05, %v3826_v5  ;;  %v3833_v42 = vadd.f32 1e-05, %v3825_v34  ;;  %v3843_v59 = vmul.f32 %v5587_v48, %v7028_v17 }
0x10a0   : > { %5598 = vrsqrt.f32 %v3834_v35  ;;  %v3857_v27 = vmul.f32 %v4664_v62, %v3843_v59 }
0x10a1   : > { %v5589_v33 = vpop.eup %5588  ;;  %5600 = vrsqrt.f32 %v3833_v42 }
0x10a2   : > { %v5591_v50 = vpop.eup %5590  ;;  %v3844_v49 = vmul.f32 %v5589_v33, %v7032_v36  ;;  %v7075_v47 = vadd.f32 %v4665_v39, %v3857_v27  ;;  %v4673_v27 = vld [vmem:[#allocation13] ss:$0 sm:$0xff] }
0x10a3   : > { %v3845_v54 = vmul.f32 %v5591_v50, %v7034_v40 }
0x10a4   : > { %v3858_v55 = vmul.f32 %v4664_v62, %v3844_v49 }
0x10a5   : > { %v5593_v58 = vpop.eup %5592  ;;  %v3859_v26 = vmul.f32 %v4664_v62, %v3845_v54 }
0x10a6   : > { %v3846_v0 = vmul.f32 %v5593_v58, %v7041_v45  ;;  %v7077_v4 = vadd.f32 %v4665_v39, %v3858_v55 }
0x10a7   : > { %v7082_v36 = vadd.f32 %v4665_v39, %v3859_v26 }
0x10a8   : > { %v3860_v17 = vmul.f32 %v4664_v62, %v3846_v0  ;;  %v3879_v29 = vpack.c.bf16 %v7077_v4, %v7075_v47 }
0x10a9   : > { %v5595_v24 = vpop.eup %5594 }
0x10aa   : > { %v5597_v10 = vpop.eup %5596  ;;  %5168 = vmatprep.mubr.msk.bf16.mxu1 %vm1005_vm0, %v3879_v29  ;;  %v7084_v40 = vadd.f32 %v4665_v39, %v3860_v17  ;;  %v3848_v12 = vmul.f32 %v5595_v24, %v7047_v20 }
0x10ab   : > { %v3847_v45 = vmul.f32 %v5597_v10, %v7049_v15 }
0x10ac   : > { %v3880_v31 = vpack.c.bf16 %v7084_v40, %v7082_v36  ;;  %v3862_v43 = vmul.f32 %v4664_v62, %v3848_v12 }
0x10ad   : > { %v5599_v21 = vpop.eup %5598  ;;  %v3861_v23 = vmul.f32 %v4664_v62, %v3847_v45 }
0x10ae   : > { %v5601_v61 = vpop.eup %5600  ;;  %5169 = vmatmul.mubr.msk.bf16.vlgmr.msra.gmra.mxu1 %vm1005_vm0, %v3880_v31  ;;  %v7091_v56 = vadd.f32 %v4665_v39, %v3862_v43  ;;  %v3850_v3 = vmul.f32 %v5599_v21, %v7056_v38  ;;  %v5455_v38 = vld [vmem:[%s7363_s2 + $0x10] sm:$0xff]  }
0x10af   : > { %v7094_v37 = vadd.f32 %v4665_v39, %v3861_v23  ;;  %v3849_v44 = vmul.f32 %v5601_v61, %v7058_v63  ;;  %5178 = vmatprep.subr.bf16.mxu0 %v5455_v38  ;;  %v5456_v63 = vld [vmem:[%s7363_s2 + $0x8] sm:$0xff]   ;;  %s5878_s2 = scalar_lea.vmem %s7208_s7, 1024 }
0x10b0   : > { %v3864_v20 = vmul.f32 %v4664_v62, %v3850_v3  ;;  %5179 = vmatpush3.bf16.msra.mxu0 %v5455_v38  ;;  %p5879_p4 = scmp.ne.s32.totalorder %s7208_s7, %s5878_s2  ;;  %p5886_p10 = scmp.lt.s32.totalorder %s5884_s0, %s5878_s2 }
0x10b1   : > { %v3881_v15 = vpack.c.bf16 %v7091_v56, %v7094_v37  ;;  %v3863_v22 = vmul.f32 %v4664_v62, %v3849_v44  ;;  %5180 = vmatprep.subr.bf16.mxu0 %v5456_v63 }
0x10b2   : > { %v7099_v19 = vadd.f32 %v4665_v39, %v3864_v20  ;;  %p5880_p9 = pnand %p5879_p4, %p7367_p8  ;;  %p5887_p2 = por %p5886_p10, %p5885_p11 }
0x10b3   : > { %5172 = vmatprep.mubr.msk.bf16.mxu1 %vm1005_vm0, %v3881_v15  ;;  %v7102_v2 = vadd.f32 %v4665_v39, %v3863_v22 }
0x10b4   : > { %5181 = vmatpush3.bf16.msra.mxu0 %v5456_v63  ;;  %p5881_p13 = pneg %p5880_p9 }
0x10b5   : > { %v3882_v9 = vpack.c.bf16 %v7099_v19, %v7102_v2  ;;  %5182 = vmatprep.subr.bf16.mxu0 %v5457_v32 }
0x10b6   : > { %p5888_p3 = pnand %p5887_p2, %p5881_p13 }
0x10b7   : > { %5173 = vmatmul.mubr.msk.bf16.gmra.mxu1 %vm1005_vm0, %v3882_v9 }
0x10b8   : > { %5183 = vmatpush3.bf16.msra.mxu0 %v5457_v32 }
0x116e   : > { %v5170_v1 = vpop.f32.mrf.mxu1 }
0x116f   : > { %v3961_v13 = vadd.f32 %v5170_v1, %v4666_v28 }
0x1170   : > { %v3952_v25 = vpop.f32.mrf.mxu1 }
0x1171   : > { %v3953_v53 = vadd.f32 %v4666_v28, %v3952_v25  ;;  %v3985_v14 = vmax.f32 %v3961_v13, 0.0 }
0x1172   : > { %v5171_v30 = vpop.f32.mrf.mxu1 }
0x1173   : > { %v3964_v52 = vadd.f32 %v5171_v30, %v4666_v28  ;;  %v3983_v18 = vmax.f32 %v3953_v53, 0.0 }
0x1174   : > { %v3955_v7 = vpop.f32.mrf.mxu1 }
0x1175   : > { %v3956_v46 = vadd.f32 %v4666_v28, %v3955_v7  ;;  %v3986_v51 = vmax.f32 %v3964_v52, 0.0 }
0x1177   : > { %v3984_v16 = vmax.f32 %v3956_v46, 0.0  ;;  %v5174_v6 = vpop.f32.mrf.mxu1  ;;  %v3992_v11 = vpack.c.bf16 %v3986_v51, %v3985_v14 }
0x1178   : > { %v3977_v34 = vadd.f32 %v5174_v6, %v4666_v28 }
0x1179   : > { %v3991_v60 = vpack.c.bf16 %v3984_v16, %v3983_v18  ;;  %v3968_v57 = vpop.f32.mrf.mxu1 }
0x117a   : > { %v3969_v8 = vadd.f32 %v4666_v28, %v3968_v57  ;;  %v3989_v33 = vmax.f32 %v3977_v34, 0.0 }
0x117b   : > { %v5175_v41 = vpop.f32.mrf.mxu1  ;;  %5184 = vmatprep.mubr.msk.bf16.mxu0 %vm1716_vm5, %v3991_v60 }
0x117c   : > { %v3980_v5 = vadd.f32 %v5175_v41, %v4666_v28  ;;  %5185 = vmatmul.mubr.msk.bf16.vlgmr.msra.gmra.mxu0 %vm1716_vm5, %v3992_v11  ;;  %v3987_v59 = vmax.f32 %v3969_v8, 0.0 }
0x117d   : > { %v3971_v48 = vpop.f32.mrf.mxu1 }
0x117e   : > { %v3972_v35 = vadd.f32 %v4666_v28, %v3971_v48  ;;  %v3990_v42 = vmax.f32 %v3980_v5, 0.0 }
0x1180   : > { %v3988_v62 = vmax.f32 %v3972_v35, 0.0  ;;  %v3994_v49 = vpack.c.bf16 %v3990_v42, %v3989_v33 }
0x1182   : > { %v3993_v50 = vpack.c.bf16 %v3988_v62, %v3987_v59 }
0x1184   : > { %5188 = vmatprep.mubr.msk.bf16.mxu0 %vm1716_vm5, %v3993_v50 }
0x1185   : > { %5189 = vmatmul.mubr.msk.bf16.gmra.mxu0 %vm1716_vm5, %v3994_v49 }
0x123c   : > { %v5186_v54 = vpop.f32.mrf.mxu0 }
0x123d   : > { %v4089_v39 = vadd.f32 %v5186_v54, %v4673_v27 }
0x123e   : > { %v4080_v55 = vpop.f32.mrf.mxu0 }
0x123f   : > { %v4081_v58 = vadd.f32 %v4673_v27, %v4080_v55  ;;  %v4113_v26 = vadd.f32 %v4089_v39, %v7082_v36 }
0x1240   : > { %v5187_v0 = vpop.f32.mrf.mxu0 }
0x1241   : > { %v4092_v17 = vadd.f32 %v5187_v0, %v4673_v27  ;;  %v4127_v29 = vsel %vm1005_vm0, %v4113_v26, 0.0  ;;  %v4111_v24 = vadd.f32 %v4081_v58, %v7075_v47 }
0x1242   : > { %4128 = vadd.xlane.f32.xlu0 %v4127_v29  ;;  %v4083_v10 = vpop.f32.mrf.mxu0 }
0x1243   : > { %v4084_v12 = vadd.f32 %v4673_v27, %v4083_v10  ;;  %v4114_v45 = vadd.f32 %v4092_v17, %v7084_v40  ;;  %v4121_v21 = vsel %vm1005_vm0, %v4111_v24, 0.0 }
0x1245   : > { %v5190_v31 = vpop.f32.mrf.mxu0  ;;  %v4130_v43 = vsel %vm1005_vm0, %v4114_v45, 0.0  ;;  %v4112_v23 = vadd.f32 %v4084_v12, %v7077_v4 }
0x1246   : > { %4131 = vadd.xlane.f32.xlu1 %v4130_v43  ;;  %4122 = vadd.xlane.f32.xlu0 %v4121_v21  ;;  %v4105_v61 = vadd.f32 %v5190_v31, %v4673_v27 }
0x1247   : > { %v4096_v36 = vpop.f32.mrf.mxu0  ;;  %v4124_v47 = vsel %vm1005_vm0, %v4112_v23, 0.0 }
0x1248   : > { %v4097_v3 = vadd.f32 %v4673_v27, %v4096_v36  ;;  %v4117_v40 = vadd.f32 %v4105_v61, %v7102_v2 }
0x1249   : > { %v5191_v44 = vpop.f32.mrf.mxu0 }
0x124a   : > { %4125 = vadd.xlane.f32.xlu1 %v4124_v47  ;;  %v4115_v20 = vadd.f32 %v4097_v3, %v7094_v37  ;;  %v4108_v22 = vadd.f32 %v5191_v44, %v4673_v27  ;;  %v4139_v1 = vsel %vm1005_vm0, %v4117_v40, 0.0 }
0x124b   : > { %v4099_v15 = vpop.f32.mrf.mxu0 }
0x124c   : > { %v4100_v9 = vadd.f32 %v4673_v27, %v4099_v15  ;;  %v4133_v38 = vsel %vm1005_vm0, %v4115_v20, 0.0  ;;  %v4118_v63 = vadd.f32 %v4108_v22, %v7099_v19 }
0x124d   : > { %4134 = vadd.xlane.f32.xlu0 %v4133_v38 }
0x124e   : > { %v4116_v4 = vadd.f32 %v4100_v9, %v7091_v56  ;;  %v4142_v37 = vsel %vm1005_vm0, %v4118_v63, 0.0 }
0x1250   : > { %v4136_v32 = vsel %vm1005_vm0, %v4116_v4, 0.0 }
0x1251   : > { %4137 = vadd.xlane.f32.xlu1 %v4136_v32  ;;  %4140 = vadd.xlane.f32.xlu0 %v4139_v1 }
0x1255   : > { %4143 = vadd.xlane.f32.xlu1 %v4142_v37 }
0x12cb   : > { %v4129_v25 = vpop.xlane.xlu0 %4128 }
0x12cc   : > { %v4147_v2 = vmul.f32 0.03125, %v4129_v25 }
0x12ce   : > { %v7136_v28 = vsub.f32 %v4113_v26, %v4147_v2  ;;  %v4683_v2 = vld [vmem:[#allocation19] ss:$0 sm:$0xff] }
0x12cf   : > { %v4132_v30 = vpop.xlane.xlu1 %4131  ;;  %v4123_v53 = vpop.xlane.xlu0 %4122 }
0x12d0   : > { %v4148_v52 = vmul.f32 0.03125, %v4132_v30  ;;  %v4145_v13 = vmul.f32 0.03125, %v4123_v53  ;;  %v4163_v56 = vmul.f32 %v7136_v28, %v7136_v28 }
0x12d2   : > { %v7140_v19 = vsub.f32 %v4114_v45, %v4148_v52  ;;  %v7142_v7 = vsub.f32 %v4111_v24, %v4145_v13  ;;  %v4175_v46 = vsel %vm1005_vm0, %v4163_v56, 0.0 }
0x12d3   : > { %v4126_v51 = vpop.xlane.xlu1 %4125  ;;  %4176 = vadd.xlane.f32.xlu0 %v4175_v46 }
0x12d4   : > { %v4146_v18 = vmul.f32 0.03125, %v4126_v51  ;;  %v4164_v16 = vmul.f32 %v7140_v19, %v7140_v19  ;;  %v4161_v6 = vmul.f32 %v7142_v7, %v7142_v7 }
0x12d6   : > { %v7149_v14 = vsub.f32 %v4112_v23, %v4146_v18  ;;  %v4135_v60 = vpop.xlane.xlu0 %4134  ;;  %v4178_v57 = vsel %vm1005_vm0, %v4164_v16, 0.0  ;;  %v4169_v11 = vsel %vm1005_vm0, %v4161_v6, 0.0 }
0x12d7   : > { %v4149_v41 = vmul.f32 0.03125, %v4135_v60  ;;  %4179 = vadd.xlane.f32.xlu1 %v4178_v57  ;;  %4170 = vadd.xlane.f32.xlu0 %v4169_v11 }
0x12d8   : > { %v4162_v8 = vmul.f32 %v7149_v14, %v7149_v14 }
0x12d9   : > { %v7155_v5 = vsub.f32 %v4115_v20, %v4149_v41 }
0x12da   : > { %v4138_v34 = vpop.xlane.xlu1 %4137  ;;  %v4141_v48 = vpop.xlane.xlu0 %4140  ;;  %v4172_v35 = vsel %vm1005_vm0, %v4162_v8, 0.0 }
0x12db   : > { %v4150_v42 = vmul.f32 0.03125, %v4138_v34  ;;  %v4151_v59 = vmul.f32 0.03125, %v4141_v48  ;;  %4173 = vadd.xlane.f32.xlu1 %v4172_v35  ;;  %v4165_v62 = vmul.f32 %v7155_v5, %v7155_v5 }
0x12dd   : > { %v7160_v33 = vsub.f32 %v4116_v4, %v4150_v42  ;;  %v7162_v50 = vsub.f32 %v4117_v40, %v4151_v59  ;;  %v4181_v49 = vsel %vm1005_vm0, %v4165_v62, 0.0 }
0x12de   : > { %v4144_v27 = vpop.xlane.xlu1 %4143  ;;  %4182 = vadd.xlane.f32.xlu0 %v4181_v49 }
0x12df   : > { %v4152_v54 = vmul.f32 0.03125, %v4144_v27  ;;  %v4166_v39 = vmul.f32 %v7160_v33, %v7160_v33  ;;  %v4167_v55 = vmul.f32 %v7162_v50, %v7162_v50 }
0x12e1   : > { %v7169_v58 = vsub.f32 %v4118_v63, %v4152_v54  ;;  %v4184_v26 = vsel %vm1005_vm0, %v4166_v39, 0.0  ;;  %v4187_v0 = vsel %vm1005_vm0, %v4167_v55, 0.0  ;;  %v4682_v63 = vld [vmem:[#allocation18] ss:$0 sm:$0xff] }
0x12e2   : > { %4185 = vadd.xlane.f32.xlu1 %v4184_v26  ;;  %4188 = vadd.xlane.f32.xlu0 %v4187_v0 }
0x12e3   : > { %v4168_v17 = vmul.f32 %v7169_v58, %v7169_v58 }
0x12e5   : > { %v4190_v29 = vsel %vm1005_vm0, %v4168_v17, 0.0 }
0x12e6   : > { %4191 = vadd.xlane.f32.xlu1 %v4190_v29 }
0x135c   : > { %v4177_v24 = vpop.xlane.xlu0 %4176 }
0x135d   : > { %v4195_v10 = vmul.f32 0.03125, %v4177_v24 }
0x135f   : > { %v4203_v12 = vadd.f32 1e-05, %v4195_v10 }
0x1360   : > { %v4180_v45 = vpop.xlane.xlu1 %4179  ;;  %v4171_v31 = vpop.xlane.xlu0 %4170 }
0x1361   : > { %5602 = vrsqrt.f32 %v4203_v12  ;;  %v4196_v43 = vmul.f32 0.03125, %v4180_v45  ;;  %v4193_v21 = vmul.f32 0.03125, %v4171_v31 }
0x1363   : > { %v4204_v23 = vadd.f32 1e-05, %v4196_v43  ;;  %v4201_v36 = vadd.f32 1e-05, %v4193_v21 }
0x1364   : > { %v4174_v61 = vpop.xlane.xlu1 %4173 }
0x1365   : > { %5604 = vrsqrt.f32 %v4204_v23  ;;  %v4194_v3 = vmul.f32 0.03125, %v4174_v61 }
0x1366   : > { %5606 = vrsqrt.f32 %v4201_v36 }
0x1367   : > { %v4202_v44 = vadd.f32 1e-05, %v4194_v3  ;;  %v4183_v47 = vpop.xlane.xlu0 %4182 }
0x1368   : > { %v4197_v20 = vmul.f32 0.03125, %v4183_v47 }
0x1369   : > { %5608 = vrsqrt.f32 %v4202_v44 }
0x136a   : > { %v4205_v15 = vadd.f32 1e-05, %v4197_v20 }
0x136b   : > { %v4186_v40 = vpop.xlane.xlu1 %4185  ;;  %v4189_v22 = vpop.xlane.xlu0 %4188 }
0x136c   : > { %5610 = vrsqrt.f32 %v4205_v15  ;;  %v4198_v9 = vmul.f32 0.03125, %v4186_v40  ;;  %v4199_v38 = vmul.f32 0.03125, %v4189_v22 }
0x136e   : > { %v5603_v4 = vpop.eup %5602  ;;  %v4206_v32 = vadd.f32 1e-05, %v4198_v9  ;;  %v4207_v1 = vadd.f32 1e-05, %v4199_v38 }
0x136f   : > { %v4219_v37 = vmul.f32 %v5603_v4, %v7136_v28  ;;  %v4192_v25 = vpop.xlane.xlu1 %4191 }
0x1370   : > { %5612 = vrsqrt.f32 %v4206_v32  ;;  %v4200_v30 = vmul.f32 0.03125, %v4192_v25 }
0x1371   : > { %v4233_v53 = vmul.f32 %v4682_v63, %v4219_v37  ;;  %5614 = vrsqrt.f32 %v4207_v1 }
0x1372   : > { %v5605_v52 = vpop.eup %5604  ;;  %v4208_v13 = vadd.f32 1e-05, %v4200_v30 }
0x1373   : > { %v5607_v56 = vpop.eup %5606  ;;  %v4247_v46 = vadd.f32 %v4683_v2, %v4233_v53  ;;  %v4220_v51 = vmul.f32 %v5605_v52, %v7140_v19 }
0x1374   : > { %v4217_v18 = vmul.f32 %v5607_v56, %v7142_v7  ;;  %5616 = vrsqrt.f32 %v4208_v13 }
0x1375   : > { %4255 = vst.msk [vmem:[%s7180_s3 + $0x10] sm:$0xff] %vm1005_vm0, %v4247_v46  ;;  %v4234_v28 = vmul.f32 %v4682_v63, %v4220_v51 }
0x1376   : > { %v5609_v16 = vpop.eup %5608  ;;  %v4231_v6 = vmul.f32 %v4682_v63, %v4217_v18 }
0x1377   : > { %v4248_v60 = vadd.f32 %v4683_v2, %v4234_v28  ;;  %v4218_v57 = vmul.f32 %v5609_v16, %v7149_v14 }
0x1378   : > { %v4245_v11 = vadd.f32 %v4683_v2, %v4231_v6 }
0x1379   : > { %v5611_v19 = vpop.eup %5610  ;;  %4256 = vst.msk [vmem:[%s7180_s3 + $0x18] sm:$0xff] %vm1005_vm0, %v4248_v60  ;;  %v4232_v7 = vmul.f32 %v4682_v63, %v4218_v57 }
0x137a   : > { %4253 = vst.msk [vmem:[%s7180_s3] sm:$0xff] %vm1005_vm0, %v4245_v11  ;;  %v4221_v41 = vmul.f32 %v5611_v19, %v7155_v5 }
0x137b   : > { %v4246_v8 = vadd.f32 %v4683_v2, %v4232_v7 }
0x137c   : > { %v4235_v34 = vmul.f32 %v4682_v63, %v4221_v41 }
0x137d   : > { %v5613_v48 = vpop.eup %5612  ;;  %4254 = vst.msk [vmem:[%s7180_s3 + $0x8] sm:$0xff] %vm1005_vm0, %v4246_v8 }
0x137e   : > { %v5615_v35 = vpop.eup %5614  ;;  %v4249_v14 = vadd.f32 %v4683_v2, %v4235_v34  ;;  %v4222_v42 = vmul.f32 %v5613_v48, %v7160_v33 }
0x137f   : > { %v4223_v59 = vmul.f32 %v5615_v35, %v7162_v50 }
0x1380   : > { %4257 = vst.msk [vmem:[%s7180_s3 + $0x20] sm:$0xff] %vm1005_vm0, %v4249_v14  ;;  %v4236_v62 = vmul.f32 %v4682_v63, %v4222_v42 }
0x1381   : > { %v5617_v5 = vpop.eup %5616  ;;  %v4237_v49 = vmul.f32 %v4682_v63, %v4223_v59 }
0x1382   : > { %v4250_v27 = vadd.f32 %v4683_v2, %v4236_v62  ;;  %v4224_v54 = vmul.f32 %v5617_v5, %v7169_v58 }
0x1383   : > { %v4251_v39 = vadd.f32 %v4683_v2, %v4237_v49 }
0x1384   : > { %4258 = vst.msk [vmem:[%s7180_s3 + $0x28] sm:$0xff] %vm1005_vm0, %v4250_v27  ;;  %v4238_v55 = vmul.f32 %v4682_v63, %v4224_v54 }
0x1385   : > { %4259 = vst.msk [vmem:[%s7180_s3 + $0x30] sm:$0xff] %vm1005_vm0, %v4251_v39 }
0x1386   : > { %v4252_v33 = vadd.f32 %v4683_v2, %v4238_v55 }
0x1388   : > { %4260 = vst.msk [vmem:[%s7180_s3 + $0x38] sm:$0xff] %vm1005_vm0, %v4252_v33 }
0x1389   : > { %5891 = shalt.err (!%p5888_p3)
}
0x138a   : > { %s5892_s3 = scalar_lea.hbm %s7206_s6, 1024  ;;  %s5896_s8 = scalar_lea.hbm %s7365_s5, 2048 }
0x138b   : > { %p5893_p6 = scmp.ne.s32.totalorder %s7206_s6, %s5892_s3  ;;  %p5897_p1 = scmp.lt.s32.totalorder %s7206_s6, %s7365_s5 }
0x138c   : > { %p5898_p0 = scmp.lt.s32.totalorder %s5896_s8, %s5892_s3 }
0x138d   : > { %p5894_p5 = pnand %p5893_p6, %p7367_p8 }
0x138e   : > { %p5899_p4 = por %p5898_p0, %p5897_p1 }
0x138f   : > { %p5895_p12 = pneg %p5894_p5 }
0x1391   : > { %p5900_p9 = pnand %p5899_p4, %p5895_p12 }
0x1393   : > { %5903 = shalt.err (!%p5900_p9)
}
0x1394   : > { %s5983_s2 = smov 128   ;;  %s5984_s23 = smov 256  }
0x1395   : > { %s7368_s0 = smov 8  }
0x1396   : > { %5252 = dma.vmem_to_hbm [thread:$0]  (%p7367_p8), %s7208_s7, 1024, %s7206_s6, %s7214_s1, %s5983_s2, %s5984_s23, %s7368_s0  }
0x1397 PF: > { %s7369_s16 = sld [smem:[#allocation29_spill]] }
0x1398   : > { %s7370_s4 = sld [smem:[#allocation33_spill]] }
0x139d   : > { %s4289_s11 = sand.u32 1, %s7369_s16  }
0x139e   : > { %p7371_p13 = scmp.ne.s32.totalorder %s7370_s4, 0  ;;  %s4290_s9 = scalar_lea.sflag [#allocation6], %s4289_s11 }
0x13a0   : > { %p5286_p11 = pnand %p4470_p7, %p7371_p13 }
0x13a2   : > { %p5287_p10 = pneg %p5286_p11 }
0x13a4   : > { %5945 = dma.done.wait (%p5287_p10), %s4290_s9, 1024  }
0x13a5   : > { %5947 = vsyncadd (%p5287_p10), %s4290_s9, 4294966272  ;;  %s7372_s30 = sld [smem:[#allocation30_spill]]  ;;  %s7374_s3 = smov %s5954_s28 }
0x13a6   : > { %s7373_s10 = sld [smem:[#allocation31_spill]]  ;;  %s7375_s28 = smov %s5958_s29 }
0x13ab   : > { %p38_p2 = scmp.ge.s32.totalorder %s7372_s30, 4  }
0x13ac   : > { %s7376_s29 = smov %s7373_s10 }
0x13ad   :  { %40 = sbr.rel (!%p38_p2) target bundleno = 25 (0x19), region = 291 }
0x13b2   :  { %4295 = vsyncpa [#allocation5], 1 }
0x13b3   :  { %4297 = vsyncpa [#allocation5 + $0x1], 1 }
0x13b4   :  { %4298 = vsyncpa [#allocation8], 1 }
0x13b5   :  { %4299 = vsyncpa [#allocation11], 1 }
0x13b6   :  { %4300 = vsyncpa [#allocation14], 1 }
0x13b7   :  { %4301 = vsyncpa [#allocation17], 1 }
0x13b8   :  { %4302 = vsyncpa [#allocation20], 1 }
0x13b9   :  { %4303 = vsyncpa [#allocation6], 1 }
0x13ba   :  { %4305 = vsyncpa [#allocation6 + $0x1], 1 }

</bundles_post_ra>
